<compile_context>
chip_gen: v7x
topology: tpu7x:2x2x1
jax: 0.10.0
libtpu: 0.0.40
codegen_flags: <defaults>
</compile_context>

<pallas_src>
import functools

import jax
import jax.numpy as jnp
from jax.experimental import pallas as pl
from jax.experimental.pallas import tpu as pltpu

FINAL_DIM = 1024
IN_DIM = 2048
LN_EPS = 1e-12


def _round_up(x, m):
    return ((x + m - 1) // m) * m


def _linear_relu_ln_kernel(x_ref, w_ref, b_ref, g_ref, beta_ref, valid_ref, o_ref, *, eps):
    """Fused (cast->bf16) Linear -> bias -> ReLU -> LayerNorm -> pad_sequence zeroing."""
    # Full-K matmul: bf16 x bf16 -> f32 accumulate on the MXU.  Single grid axis over M,
    # so no output read-modify-write and no k==0 init pass.
    x = x_ref[...].astype(jnp.bfloat16)
    h = jnp.dot(x, w_ref[...], preferred_element_type=jnp.float32)
    h = jnp.maximum(h + b_ref[...], 0.0)                      # bias + ReLU (f32 epilogue)

    # One-pass LayerNorm statistics.
    inv_f = 1.0 / h.shape[-1]
    mean = jnp.sum(h, axis=-1, keepdims=True) * inv_f
    ex2 = jnp.sum(h * h, axis=-1, keepdims=True) * inv_f
    var = ex2 - mean * mean
    y = (h - mean) * jax.lax.rsqrt(var + eps) * g_ref[...] + beta_ref[...]

    # Fused pad_sequence zeroing: rows with box_mask == 0 are written as exact zeros.
    o_ref[...] = (y * valid_ref[...]).astype(o_ref.dtype)


def linear_relu_layernorm(x, w, b, gamma, beta, valid, *, tm, out_dtype=jnp.bfloat16):
    """x: [M,K] f32, w: [K,F] bf16, b/gamma/beta: [1,F] f32, valid: [M,1] f32 -> [M,F]."""
    M, K = x.shape
    _, F = w.shape
    assert M % tm == 0 and K % 128 == 0 and F % 128 == 0
    kernel = functools.partial(_linear_relu_ln_kernel, eps=LN_EPS)
    return pl.pallas_call(
        kernel,
        out_shape=jax.ShapeDtypeStruct((M, F), out_dtype),
        grid_spec=pltpu.PrefetchScalarGridSpec(
            num_scalar_prefetch=0,
            grid=(M // tm,),                                  # K grid axis removed (tk == K)
            in_specs=[
                pl.BlockSpec((tm, K), lambda i: (i, 0)),      # activations (f32, cast in-kernel)
                pl.BlockSpec((K, F), lambda i: (0, 0)),       # weight (bf16, VMEM-resident)
                pl.BlockSpec((1, F), lambda i: (0, 0)),       # bias (f32)
                pl.BlockSpec((1, F), lambda i: (0, 0)),       # ln gamma (f32)
                pl.BlockSpec((1, F), lambda i: (0, 0)),       # ln beta (f32)
                pl.BlockSpec((tm, 1), lambda i: (i, 0)),      # per-row validity (f32)
            ],
            out_specs=pl.BlockSpec((tm, F), lambda i: (i, 0)),
        ),
        compiler_params=pltpu.CompilerParams(
            dimension_semantics=("parallel",),                # M tiles: megacore on v7x
            vmem_limit_bytes=32 * 1024 * 1024,                # above v5e's 16 MiB scoped default
        ),
    )(x, w, b, gamma, beta, valid)


def _pick_tm(m, *, max_tm=512, min_tm=16, min_tiles=2):
    """Row tile: multiple of 16 (bf16 packing), capped at 512 (~18 MiB VMEM incl. double
    buffers + resident weight), and at least `min_tiles` tiles when M allows so the
    parallel M axis can span both v7x TensorCores."""
    if m <= min_tm:
        return min_tm
    tm = _round_up(-(-m // min_tiles), min_tm)
    return min(max_tm, tm)


def simple_detector_forward(params, img_feats, boxes, box_mask, obj_labels):
    """JAX/Pallas equivalent of SimpleDetector.forward (semantic=False, use_bbox=False)."""
    del boxes, obj_labels  # unused when use_bbox=False / semantic=False
    B, N, K = img_feats.shape
    M = B * N

    mask = box_mask.astype(jnp.int32)

    # TODO(synk): Dropout(p=0.1) treated as identity (inference mode).
    # Raw-order feed: no input gather and no host-side bf16 cast pass; the nonzero()
    # compaction happens after the kernel on the 1024-wide bf16 output instead.
    x = img_feats.reshape(M, K)
    valid = mask.reshape(M, 1).astype(jnp.float32)
    w = params["w"].astype(jnp.bfloat16)

    tm = _pick_tm(M)
    M_pad = _round_up(M, tm)
    if M_pad != M:
        # TODO(synk): for large non-tile-multiple M a ragged (pl.cdiv) grid would avoid
        #             this pad copy of the activations.
        x = jnp.pad(x, ((0, M_pad - M), (0, 0)))
        valid = jnp.pad(valid, ((0, M_pad - M), (0, 0)))

    # TODO(synk): tiles whose rows are all invalid still hit the MXU; a scalar-prefetch
    #             skip (pl.when + repeated block index) could elide that DMA/compute.
    y = linear_relu_layernorm(
        x, w, params["b"], params["gamma"], params["beta"], valid, tm=tm
    )[:M].reshape(B, N, FINAL_DIM)

    # pad_sequence: compact valid rows (original order preserved) to the front of each
    # batch row.  Invalid rows were already zeroed in the kernel epilogue, so compaction
    # alone yields the zero padding — no extra masking pass.
    order = jnp.argsort(1 - mask, axis=1, stable=True)
    obj_reps = jnp.take_along_axis(y, order[:, :, None], axis=1)
    return {"obj_reps": obj_reps, "cnn_regularization_loss": None}


def _reference_forward(params, img_feats, box_mask):
    """Pure-JAX reference (same bf16 MXU feed / f32 epilogue) for correctness checking."""
    B, N, K = img_feats.shape
    x = img_feats.reshape(B * N, K).astype(jnp.bfloat16)
    w = params["w"].astype(jnp.bfloat16)
    h = jnp.dot(x, w, preferred_element_type=jnp.float32) + params["b"]
    h = jnp.maximum(h, 0.0)
    mean = h.mean(-1, keepdims=True)
    var = ((h - mean) ** 2).mean(-1, keepdims=True)
    y = (h - mean) / jnp.sqrt(var + LN_EPS) * params["gamma"] + params["beta"]
    y = y.reshape(B, N, FINAL_DIM)
    mask = box_mask.astype(jnp.int32)
    lengths = mask.sum(axis=1)
    order = jnp.argsort(1 - mask, axis=1, stable=True)
    compacted = jnp.take_along_axis(y, order[:, :, None], axis=1)
    pos = jnp.arange(N)[None, :]
    return jnp.where((pos < lengths[:, None])[:, :, None], compacted, 0.0)


if __name__ == "__main__":
    key = jax.random.PRNGKey(0)
    k_feat, k_w, k_b, k_box = jax.random.split(key, 4)

    B, N = 2, 8  # batch_size, max_num_objects

    # Deterministic parameter init (shapes per SimpleDetector.__init__ defaults).
    params = {
        "w": jax.random.normal(k_w, (IN_DIM, FINAL_DIM), jnp.float32) * 0.02,
        "b": jax.random.normal(k_b, (1, FINAL_DIM), jnp.float32) * 0.02,
        "gamma": jnp.ones((1, FINAL_DIM), jnp.float32),   # LayerNorm weight
        "beta": jnp.zeros((1, FINAL_DIM), jnp.float32),   # LayerNorm bias
    }

    img_feats = jax.random.normal(k_feat, (B, N, IN_DIM), jnp.float32)
    boxes = jax.random.uniform(k_box, (B, N, 7), jnp.float32)
    # Non-prefix validity mask (exercises the general box_mask.nonzero() compaction).
    box_mask = jnp.array(
        [[1, 0, 1, 1, 0, 1, 1, 0],
         [0, 1, 1, 0, 0, 0, 1, 0]], dtype=jnp.int32
    )
    obj_labels = jnp.zeros((B, N), dtype=jnp.int32)

    out = simple_detector_forward(params, img_feats, boxes, box_mask, obj_labels)
    obj_reps = jax.block_until_ready(out["obj_reps"])

    ref = jax.block_until_ready(_reference_forward(params, img_feats, box_mask))
    assert obj_reps.shape == (B, N, FINAL_DIM)
    # bf16 MXU feed + bf16 output -> looser tolerance than pure-f32 (expected quantization).
    assert jnp.allclose(obj_reps.astype(jnp.float32), ref, atol=2.5e-2, rtol=2.5e-2)

    print("KERNEL_OK")
</pallas_src>

<mosaic_0001>
module attributes {stable_mosaic.version = 11 : i64} {
  func.func @_linear_relu_ln_kernel(%arg0: i32, %arg1: memref<16x2048xf32, #tpu.memory_space<vmem>>, %arg2: memref<2048x1024xbf16, #tpu.memory_space<vmem>>, %arg3: memref<1x1024xf32, #tpu.memory_space<vmem>>, %arg4: memref<1x1024xf32, #tpu.memory_space<vmem>>, %arg5: memref<1x1024xf32, #tpu.memory_space<vmem>>, %arg6: memref<16x1xf32, #tpu.memory_space<vmem>>, %arg7: memref<16x1024xbf16, #tpu.memory_space<vmem>>) attributes {dimension_semantics = [#tpu.dimension_semantics<parallel>], iteration_bounds = array<i64: 1>, scalar_prefetch = 0 : i64, scratch_operands = 0 : i64, tpu.core_type = #tpu.core_type<tc>, window_params = [{transform_indices = @transform_0, window_bounds = array<i64: 16, 2048>}, {pipeline_mode = #tpu.pipeline_mode<synchronous>, transform_indices = @transform_1, window_bounds = array<i64: 2048, 1024>}, {pipeline_mode = #tpu.pipeline_mode<synchronous>, transform_indices = @transform_2, window_bounds = array<i64: 1, 1024>}, {pipeline_mode = #tpu.pipeline_mode<synchronous>, transform_indices = @transform_3, window_bounds = array<i64: 1, 1024>}, {pipeline_mode = #tpu.pipeline_mode<synchronous>, transform_indices = @transform_4, window_bounds = array<i64: 1, 1024>}, {transform_indices = @transform_5, window_bounds = array<i64: 16, 1>}, {transform_indices = @transform_6, window_bounds = array<i64: 16, 1024>}]} {
    %c0 = arith.constant 0 : index
    %c0_0 = arith.constant 0 : index
    %0 = vector.load %arg1[%c0, %c0_0] : memref<16x2048xf32, #tpu.memory_space<vmem>>, vector<16x2048xf32>
    %1 = arith.truncf %0 : vector<16x2048xf32> to vector<16x2048xbf16>
    %c0_1 = arith.constant 0 : index
    %c0_2 = arith.constant 0 : index
    %2 = vector.load %arg2[%c0_1, %c0_2] : memref<2048x1024xbf16, #tpu.memory_space<vmem>>, vector<2048x1024xbf16>
    %cst = arith.constant dense<0.000000e+00> : vector<16x1024xf32>
    %3 = tpu.matmul %1, %2, %cst {dimension_numbers = #tpu.dot_dimension_numbers<[1], [0], [0], [1], [0, 0, 1, 1], [], []>} : vector<16x2048xbf16>, vector<2048x1024xbf16>, vector<16x1024xf32> -> vector<16x1024xf32>
    %c0_3 = arith.constant 0 : index
    %c0_4 = arith.constant 0 : index
    %4 = vector.load %arg3[%c0_3, %c0_4] : memref<1x1024xf32, #tpu.memory_space<vmem>>, vector<1x1024xf32>
    %5 = vector.broadcast %4 : vector<1x1024xf32> to vector<16x1024xf32>
    %6 = arith.addf %3, %5 : vector<16x1024xf32>
    %cst_5 = arith.constant 0.000000e+00 : f32
    %7 = vector.broadcast %cst_5 : f32 to vector<16x1024xf32>
    %8 = arith.maximumf %6, %7 : vector<16x1024xf32>
    %cst_6 = arith.constant dense<0.000000e+00> : vector<16xf32>
    %9 = vector.multi_reduction <add>, %8, %cst_6 [1] : vector<16x1024xf32> to vector<16xf32>
    %10 = vector.shape_cast %9 : vector<16xf32> to vector<16x1xf32>
    %cst_7 = arith.constant 9.765625E-4 : f32
    %11 = vector.broadcast %cst_7 : f32 to vector<16x1xf32>
    %12 = arith.mulf %10, %11 : vector<16x1xf32>
    %13 = arith.mulf %8, %8 : vector<16x1024xf32>
    %cst_8 = arith.constant dense<0.000000e+00> : vector<16xf32>
    %14 = vector.multi_reduction <add>, %13, %cst_8 [1] : vector<16x1024xf32> to vector<16xf32>
    %15 = vector.shape_cast %14 : vector<16xf32> to vector<16x1xf32>
    %cst_9 = arith.constant 9.765625E-4 : f32
    %16 = vector.broadcast %cst_9 : f32 to vector<16x1xf32>
    %17 = arith.mulf %15, %16 : vector<16x1xf32>
    %18 = arith.mulf %12, %12 : vector<16x1xf32>
    %19 = arith.subf %17, %18 : vector<16x1xf32>
    %20 = vector.broadcast %12 : vector<16x1xf32> to vector<16x1024xf32>
    %21 = arith.subf %8, %20 : vector<16x1024xf32>
    %cst_10 = arith.constant 9.99999996E-13 : f32
    %22 = vector.broadcast %cst_10 : f32 to vector<16x1xf32>
    %23 = arith.addf %19, %22 : vector<16x1xf32>
    %24 = math.rsqrt %23 : vector<16x1xf32>
    %25 = vector.broadcast %24 : vector<16x1xf32> to vector<16x1024xf32>
    %26 = arith.mulf %21, %25 : vector<16x1024xf32>
    %c0_11 = arith.constant 0 : index
    %c0_12 = arith.constant 0 : index
    %27 = vector.load %arg4[%c0_11, %c0_12] : memref<1x1024xf32, #tpu.memory_space<vmem>>, vector<1x1024xf32>
    %28 = vector.broadcast %27 : vector<1x1024xf32> to vector<16x1024xf32>
    %29 = arith.mulf %26, %28 : vector<16x1024xf32>
    %c0_13 = arith.constant 0 : index
    %c0_14 = arith.constant 0 : index
    %30 = vector.load %arg5[%c0_13, %c0_14] : memref<1x1024xf32, #tpu.memory_space<vmem>>, vector<1x1024xf32>
    %31 = vector.broadcast %30 : vector<1x1024xf32> to vector<16x1024xf32>
    %32 = arith.addf %29, %31 : vector<16x1024xf32>
    %c0_15 = arith.constant 0 : index
    %c0_16 = arith.constant 0 : index
    %33 = vector.load %arg6[%c0_15, %c0_16] : memref<16x1xf32, #tpu.memory_space<vmem>>, vector<16x1xf32>
    %34 = vector.broadcast %33 : vector<16x1xf32> to vector<16x1024xf32>
    %35 = arith.mulf %32, %34 : vector<16x1024xf32>
    %36 = arith.truncf %35 : vector<16x1024xf32> to vector<16x1024xbf16>
    %c0_17 = arith.constant 0 : index
    %c0_18 = arith.constant 0 : index
    %37 = vector.load %arg7[%c0_17, %c0_18] : memref<16x1024xbf16, #tpu.memory_space<vmem>>, vector<16x1024xbf16>
    tpu.vector_store %arg7[%c0_17, %c0_18], %36 {strides = array<i32>} : memref<16x1024xbf16, #tpu.memory_space<vmem>>, vector<16x1024xbf16>,
    return
  }
  func.func @transform_0(%arg0: i32) -> (i32, i32) {
    %c0_i32 = arith.constant 0 : i32
    %c0_i32_0 = arith.constant 0 : i32
    return %arg0, %c0_i32 : i32, i32
  }
  func.func @transform_1(%arg0: i32) -> (i32, i32) {
    %c0_i32 = arith.constant 0 : i32
    %c0_i32_0 = arith.constant 0 : i32
    %c0_i32_1 = arith.constant 0 : i32
    return %c0_i32, %c0_i32_0 : i32, i32
  }
  func.func @transform_2(%arg0: i32) -> (i32, i32) {
    %c0_i32 = arith.constant 0 : i32
    %c0_i32_0 = arith.constant 0 : i32
    %c0_i32_1 = arith.constant 0 : i32
    return %c0_i32, %c0_i32_0 : i32, i32
  }
  func.func @transform_3(%arg0: i32) -> (i32, i32) {
    %c0_i32 = arith.constant 0 : i32
    %c0_i32_0 = arith.constant 0 : i32
    %c0_i32_1 = arith.constant 0 : i32
    return %c0_i32, %c0_i32_0 : i32, i32
  }
  func.func @transform_4(%arg0: i32) -> (i32, i32) {
    %c0_i32 = arith.constant 0 : i32
    %c0_i32_0 = arith.constant 0 : i32
    %c0_i32_1 = arith.constant 0 : i32
    return %c0_i32, %c0_i32_0 : i32, i32
  }
  func.func @transform_5(%arg0: i32) -> (i32, i32) {
    %c0_i32 = arith.constant 0 : i32
    %c0_i32_0 = arith.constant 0 : i32
    return %arg0, %c0_i32 : i32, i32
  }
  func.func @transform_6(%arg0: i32) -> (i32, i32) {
    %c0_i32 = arith.constant 0 : i32
    %c0_i32_0 = arith.constant 0 : i32
    return %arg0, %c0_i32 : i32, i32
  }
}

</mosaic_0001>

<bundles_post_ra>
// kernel: tpu_custom_call.1
= control target key start
LH: loop header
LB: loop body
LE: loop exit
PB: predicated region body
PF: predicated region fallthrough
CT: control target
= control target key end

     0   :  { %11 = vsyncpa [#allocation3], 0  ;;  %s9814_s0 = inlined_call_operand.hbm [shape: f32[16,2048], index: 0, kind: input, shape index: {}]   ;;  %s9815_s1 = inlined_call_operand.hbm [shape: bf16[2048,1024], index: 1, kind: input, shape index: {}]   ;;  %s9816_s2 = inlined_call_operand.hbm [shape: f32[1,1024], index: 2, kind: input, shape index: {}]   ;;  %s9817_s3 = inlined_call_operand.hbm [shape: f32[1,1024], index: 3, kind: input, shape index: {}]   ;;  %s9818_s4 = inlined_call_operand.hbm [shape: f32[1,1024], index: 4, kind: input, shape index: {}]   ;;  %s9819_s5 = inlined_call_operand.vmem [shape: f32[16,1], index: 5, kind: input, shape index: {}]   ;;  %s9820_s6 = inlined_call_operand.hbm [shape: bf16[16,1024], index: 6, kind: output, shape index: {}]  }
   0x1   :  { %12 = vsyncpa [#allocation6], 0 }
   0x2   :  { %13 = vsyncpa [#allocation9], 0 }
   0x3   :  { %14 = vsyncpa [#allocation4], 0  ;;  %s9352_s21 = smov [#allocation5]   ;;  %s9212_s25 = scalar_lea.hbm %s9815_s1, 131072 }
   0x4   :  { %s32_s22 = sshll.u32 %s9352_s21, 4  ;;  %p9213_p0 = scmp.ne.s32.totalorder %s9815_s1, %s9212_s25  ;;  %s33_s22 = int_to_ptr.vmem [resolvable:$true] %s32_s22 }
   0x5   :  { %p9216_p1 = scmp.lt.u32.totalorder %s9212_s25, %s9815_s1 }
   0x7   :  { %p9218_p2 = pnand %p9216_p1, %p9213_p0 }
   0x9   :  { %9221 = shalt.err (!%p9218_p2)
}
   0xa   :  { %s9222_s30 = scalar_lea.vmem %s33_s22, 131072  ;;  %p9227_p4 = scmp.lt.s32.totalorder %s33_s22, %s33_s22 }
   0xb   :  { %p9223_p3 = scmp.ne.s32.totalorder %s33_s22, %s9222_s30  ;;  %p9228_p5 = scmp.lt.s32.totalorder %s9222_s30, %s9222_s30 }
   0xd   :  { %p9229_p6 = por %p9228_p5, %p9227_p4 }
   0xf   :  { %p9230_p7 = pnand %p9229_p6, %p9223_p3 }
  0x11   :  { %9233 = shalt.err (!%p9230_p7)
}
  0x12   :  { %s9353_s7 = smov 512   ;;  %s9354_s8 = smov 32  }
  0x13   :  { %38 = dma.hbm_to_vmem [thread:$0]  %s9815_s1, 131072, %s33_s22, [#allocation6], %s9353_s7, %s9353_s7, %s9354_s8  }
  0x14   :  { %s9355_s11 = smov [#allocation8]   ;;  %s9356_s13 = smov [#allocation2]  }
  0x15   :  { %s55_s12 = sshll.u32 %s9355_s11, 4  ;;  %s20_s14 = sshll.u32 %s9356_s13, 4  ;;  %s56_s12 = int_to_ptr.vmem [resolvable:$true] %s55_s12  ;;  %s21_s14 = int_to_ptr.vmem [resolvable:$true] %s20_s14 }
  0x16   :  { %s9234_s17 = scalar_lea.hbm %s9817_s3, 128 }
  0x17   :  { %p9235_p8 = scmp.ne.s32.totalorder %s9817_s3, %s9234_s17  ;;  %p9238_p9 = scmp.lt.u32.totalorder %s9234_s17, %s9817_s3 }
  0x19   :  { %p9240_p10 = pnand %p9238_p9, %p9235_p8 }
  0x1b   :  { %9243 = shalt.err (!%p9240_p10)
}
  0x1c   :  { %s9244_s1 = scalar_lea.vmem %s56_s12, 128  ;;  %p9249_p12 = scmp.lt.s32.totalorder %s56_s12, %s56_s12 }
  0x1d   :  { %p9245_p11 = scmp.ne.s32.totalorder %s56_s12, %s9244_s1  ;;  %p9250_p13 = scmp.lt.s32.totalorder %s9244_s1, %s9244_s1 }
  0x1f   :  { %p9251_p0 = por %p9250_p13, %p9249_p12 }
  0x21   :  { %p9252_p1 = pnand %p9251_p0, %p9245_p11 }
  0x23   :  { %9255 = shalt.err (!%p9252_p1)
}
  0x24   :  { %58 = dma.hbm_to_vmem [thread:$0]  %s9817_s3, 128, %s56_s12, [#allocation9]  }
  0x25   :  { %s9256_s26 = scalar_lea.hbm %s9814_s0, 4096 }
  0x26   :  { %p9257_p2 = scmp.ne.s32.totalorder %s9814_s0, %s9256_s26  ;;  %p9260_p3 = scmp.lt.u32.totalorder %s9256_s26, %s9814_s0 }
  0x28   :  { %p9262_p4 = pnand %p9260_p3, %p9257_p2 }
  0x2a   :  { %9265 = shalt.err (!%p9262_p4)
}
  0x2b   :  { %s9266_s9 = scalar_lea.vmem %s21_s14, 4096  ;;  %p9271_p6 = scmp.lt.s32.totalorder %s21_s14, %s21_s14 }
  0x2c   :  { %p9267_p5 = scmp.ne.s32.totalorder %s21_s14, %s9266_s9  ;;  %p9272_p7 = scmp.lt.s32.totalorder %s9266_s9, %s9266_s9 }
  0x2e   :  { %p9273_p8 = por %p9272_p7, %p9271_p6 }
  0x30   :  { %p9274_p9 = pnand %p9273_p8, %p9267_p5 }
  0x32   :  { %9277 = shalt.err (!%p9274_p9)
}
  0x33   :  { %s9357_s3 = smov 2048   ;;  %s9358_s10 = smov 128  }
  0x34   :  { %26 = dma.hbm_to_vmem [thread:$0]  %s9814_s0, 4096, %s21_s14, [#allocation3], %s9357_s3, %s9357_s3, %s9358_s10  }
  0x35   :  { %s9359_s13 = smov [#allocation7]   ;;  %s9360_s16 = smov [#allocation10]  }
  0x36   :  { %s45_s15 = sshll.u32 %s9359_s13, 4  ;;  %s65_s17 = sshll.u32 %s9360_s16, 4  ;;  %s46_s15 = int_to_ptr.vmem [resolvable:$true] %s45_s15  ;;  %s66_s17 = int_to_ptr.vmem [resolvable:$true] %s65_s17 }
  0x37   :  { %s9278_s20 = scalar_lea.hbm %s9816_s2, 128 }
  0x38   :  { %p9279_p10 = scmp.ne.s32.totalorder %s9816_s2, %s9278_s20  ;;  %p9282_p11 = scmp.lt.u32.totalorder %s9278_s20, %s9816_s2 }
  0x3a   :  { %p9284_p12 = pnand %p9282_p11, %p9279_p10 }
  0x3c   :  { %9287 = shalt.err (!%p9284_p12)
}
  0x3d   :  { %s9288_s0 = scalar_lea.vmem %s46_s15, 128  ;;  %p9293_p0 = scmp.lt.s32.totalorder %s46_s15, %s46_s15 }
  0x3e   :  { %p9289_p13 = scmp.ne.s32.totalorder %s46_s15, %s9288_s0  ;;  %p9294_p1 = scmp.lt.s32.totalorder %s9288_s0, %s9288_s0 }
  0x40   :  { %p9295_p2 = por %p9294_p1, %p9293_p0 }
  0x42   :  { %p9296_p3 = pnand %p9295_p2, %p9289_p13 }
  0x44   :  { %9299 = shalt.err (!%p9296_p3)
}
  0x45   :  { %48 = dma.hbm_to_vmem [thread:$0]  %s9816_s2, 128, %s46_s15, [#allocation6]  }
  0x46   :  { %s9300_s27 = scalar_lea.hbm %s9818_s4, 128 }
  0x47   :  { %p9301_p4 = scmp.ne.s32.totalorder %s9818_s4, %s9300_s27  ;;  %p9304_p5 = scmp.lt.u32.totalorder %s9300_s27, %s9818_s4 }
  0x49   :  { %p9306_p6 = pnand %p9304_p5, %p9301_p4 }
  0x4b   :  { %9309 = shalt.err (!%p9306_p6)
}
  0x4c   :  { %s9310_s3 = scalar_lea.vmem %s66_s17, 128  ;;  %p9315_p8 = scmp.lt.s32.totalorder %s66_s17, %s66_s17 }
  0x4d   :  { %p9311_p7 = scmp.ne.s32.totalorder %s66_s17, %s9310_s3  ;;  %p9316_p9 = scmp.lt.s32.totalorder %s9310_s3, %s9310_s3 }
  0x4f   :  { %p9317_p10 = por %p9316_p9, %p9315_p8 }
  0x51   :  { %p9318_p11 = pnand %p9317_p10, %p9311_p7 }
  0x53   :  { %9321 = shalt.err (!%p9318_p11)
}
  0x54   :  { %68 = dma.hbm_to_vmem [thread:$0]  %s9818_s4, 128, %s66_s17, [#allocation9]  }
  0x55   :  { %9344 = dma.done.wait [#allocation3], 4096  }
  0x56   :  { %9345 = vsyncadd [#allocation3], 4294963200 }
  0x57   :  { %9346 = dma.done.wait [#allocation6], 131200  }
  0x58   :  { %9347 = vsyncadd [#allocation6], 4294836096 }
  0x59   :  { %9348 = dma.done.wait [#allocation9], 256  }
  0x5a   :  { %9349 = vsyncadd [#allocation9], 4294967040  ;;  %v134_v0 = vld [vmem:[#allocation5] sm:$0xff]  ;;  %v135_v2 = vld [vmem:[#allocation5 + $0x8] sm:$0xff] }
  0x5b   :  { %v138_v1 = vld [vmem:[#allocation5 + $0x20] sm:$0xff]  ;;  %v139_v4 = vld [vmem:[#allocation5 + $0x28] sm:$0xff] }
  0x5c   :  { %v8028_v3 = vcombine.high %v134_v0, %v138_v1  ;;  %v8027_v5 = vcombine.low %v134_v0, %v138_v1  ;;  %v142_v6 = vld [vmem:[#allocation5 + $0x40] sm:$0xff]  ;;  %v8030_v8 = vcombine.high %v135_v2, %v139_v4  ;;  %v8029_v9 = vcombine.low %v135_v2, %v139_v4  ;;  %v143_v11 = vld [vmem:[#allocation5 + $0x48] sm:$0xff] }
  0x5d   :  { %v146_v7 = vld [vmem:[#allocation5 + $0x60] sm:$0xff]  ;;  %v147_v12 = vld [vmem:[#allocation5 + $0x68] sm:$0xff] }
  0x5e   :  { %v8036_v10 = vcombine.high %v142_v6, %v146_v7  ;;  %v150_v13 = vld [vmem:[#allocation5 + $0x80] sm:$0xff]  ;;  %6320 = vmatprep.subr.bf16.mxu0 %v8028_v3  ;;  %v8038_v14 = vcombine.high %v143_v11, %v147_v12  ;;  %v151_v16 = vld [vmem:[#allocation5 + $0x88] sm:$0xff]  ;;  %6664 = vmatprep.subr.bf16.mxu1 %v8030_v8  ;;  %v8035_v18 = vcombine.low %v142_v6, %v146_v7 }
  0x5f   :  { %v154_v15 = vld [vmem:[#allocation5 + $0xa0] sm:$0xff]  ;;  %v155_v17 = vld [vmem:[#allocation5 + $0xa8] sm:$0xff]  ;;  %6321 = vmatpush1.bf16.msra.mxu0 %v8027_v5  ;;  %6665 = vmatpush1.bf16.msra.mxu1 %v8029_v9  ;;  %v8037_v19 = vcombine.low %v143_v11, %v147_v12 }
  0x60   :  { %6322 = vmatprep.subr.bf16.mxu0 %v8036_v10  ;;  %v8044_v20 = vcombine.high %v150_v13, %v154_v15  ;;  %6666 = vmatprep.subr.bf16.mxu1 %v8038_v14  ;;  %v8046_v21 = vcombine.high %v151_v16, %v155_v17  ;;  %v158_v22 = vld [vmem:[#allocation5 + $0xc0] sm:$0xff]  ;;  %v159_v24 = vld [vmem:[#allocation5 + $0xc8] sm:$0xff]  ;;  %v8043_v26 = vcombine.low %v150_v13, %v154_v15 }
  0x61   :  { %v162_v23 = vld [vmem:[#allocation5 + $0xe0] sm:$0xff]  ;;  %v163_v25 = vld [vmem:[#allocation5 + $0xe8] sm:$0xff]  ;;  %v8045_v27 = vcombine.low %v151_v16, %v155_v17 }
  0x62   :  { %v8052_v28 = vcombine.high %v158_v22, %v162_v23  ;;  %v8054_v29 = vcombine.high %v159_v24, %v163_v25  ;;  %v166_v30 = vld [vmem:[#allocation5 + $0x100] sm:$0xff]  ;;  %v167_v32 = vld [vmem:[#allocation5 + $0x108] sm:$0xff]  ;;  %v8051_v34 = vcombine.low %v158_v22, %v162_v23  ;;  %v8053_v35 = vcombine.low %v159_v24, %v163_v25 }
  0x63   :  { %6323 = vmatpush1.bf16.msra.mxu0 %v8035_v18  ;;  %6667 = vmatpush1.bf16.msra.mxu1 %v8037_v19  ;;  %v170_v31 = vld [vmem:[#allocation5 + $0x120] sm:$0xff]  ;;  %v171_v33 = vld [vmem:[#allocation5 + $0x128] sm:$0xff] }
  0x64   :  { %6324 = vmatprep.subr.bf16.mxu0 %v8044_v20  ;;  %6668 = vmatprep.subr.bf16.mxu1 %v8046_v21  ;;  %v8060_v36 = vcombine.high %v166_v30, %v170_v31  ;;  %v8062_v37 = vcombine.high %v167_v32, %v171_v33  ;;  %v174_v38 = vld [vmem:[#allocation5 + $0x140] sm:$0xff]  ;;  %v175_v40 = vld [vmem:[#allocation5 + $0x148] sm:$0xff]  ;;  %v8059_v42 = vcombine.low %v166_v30, %v170_v31 }
  0x65   :  { %v178_v39 = vld [vmem:[#allocation5 + $0x160] sm:$0xff]  ;;  %v179_v41 = vld [vmem:[#allocation5 + $0x168] sm:$0xff]  ;;  %v8061_v43 = vcombine.low %v167_v32, %v171_v33 }
  0x66   :  { %v8068_v44 = vcombine.high %v174_v38, %v178_v39  ;;  %v8070_v45 = vcombine.high %v175_v40, %v179_v41  ;;  %v182_v46 = vld [vmem:[#allocation5 + $0x180] sm:$0xff]  ;;  %v183_v48 = vld [vmem:[#allocation5 + $0x188] sm:$0xff]  ;;  %v8067_v50 = vcombine.low %v174_v38, %v178_v39  ;;  %v8069_v51 = vcombine.low %v175_v40, %v179_v41 }
  0x67   :  { %6325 = vmatpush1.bf16.msra.mxu0 %v8043_v26  ;;  %6669 = vmatpush1.bf16.msra.mxu1 %v8045_v27  ;;  %v186_v47 = vld [vmem:[#allocation5 + $0x1a0] sm:$0xff]  ;;  %v187_v49 = vld [vmem:[#allocation5 + $0x1a8] sm:$0xff] }
  0x68   :  { %6326 = vmatprep.subr.bf16.mxu0 %v8052_v28  ;;  %6670 = vmatprep.subr.bf16.mxu1 %v8054_v29  ;;  %v8076_v52 = vcombine.high %v182_v46, %v186_v47  ;;  %v87_v53 = vld [vmem:[#allocation2 + $0x8] sm:$0xff]  ;;  %v8078_v55 = vcombine.high %v183_v48, %v187_v49  ;;  %v190_v56 = vld [vmem:[#allocation5 + $0x1c0] sm:$0xff]  ;;  %v8075_v61 = vcombine.low %v182_v46, %v186_v47 }
  0x69   :  { %v103_v54 = vld [vmem:[#allocation2 + $0x88] sm:$0xff]  ;;  %v194_v57 = vld [vmem:[#allocation5 + $0x1e0] sm:$0xff]  ;;  %v8077_v62 = vcombine.low %v183_v48, %v187_v49 }
  0x6a   :  { %v9461_v58 = vpack.c.bf16 %v103_v54, %v87_v53  ;;  %v191_v59 = vld [vmem:[#allocation5 + $0x1c8] sm:$0xff]  ;;  %v8084_v63 = vcombine.high %v190_v56, %v194_v57  ;;  %v198_v1 = vld [vmem:[#allocation5 + $0x200] sm:$0xff]  ;;  %v8083_v5 = vcombine.low %v190_v56, %v194_v57 }
  0x6b   :  { %6327 = vmatpush1.bf16.msra.mxu0 %v8051_v34  ;;  %6671 = vmatpush1.bf16.msra.mxu1 %v8053_v35  ;;  %v195_v60 = vld [vmem:[#allocation5 + $0x1e8] sm:$0xff]  ;;  %v202_v2 = vld [vmem:[#allocation5 + $0x220] sm:$0xff] }
  0x6c   :  { %6328 = vmatprep.subr.bf16.mxu0 %v8060_v36  ;;  %6672 = vmatprep.subr.bf16.mxu1 %v8062_v37  ;;  %v8086_v0 = vcombine.high %v191_v59, %v195_v60  ;;  %v199_v3 = vld [vmem:[#allocation5 + $0x208] sm:$0xff]  ;;  %v8085_v6 = vcombine.low %v191_v59, %v195_v60  ;;  %v8092_v7 = vcombine.high %v198_v1, %v202_v2  ;;  %v206_v9 = vld [vmem:[#allocation5 + $0x240] sm:$0xff] }
  0x6d   :  { %6352 = vmatprep.mubr.bf16.mxu0 %v9461_v58  ;;  %6696 = vmatprep.mubr.bf16.mxu1 %v9461_v58  ;;  %v203_v4 = vld [vmem:[#allocation5 + $0x228] sm:$0xff]  ;;  %v210_v10 = vld [vmem:[#allocation5 + $0x260] sm:$0xff]  ;;  %v8091_v13 = vcombine.low %v198_v1, %v202_v2 }
  0x6e   :  { %v8094_v8 = vcombine.high %v199_v3, %v203_v4  ;;  %v207_v11 = vld [vmem:[#allocation5 + $0x248] sm:$0xff]  ;;  %v8093_v14 = vcombine.low %v199_v3, %v203_v4  ;;  %v8100_v15 = vcombine.high %v206_v9, %v210_v10  ;;  %v214_v17 = vld [vmem:[#allocation5 + $0x280] sm:$0xff]  ;;  %v8099_v21 = vcombine.low %v206_v9, %v210_v10 }
  0x6f   :  { %6329 = vmatpush1.bf16.msra.mxu0 %v8059_v42  ;;  %6673 = vmatpush1.bf16.msra.mxu1 %v8061_v43  ;;  %v211_v12 = vld [vmem:[#allocation5 + $0x268] sm:$0xff]  ;;  %v218_v18 = vld [vmem:[#allocation5 + $0x2a0] sm:$0xff] }
  0x70   :  { %6330 = vmatprep.subr.bf16.mxu0 %v8068_v44  ;;  %6674 = vmatprep.subr.bf16.mxu1 %v8070_v45  ;;  %v8102_v16 = vcombine.high %v207_v11, %v211_v12  ;;  %v215_v19 = vld [vmem:[#allocation5 + $0x288] sm:$0xff]  ;;  %v8101_v22 = vcombine.low %v207_v11, %v211_v12  ;;  %v8108_v23 = vcombine.high %v214_v17, %v218_v18  ;;  %v222_v25 = vld [vmem:[#allocation5 + $0x2c0] sm:$0xff] }
  0x71   :  { %v219_v20 = vld [vmem:[#allocation5 + $0x2a8] sm:$0xff]  ;;  %v226_v26 = vld [vmem:[#allocation5 + $0x2e0] sm:$0xff]  ;;  %v8107_v29 = vcombine.low %v214_v17, %v218_v18  ;;  %v89_v17 = vld [vmem:[#allocation2 + $0x18] sm:$0xff] }
  0x72   :  { %v8110_v24 = vcombine.high %v215_v19, %v219_v20  ;;  %v223_v27 = vld [vmem:[#allocation5 + $0x2c8] sm:$0xff]  ;;  %v8109_v30 = vcombine.low %v215_v19, %v219_v20  ;;  %v8116_v31 = vcombine.high %v222_v25, %v226_v26  ;;  %v230_v33 = vld [vmem:[#allocation5 + $0x300] sm:$0xff]  ;;  %v8115_v37 = vcombine.low %v222_v25, %v226_v26  ;;  %v105_v18 = vld [vmem:[#allocation2 + $0x98] sm:$0xff] }
  0x73   :  { %6331 = vmatpush1.bf16.msra.mxu0 %v8067_v50  ;;  %6675 = vmatpush1.bf16.msra.mxu1 %v8069_v51  ;;  %v227_v28 = vld [vmem:[#allocation5 + $0x2e8] sm:$0xff]  ;;  %v234_v34 = vld [vmem:[#allocation5 + $0x320] sm:$0xff]  ;;  %v9467_v25 = vpack.c.bf16 %v105_v18, %v89_v17 }
  0x74   :  { %6332 = vmatprep.subr.bf16.mxu0 %v8076_v52  ;;  %6676 = vmatprep.subr.bf16.mxu1 %v8078_v55  ;;  %v8118_v32 = vcombine.high %v223_v27, %v227_v28  ;;  %v231_v35 = vld [vmem:[#allocation5 + $0x308] sm:$0xff]  ;;  %v8117_v38 = vcombine.low %v223_v27, %v227_v28  ;;  %v8124_v39 = vcombine.high %v230_v33, %v234_v34  ;;  %v238_v41 = vld [vmem:[#allocation5 + $0x340] sm:$0xff] }
  0x75   :  { %v235_v36 = vld [vmem:[#allocation5 + $0x328] sm:$0xff]  ;;  %v242_v42 = vld [vmem:[#allocation5 + $0x360] sm:$0xff]  ;;  %v8123_v45 = vcombine.low %v230_v33, %v234_v34 }
  0x76   :  { %v8126_v40 = vcombine.high %v231_v35, %v235_v36  ;;  %v239_v43 = vld [vmem:[#allocation5 + $0x348] sm:$0xff]  ;;  %v8125_v46 = vcombine.low %v231_v35, %v235_v36  ;;  %v8132_v47 = vcombine.high %v238_v41, %v242_v42  ;;  %v246_v49 = vld [vmem:[#allocation5 + $0x380] sm:$0xff]  ;;  %v8131_v53 = vcombine.low %v238_v41, %v242_v42 }
  0x77   :  { %6333 = vmatpush1.bf16.msra.mxu0 %v8075_v61  ;;  %6677 = vmatpush1.bf16.msra.mxu1 %v8077_v62  ;;  %v243_v44 = vld [vmem:[#allocation5 + $0x368] sm:$0xff]  ;;  %v250_v50 = vld [vmem:[#allocation5 + $0x3a0] sm:$0xff] }
  0x78   :  { %6334 = vmatprep.subr.bf16.mxu0 %v8084_v63  ;;  %6678 = vmatprep.subr.bf16.mxu1 %v8086_v0  ;;  %v8134_v48 = vcombine.high %v239_v43, %v243_v44  ;;  %v247_v51 = vld [vmem:[#allocation5 + $0x388] sm:$0xff]  ;;  %v8133_v54 = vcombine.low %v239_v43, %v243_v44  ;;  %v8140_v55 = vcombine.high %v246_v49, %v250_v50  ;;  %v254_v57 = vld [vmem:[#allocation5 + $0x3c0] sm:$0xff] }
  0x79   :  { %v251_v52 = vld [vmem:[#allocation5 + $0x3a8] sm:$0xff]  ;;  %v258_v59 = vld [vmem:[#allocation5 + $0x3e0] sm:$0xff]  ;;  %v8139_v62 = vcombine.low %v246_v49, %v250_v50 }
  0x7a   :  { %v8142_v56 = vcombine.high %v247_v51, %v251_v52  ;;  %v255_v60 = vld [vmem:[#allocation5 + $0x3c8] sm:$0xff]  ;;  %v8141_v63 = vcombine.low %v247_v51, %v251_v52  ;;  %v8148_v0 = vcombine.high %v254_v57, %v258_v59  ;;  %v262_v2 = vld [vmem:[#allocation5 + $0x400] sm:$0xff] }
  0x7b   :  { %6335 = vmatpush1.bf16.msra.mxu0 %v8083_v5  ;;  %6679 = vmatpush1.bf16.msra.mxu1 %v8085_v6  ;;  %v259_v61 = vld [vmem:[#allocation5 + $0x3e8] sm:$0xff]  ;;  %v266_v3 = vld [vmem:[#allocation5 + $0x420] sm:$0xff]  ;;  %v8147_v6 = vcombine.low %v254_v57, %v258_v59 }
  0x7c   :  { %6336 = vmatprep.subr.bf16.mxu0 %v8092_v7  ;;  %6680 = vmatprep.subr.bf16.mxu1 %v8094_v8  ;;  %v8150_v1 = vcombine.high %v255_v60, %v259_v61  ;;  %v263_v4 = vld [vmem:[#allocation5 + $0x408] sm:$0xff]  ;;  %v86_v7 = vld [vmem:[#allocation2] sm:$0xff]  ;;  %v8149_v9 = vcombine.low %v255_v60, %v259_v61  ;;  %v8156_v10 = vcombine.high %v262_v2, %v266_v3 }
  0x7d   :  { %v267_v5 = vld [vmem:[#allocation5 + $0x428] sm:$0xff]  ;;  %v102_v8 = vld [vmem:[#allocation2 + $0x80] sm:$0xff]  ;;  %v8155_v19 = vcombine.low %v262_v2, %v266_v3 }
  0x7e   :  { %v8158_v11 = vcombine.high %v263_v4, %v267_v5  ;;  %v270_v12 = vld [vmem:[#allocation5 + $0x440] sm:$0xff]  ;;  %v8157_v20 = vcombine.low %v263_v4, %v267_v5  ;;  %v279_v26 = vld [vmem:[#allocation5 + $0x488] sm:$0xff] }
  0x7f   :  { %6337 = vmatpush1.bf16.msra.mxu0 %v8091_v13  ;;  %6681 = vmatpush1.bf16.msra.mxu1 %v8093_v14  ;;  %v274_v13 = vld [vmem:[#allocation5 + $0x460] sm:$0xff]  ;;  %v271_v14 = vld [vmem:[#allocation5 + $0x448] sm:$0xff] }
  0x80   :  { %6338 = vmatprep.subr.bf16.mxu0 %v8100_v15  ;;  %6682 = vmatprep.subr.bf16.mxu1 %v8102_v16  ;;  %v9465_v15 = vpack.c.bf16 %v102_v8, %v86_v7  ;;  %v275_v16 = vld [vmem:[#allocation5 + $0x468] sm:$0xff]  ;;  %v8163_v28 = vcombine.low %v270_v12, %v274_v13  ;;  %v290_v33 = vld [vmem:[#allocation5 + $0x4e0] sm:$0xff] }
  0x81   :  { %v283_v27 = vld [vmem:[#allocation5 + $0x4a8] sm:$0xff]  ;;  %v298_v41 = vld [vmem:[#allocation5 + $0x520] sm:$0xff] }
  0x82   :  { %v287_v34 = vld [vmem:[#allocation5 + $0x4c8] sm:$0xff]  ;;  %v306_v49 = vld [vmem:[#allocation5 + $0x560] sm:$0xff] }
  0x83   :  { %6339 = vmatpush1.bf16.msra.mxu0 %v8099_v21  ;;  %6683 = vmatpush1.bf16.msra.mxu1 %v8101_v22  ;;  %v8164_v21 = vcombine.high %v270_v12, %v274_v13  ;;  %v8166_v22 = vcombine.high %v271_v14, %v275_v16  ;;  %v291_v35 = vld [vmem:[#allocation5 + $0x4e8] sm:$0xff]  ;;  %v314_v57 = vld [vmem:[#allocation5 + $0x5a0] sm:$0xff] }
  0x84   :  { %6340 = vmatprep.subr.bf16.mxu0 %v8108_v23  ;;  %6684 = vmatprep.subr.bf16.mxu1 %v8110_v24  ;;  %v278_v23 = vld [vmem:[#allocation5 + $0x480] sm:$0xff]  ;;  %v295_v42 = vld [vmem:[#allocation5 + $0x508] sm:$0xff] }
  0x85   :  { %v282_v24 = vld [vmem:[#allocation5 + $0x4a0] sm:$0xff]  ;;  %v299_v43 = vld [vmem:[#allocation5 + $0x528] sm:$0xff] }
  0x86   :  { %v8171_v36 = vcombine.low %v278_v23, %v282_v24  ;;  %v303_v50 = vld [vmem:[#allocation5 + $0x548] sm:$0xff]  ;;  %v322_v2 = vld [vmem:[#allocation5 + $0x5e0] sm:$0xff] }
  0x87   :  { %6341 = vmatpush1.bf16.msra.mxu0 %v8107_v29  ;;  %6685 = vmatpush1.bf16.msra.mxu1 %v8109_v30  ;;  %v8165_v29 = vcombine.low %v271_v14, %v275_v16  ;;  %v8172_v30 = vcombine.high %v278_v23, %v282_v24  ;;  %v307_v51 = vld [vmem:[#allocation5 + $0x568] sm:$0xff]  ;;  %v334_v18 = vld [vmem:[#allocation5 + $0x640] sm:$0xff] }
  0x88   :  { %6342 = vmatprep.subr.bf16.mxu0 %v8116_v31  ;;  %6686 = vmatprep.subr.bf16.mxu1 %v8118_v32  ;;  %v8174_v31 = vcombine.high %v279_v26, %v283_v27  ;;  %v286_v32 = vld [vmem:[#allocation5 + $0x4c0] sm:$0xff]  ;;  %v311_v59 = vld [vmem:[#allocation5 + $0x588] sm:$0xff] }
  0x89   :  { %v8179_v44 = vcombine.low %v286_v32, %v290_v33  ;;  %v315_v60 = vld [vmem:[#allocation5 + $0x5a8] sm:$0xff] }
  0x8a   :  { %v319_v3 = vld [vmem:[#allocation5 + $0x5c8] sm:$0xff] }
  0x8b   :  { %6343 = vmatpush1.bf16.msra.mxu0 %v8115_v37  ;;  %6687 = vmatpush1.bf16.msra.mxu1 %v8117_v38  ;;  %v8173_v37 = vcombine.low %v279_v26, %v283_v27  ;;  %v8180_v38 = vcombine.high %v286_v32, %v290_v33  ;;  %v323_v4 = vld [vmem:[#allocation5 + $0x5e8] sm:$0xff]  ;;  %v342_v27 = vld [vmem:[#allocation5 + $0x680] sm:$0xff] }
  0x8c   :  { %6344 = vmatprep.subr.bf16.mxu0 %v8124_v39  ;;  %6688 = vmatprep.subr.bf16.mxu1 %v8126_v40  ;;  %v8182_v39 = vcombine.high %v287_v34, %v291_v35  ;;  %v294_v40 = vld [vmem:[#allocation5 + $0x500] sm:$0xff]  ;;  %v8214_v8 = vcombine.high %v319_v3, %v323_v4  ;;  %v331_v12 = vld [vmem:[#allocation5 + $0x628] sm:$0xff]  ;;  %v8213_v14 = vcombine.low %v319_v3, %v323_v4 }
  0x8d   :  { %v8187_v52 = vcombine.low %v294_v40, %v298_v41  ;;  %v382_v4 = vld [vmem:[#allocation5 + $0x7c0] sm:$0xff] }
  0x8f   :  { %6345 = vmatpush1.bf16.msra.mxu0 %v8123_v45  ;;  %6689 = vmatpush1.bf16.msra.mxu1 %v8125_v46  ;;  %v8181_v45 = vcombine.low %v287_v34, %v291_v35  ;;  %v8188_v46 = vcombine.high %v294_v40, %v298_v41  ;;  %v350_v35 = vld [vmem:[#allocation5 + $0x6c0] sm:$0xff] }
  0x90   :  { %6346 = vmatprep.subr.bf16.mxu0 %v8132_v47  ;;  %6690 = vmatprep.subr.bf16.mxu1 %v8134_v48  ;;  %v8190_v47 = vcombine.high %v295_v42, %v299_v43  ;;  %v302_v48 = vld [vmem:[#allocation5 + $0x540] sm:$0xff] }
  0x91   :  { %v8195_v61 = vcombine.low %v302_v48, %v306_v49 }
  0x93   :  { %6347 = vmatpush1.bf16.msra.mxu0 %v8131_v53  ;;  %6691 = vmatpush1.bf16.msra.mxu1 %v8133_v54  ;;  %v8189_v53 = vcombine.low %v295_v42, %v299_v43  ;;  %v8196_v54 = vcombine.high %v302_v48, %v306_v49  ;;  %v358_v43 = vld [vmem:[#allocation5 + $0x700] sm:$0xff] }
  0x94   :  { %6348 = vmatprep.subr.bf16.mxu0 %v8140_v55  ;;  %6692 = vmatprep.subr.bf16.mxu1 %v8142_v56  ;;  %v8198_v55 = vcombine.high %v303_v50, %v307_v51  ;;  %v310_v56 = vld [vmem:[#allocation5 + $0x580] sm:$0xff] }
  0x95   :  { %v8203_v5 = vcombine.low %v310_v56, %v314_v57 }
  0x97   :  { %6349 = vmatpush1.bf16.msra.mxu0 %v8139_v62  ;;  %6693 = vmatpush1.bf16.msra.mxu1 %v8141_v63  ;;  %v8197_v62 = vcombine.low %v303_v50, %v307_v51  ;;  %v8204_v63 = vcombine.high %v310_v56, %v314_v57  ;;  %v366_v51 = vld [vmem:[#allocation5 + $0x740] sm:$0xff] }
  0x98   :  { %6350 = vmatprep.subr.bf16.mxu0 %v8148_v0  ;;  %6694 = vmatprep.subr.bf16.mxu1 %v8150_v1  ;;  %v8206_v0 = vcombine.high %v311_v59, %v315_v60  ;;  %v318_v1 = vld [vmem:[#allocation5 + $0x5c0] sm:$0xff] }
  0x99   :  { %v8212_v7 = vcombine.high %v318_v1, %v322_v2  ;;  %v8211_v13 = vcombine.low %v318_v1, %v322_v2 }
  0x9b   :  { %6351 = vmatpush1.bf16.msra.mxu0 %v8147_v6  ;;  %6695 = vmatpush1.bf16.msra.mxu1 %v8149_v9  ;;  %v8205_v6 = vcombine.low %v311_v59, %v315_v60  ;;  %v326_v9 = vld [vmem:[#allocation5 + $0x600] sm:$0xff] }
  0x9c   :  { %6363 = vmatprep.subr.bf16.mxu0 %v8156_v10  ;;  %6707 = vmatprep.subr.bf16.mxu1 %v8158_v11  ;;  %v330_v10 = vld [vmem:[#allocation5 + $0x620] sm:$0xff]  ;;  %v327_v11 = vld [vmem:[#allocation5 + $0x608] sm:$0xff] }
  0x9d   :  { %v8220_v16 = vcombine.high %v326_v9, %v330_v10  ;;  %v8222_v17 = vcombine.high %v327_v11, %v331_v12  ;;  %v8221_v23 = vcombine.low %v327_v11, %v331_v12  ;;  %v374_v60 = vld [vmem:[#allocation5 + $0x780] sm:$0xff] }
  0x9e   :  { %6353 = vmatmul.mubr.bf16.vlgmr.msra.gmra.mrb[0].mxu0 %v9465_v15  ;;  %6697 = vmatmul.mubr.bf16.vlgmr.msra.gmra.mrb[0].mxu1 %v9465_v15  ;;  %v390_v12 = vld [vmem:[#allocation5 + $0x800] sm:$0xff] }
  0x9f   :  { %6364 = vmatpush1.bf16.msra.mxu0 %v8155_v19  ;;  %6708 = vmatpush1.bf16.msra.mxu1 %v8157_v20  ;;  %v338_v19 = vld [vmem:[#allocation5 + $0x660] sm:$0xff]  ;;  %v335_v20 = vld [vmem:[#allocation5 + $0x648] sm:$0xff] }
  0xa0   :  { %6365 = vmatprep.subr.bf16.mxu0 %v8164_v21  ;;  %6709 = vmatprep.subr.bf16.mxu1 %v8166_v22  ;;  %v339_v21 = vld [vmem:[#allocation5 + $0x668] sm:$0xff]  ;;  %v8219_v22 = vcombine.low %v326_v9, %v330_v10  ;;  %v8228_v24 = vcombine.high %v334_v18, %v338_v19 }
  0xa1   :  { %6395 = vmatprep.mubr.bf16.mxu0 %v9467_v25  ;;  %6739 = vmatprep.mubr.bf16.mxu1 %v9467_v25  ;;  %v8230_v26 = vcombine.high %v335_v20, %v339_v21  ;;  %v8229_v32 = vcombine.low %v335_v20, %v339_v21 }
  0xa3   :  { %6366 = vmatpush1.bf16.msra.mxu0 %v8163_v28  ;;  %6710 = vmatpush1.bf16.msra.mxu1 %v8165_v29  ;;  %v346_v28 = vld [vmem:[#allocation5 + $0x6a0] sm:$0xff]  ;;  %v343_v29 = vld [vmem:[#allocation5 + $0x688] sm:$0xff] }
  0xa4   :  { %6367 = vmatprep.subr.bf16.mxu0 %v8172_v30  ;;  %6711 = vmatprep.subr.bf16.mxu1 %v8174_v31  ;;  %v347_v30 = vld [vmem:[#allocation5 + $0x6a8] sm:$0xff]  ;;  %v8227_v31 = vcombine.low %v334_v18, %v338_v19  ;;  %v8236_v33 = vcombine.high %v342_v27, %v346_v28  ;;  %v88_v18 = vld [vmem:[#allocation2 + $0x10] sm:$0xff] }
  0xa5   :  { %v8238_v34 = vcombine.high %v343_v29, %v347_v30  ;;  %v8237_v40 = vcombine.low %v343_v29, %v347_v30  ;;  %v104_v19 = vld [vmem:[#allocation2 + $0x90] sm:$0xff]  ;;  %v91_v29 = vld [vmem:[#allocation2 + $0x28] sm:$0xff] }
  0xa6   :  { %v107_v30 = vld [vmem:[#allocation2 + $0xa8] sm:$0xff] }
  0xa7   :  { %6368 = vmatpush1.bf16.msra.mxu0 %v8171_v36  ;;  %6712 = vmatpush1.bf16.msra.mxu1 %v8173_v37  ;;  %v354_v36 = vld [vmem:[#allocation5 + $0x6e0] sm:$0xff]  ;;  %v351_v37 = vld [vmem:[#allocation5 + $0x6c8] sm:$0xff] }
  0xa8   :  { %6369 = vmatprep.subr.bf16.mxu0 %v8180_v38  ;;  %6713 = vmatprep.subr.bf16.mxu1 %v8182_v39  ;;  %v355_v38 = vld [vmem:[#allocation5 + $0x6e8] sm:$0xff]  ;;  %v8235_v39 = vcombine.low %v342_v27, %v346_v28  ;;  %v8244_v41 = vcombine.high %v350_v35, %v354_v36  ;;  %v9473_v27 = vpack.c.bf16 %v104_v19, %v88_v18 }
  0xa9   :  { %v8246_v42 = vcombine.high %v351_v37, %v355_v38  ;;  %v8245_v48 = vcombine.low %v351_v37, %v355_v38  ;;  %v403_v28 = vld [vmem:[#allocation5 + $0x868] sm:$0xff]  ;;  %v9475_v37 = vpack.c.bf16 %v107_v30, %v91_v29 }
  0xaa   :  { %v407_v38 = vld [vmem:[#allocation5 + $0x888] sm:$0xff] }
  0xab   :  { %6370 = vmatpush1.bf16.msra.mxu0 %v8179_v44  ;;  %6714 = vmatpush1.bf16.msra.mxu1 %v8181_v45  ;;  %v362_v44 = vld [vmem:[#allocation5 + $0x720] sm:$0xff]  ;;  %v359_v45 = vld [vmem:[#allocation5 + $0x708] sm:$0xff] }
  0xac   :  { %6371 = vmatprep.subr.bf16.mxu0 %v8188_v46  ;;  %6715 = vmatprep.subr.bf16.mxu1 %v8190_v47  ;;  %v363_v46 = vld [vmem:[#allocation5 + $0x728] sm:$0xff]  ;;  %v8243_v47 = vcombine.low %v350_v35, %v354_v36  ;;  %v8252_v49 = vcombine.high %v358_v43, %v362_v44  ;;  %v406_v35 = vld [vmem:[#allocation5 + $0x880] sm:$0xff] }
  0xad   :  { %v8254_v50 = vcombine.high %v359_v45, %v363_v46  ;;  %v8253_v56 = vcombine.low %v359_v45, %v363_v46  ;;  %v410_v36 = vld [vmem:[#allocation5 + $0x8a0] sm:$0xff]  ;;  %v415_v46 = vld [vmem:[#allocation5 + $0x8c8] sm:$0xff] }
  0xae   :  { %v418_v45 = vld [vmem:[#allocation5 + $0x8e0] sm:$0xff] }
  0xaf   :  { %6372 = vmatpush1.bf16.msra.mxu0 %v8187_v52  ;;  %6716 = vmatpush1.bf16.msra.mxu1 %v8189_v53  ;;  %v370_v52 = vld [vmem:[#allocation5 + $0x760] sm:$0xff]  ;;  %v367_v53 = vld [vmem:[#allocation5 + $0x748] sm:$0xff] }
  0xb0   :  { %6373 = vmatprep.subr.bf16.mxu0 %v8196_v54  ;;  %6717 = vmatprep.subr.bf16.mxu1 %v8198_v55  ;;  %v371_v54 = vld [vmem:[#allocation5 + $0x768] sm:$0xff]  ;;  %v8251_v55 = vcombine.low %v358_v43, %v362_v44  ;;  %v8260_v57 = vcombine.high %v366_v51, %v370_v52  ;;  %v414_v44 = vld [vmem:[#allocation5 + $0x8c0] sm:$0xff] }
  0xb1   :  { %v8262_v59 = vcombine.high %v367_v53, %v371_v54  ;;  %v8261_v1 = vcombine.low %v367_v53, %v371_v54  ;;  %v426_v53 = vld [vmem:[#allocation5 + $0x920] sm:$0xff]  ;;  %v423_v54 = vld [vmem:[#allocation5 + $0x908] sm:$0xff] }
  0xb3   :  { %6374 = vmatpush1.bf16.msra.mxu0 %v8195_v61  ;;  %6718 = vmatpush1.bf16.msra.mxu1 %v8197_v62  ;;  %v378_v61 = vld [vmem:[#allocation5 + $0x7a0] sm:$0xff]  ;;  %v375_v62 = vld [vmem:[#allocation5 + $0x788] sm:$0xff] }
  0xb4   :  { %6375 = vmatprep.subr.bf16.mxu0 %v8204_v63  ;;  %6719 = vmatprep.subr.bf16.mxu1 %v8206_v0  ;;  %v379_v63 = vld [vmem:[#allocation5 + $0x7a8] sm:$0xff]  ;;  %v8259_v0 = vcombine.low %v366_v51, %v370_v52  ;;  %v8268_v2 = vcombine.high %v374_v60, %v378_v61  ;;  %v422_v52 = vld [vmem:[#allocation5 + $0x900] sm:$0xff] }
  0xb5   :  { %v8270_v3 = vcombine.high %v375_v62, %v379_v63  ;;  %v8269_v9 = vcombine.low %v375_v62, %v379_v63  ;;  %v434_v62 = vld [vmem:[#allocation5 + $0x960] sm:$0xff]  ;;  %v431_v63 = vld [vmem:[#allocation5 + $0x948] sm:$0xff] }
  0xb7   :  { %6376 = vmatpush1.bf16.msra.mxu0 %v8203_v5  ;;  %6720 = vmatpush1.bf16.msra.mxu1 %v8205_v6  ;;  %v386_v5 = vld [vmem:[#allocation5 + $0x7e0] sm:$0xff]  ;;  %v383_v6 = vld [vmem:[#allocation5 + $0x7c8] sm:$0xff] }
  0xb8   :  { %6377 = vmatprep.subr.bf16.mxu0 %v8212_v7  ;;  %6721 = vmatprep.subr.bf16.mxu1 %v8214_v8  ;;  %v387_v7 = vld [vmem:[#allocation5 + $0x7e8] sm:$0xff]  ;;  %v8267_v8 = vcombine.low %v374_v60, %v378_v61  ;;  %v8276_v10 = vcombine.high %v382_v4, %v386_v5  ;;  %v430_v61 = vld [vmem:[#allocation5 + $0x940] sm:$0xff] }
  0xb9   :  { %v8278_v11 = vcombine.high %v383_v6, %v387_v7  ;;  %v8277_v20 = vcombine.low %v383_v6, %v387_v7  ;;  %v442_v6 = vld [vmem:[#allocation5 + $0x9a0] sm:$0xff]  ;;  %v439_v7 = vld [vmem:[#allocation5 + $0x988] sm:$0xff] }
  0xbb   :  { %6378 = vmatpush1.bf16.msra.mxu0 %v8211_v13  ;;  %6722 = vmatpush1.bf16.msra.mxu1 %v8213_v14  ;;  %v394_v13 = vld [vmem:[#allocation5 + $0x820] sm:$0xff]  ;;  %v391_v14 = vld [vmem:[#allocation5 + $0x808] sm:$0xff] }
  0xbc   :  { %6379 = vmatprep.subr.bf16.mxu0 %v8220_v16  ;;  %6723 = vmatprep.subr.bf16.mxu1 %v8222_v17  ;;  %v395_v16 = vld [vmem:[#allocation5 + $0x828] sm:$0xff]  ;;  %v8275_v17 = vcombine.low %v382_v4, %v386_v5  ;;  %v8284_v21 = vcombine.high %v390_v12, %v394_v13  ;;  %v438_v5 = vld [vmem:[#allocation5 + $0x980] sm:$0xff] }
  0xbd   :  { %v8331_v18 = vcombine.low %v438_v5, %v442_v6 }
  0xbf   :  { %6380 = vmatpush1.bf16.msra.mxu0 %v8219_v22  ;;  %6724 = vmatpush1.bf16.msra.mxu1 %v8221_v23  ;;  %v8286_v22 = vcombine.high %v391_v14, %v395_v16  ;;  %v398_v23 = vld [vmem:[#allocation5 + $0x840] sm:$0xff] }
  0xc0   :  { %6381 = vmatprep.subr.bf16.mxu0 %v8228_v24  ;;  %6725 = vmatprep.subr.bf16.mxu1 %v8230_v26  ;;  %v402_v24 = vld [vmem:[#allocation5 + $0x860] sm:$0xff]  ;;  %v399_v26 = vld [vmem:[#allocation5 + $0x848] sm:$0xff] }
  0xc3   :  { %6382 = vmatpush1.bf16.msra.mxu0 %v8227_v31  ;;  %6726 = vmatpush1.bf16.msra.mxu1 %v8229_v32  ;;  %v8283_v31 = vcombine.low %v390_v12, %v394_v13  ;;  %v8285_v32 = vcombine.low %v391_v14, %v395_v16  ;;  %v446_v13 = vld [vmem:[#allocation5 + $0x9c0] sm:$0xff]  ;;  %v447_v16 = vld [vmem:[#allocation5 + $0x9c8] sm:$0xff] }
  0xc4   :  { %6383 = vmatprep.subr.bf16.mxu0 %v8236_v33  ;;  %6727 = vmatprep.subr.bf16.mxu1 %v8238_v34  ;;  %v8292_v33 = vcombine.high %v398_v23, %v402_v24  ;;  %v8294_v34 = vcombine.high %v399_v26, %v403_v28  ;;  %v450_v14 = vld [vmem:[#allocation5 + $0x9e0] sm:$0xff] }
  0xc7   :  { %6384 = vmatpush1.bf16.msra.mxu0 %v8235_v39  ;;  %6728 = vmatpush1.bf16.msra.mxu1 %v8237_v40  ;;  %v411_v39 = vld [vmem:[#allocation5 + $0x8a8] sm:$0xff]  ;;  %v8291_v40 = vcombine.low %v398_v23, %v402_v24  ;;  %v458_v23 = vld [vmem:[#allocation5 + $0xa20] sm:$0xff] }
  0xc8   :  { %6385 = vmatprep.subr.bf16.mxu0 %v8244_v41  ;;  %6729 = vmatprep.subr.bf16.mxu1 %v8246_v42  ;;  %v8293_v41 = vcombine.low %v399_v26, %v403_v28  ;;  %v8300_v42 = vcombine.high %v406_v35, %v410_v36  ;;  %v8302_v43 = vcombine.high %v407_v38, %v411_v39  ;;  %v455_v24 = vld [vmem:[#allocation5 + $0xa08] sm:$0xff] }
  0xc9   :  { %v459_v26 = vld [vmem:[#allocation5 + $0xa28] sm:$0xff]  ;;  %v8339_v28 = vcombine.low %v446_v13, %v450_v14 }
  0xcb   :  { %6386 = vmatpush1.bf16.msra.mxu0 %v8243_v47  ;;  %6730 = vmatpush1.bf16.msra.mxu1 %v8245_v48  ;;  %v419_v47 = vld [vmem:[#allocation5 + $0x8e8] sm:$0xff]  ;;  %v8299_v48 = vcombine.low %v406_v35, %v410_v36 }
  0xcc   :  { %6387 = vmatprep.subr.bf16.mxu0 %v8252_v49  ;;  %6731 = vmatprep.subr.bf16.mxu1 %v8254_v50  ;;  %v8301_v49 = vcombine.low %v407_v38, %v411_v39  ;;  %v8308_v50 = vcombine.high %v414_v44, %v418_v45  ;;  %v8310_v51 = vcombine.high %v415_v46, %v419_v47  ;;  %v467_v35 = vld [vmem:[#allocation5 + $0xa68] sm:$0xff] }
  0xcd   :  { %v8349_v38 = vcombine.low %v455_v24, %v459_v26 }
  0xcf   :  { %6388 = vmatpush1.bf16.msra.mxu0 %v8251_v55  ;;  %6732 = vmatpush1.bf16.msra.mxu1 %v8253_v56  ;;  %v427_v55 = vld [vmem:[#allocation5 + $0x928] sm:$0xff]  ;;  %v8307_v56 = vcombine.low %v414_v44, %v418_v45 }
  0xd0   :  { %6389 = vmatprep.subr.bf16.mxu0 %v8260_v57  ;;  %6733 = vmatprep.subr.bf16.mxu1 %v8262_v59  ;;  %v8309_v57 = vcombine.low %v415_v46, %v419_v47  ;;  %v8316_v59 = vcombine.high %v422_v52, %v426_v53  ;;  %v8318_v60 = vcombine.high %v423_v54, %v427_v55  ;;  %v475_v44 = vld [vmem:[#allocation5 + $0xaa8] sm:$0xff] }
  0xd3   :  { %6390 = vmatpush1.bf16.msra.mxu0 %v8259_v0  ;;  %6734 = vmatpush1.bf16.msra.mxu1 %v8261_v1  ;;  %v435_v0 = vld [vmem:[#allocation5 + $0x968] sm:$0xff]  ;;  %v8315_v1 = vcombine.low %v422_v52, %v426_v53 }
  0xd4   :  { %6391 = vmatprep.subr.bf16.mxu0 %v8268_v2  ;;  %6735 = vmatprep.subr.bf16.mxu1 %v8270_v3  ;;  %v8317_v2 = vcombine.low %v423_v54, %v427_v55  ;;  %v8324_v3 = vcombine.high %v430_v61, %v434_v62  ;;  %v8326_v4 = vcombine.high %v431_v63, %v435_v0  ;;  %v483_v52 = vld [vmem:[#allocation5 + $0xae8] sm:$0xff] }
  0xd7   :  { %6392 = vmatpush1.bf16.msra.mxu0 %v8267_v8  ;;  %6736 = vmatpush1.bf16.msra.mxu1 %v8269_v9  ;;  %v443_v8 = vld [vmem:[#allocation5 + $0x9a8] sm:$0xff]  ;;  %v8323_v9 = vcombine.low %v430_v61, %v434_v62 }
  0xd8   :  { %6393 = vmatprep.subr.bf16.mxu0 %v8276_v10  ;;  %6737 = vmatprep.subr.bf16.mxu1 %v8278_v11  ;;  %v8325_v10 = vcombine.low %v431_v63, %v435_v0  ;;  %v8332_v11 = vcombine.high %v438_v5, %v442_v6  ;;  %v8334_v12 = vcombine.high %v439_v7, %v443_v8  ;;  %v491_v61 = vld [vmem:[#allocation5 + $0xb28] sm:$0xff] }
  0xd9   :  { %v8333_v19 = vcombine.low %v439_v7, %v443_v8  ;;  %v499_v5 = vld [vmem:[#allocation5 + $0xb68] sm:$0xff] }
  0xdb   :  { %6394 = vmatpush1.bf16.msra.mxu0 %v8275_v17  ;;  %6738 = vmatpush1.bf16.msra.mxu1 %v8277_v20  ;;  %v451_v17 = vld [vmem:[#allocation5 + $0x9e8] sm:$0xff]  ;;  %v8340_v20 = vcombine.high %v446_v13, %v450_v14 }
  0xdc   :  { %6406 = vmatprep.subr.bf16.mxu0 %v8284_v21  ;;  %6750 = vmatprep.subr.bf16.mxu1 %v8286_v22  ;;  %v8342_v21 = vcombine.high %v447_v16, %v451_v17  ;;  %v454_v22 = vld [vmem:[#allocation5 + $0xa00] sm:$0xff]  ;;  %v8341_v29 = vcombine.low %v447_v16, %v451_v17  ;;  %v507_v13 = vld [vmem:[#allocation5 + $0xba8] sm:$0xff] }
  0xdd   :  { %v8348_v30 = vcombine.high %v454_v22, %v458_v23  ;;  %v8347_v36 = vcombine.low %v454_v22, %v458_v23  ;;  %v515_v22 = vld [vmem:[#allocation5 + $0xbe8] sm:$0xff] }
  0xde   :  { %6396 = vmatmul.mubr.bf16.vlgmr.msra.gmra.mrb[0].mxu0 %v9473_v27  ;;  %6740 = vmatmul.mubr.bf16.vlgmr.msra.gmra.mrb[0].mxu1 %v9473_v27 }
  0xdf   :  { %6407 = vmatpush1.bf16.msra.mxu0 %v8283_v31  ;;  %6751 = vmatpush1.bf16.msra.mxu1 %v8285_v32  ;;  %v8350_v31 = vcombine.high %v455_v24, %v459_v26  ;;  %v462_v32 = vld [vmem:[#allocation5 + $0xa40] sm:$0xff] }
  0xe0   :  { %6408 = vmatprep.subr.bf16.mxu0 %v8292_v33  ;;  %6752 = vmatprep.subr.bf16.mxu1 %v8294_v34  ;;  %v466_v33 = vld [vmem:[#allocation5 + $0xa60] sm:$0xff]  ;;  %v463_v34 = vld [vmem:[#allocation5 + $0xa48] sm:$0xff] }
  0xe1   :  { %6438 = vmatprep.mubr.bf16.mxu0 %v9475_v37  ;;  %6782 = vmatprep.mubr.bf16.mxu1 %v9475_v37  ;;  %v8356_v39 = vcombine.high %v462_v32, %v466_v33  ;;  %v8355_v45 = vcombine.low %v462_v32, %v466_v33  ;;  %v8357_v46 = vcombine.low %v463_v34, %v467_v35  ;;  %v523_v32 = vld [vmem:[#allocation5 + $0xc28] sm:$0xff] }
  0xe3   :  { %6409 = vmatpush1.bf16.msra.mxu0 %v8291_v40  ;;  %6753 = vmatpush1.bf16.msra.mxu1 %v8293_v41  ;;  %v8358_v40 = vcombine.high %v463_v34, %v467_v35  ;;  %v470_v41 = vld [vmem:[#allocation5 + $0xa80] sm:$0xff] }
  0xe4   :  { %6410 = vmatprep.subr.bf16.mxu0 %v8300_v42  ;;  %6754 = vmatprep.subr.bf16.mxu1 %v8302_v43  ;;  %v474_v42 = vld [vmem:[#allocation5 + $0xaa0] sm:$0xff]  ;;  %v471_v43 = vld [vmem:[#allocation5 + $0xa88] sm:$0xff] }
  0xe5   :  { %v8364_v47 = vcombine.high %v470_v41, %v474_v42  ;;  %v8363_v53 = vcombine.low %v470_v41, %v474_v42  ;;  %v8365_v54 = vcombine.low %v471_v43, %v475_v44  ;;  %v90_v34 = vld [vmem:[#allocation2 + $0x20] sm:$0xff]  ;;  %v527_v42 = vld [vmem:[#allocation5 + $0xc48] sm:$0xff] }
  0xe6   :  { %v106_v35 = vld [vmem:[#allocation2 + $0xa0] sm:$0xff] }
  0xe7   :  { %6411 = vmatpush1.bf16.msra.mxu0 %v8299_v48  ;;  %6755 = vmatpush1.bf16.msra.mxu1 %v8301_v49  ;;  %v8366_v48 = vcombine.high %v471_v43, %v475_v44  ;;  %v478_v49 = vld [vmem:[#allocation5 + $0xac0] sm:$0xff]  ;;  %v9481_v43 = vpack.c.bf16 %v106_v35, %v90_v34  ;;  %v531_v44 = vld [vmem:[#allocation5 + $0xc68] sm:$0xff] }
  0xe8   :  { %6412 = vmatprep.subr.bf16.mxu0 %v8308_v50  ;;  %6756 = vmatprep.subr.bf16.mxu1 %v8310_v51  ;;  %v482_v50 = vld [vmem:[#allocation5 + $0xae0] sm:$0xff]  ;;  %v479_v51 = vld [vmem:[#allocation5 + $0xac8] sm:$0xff] }
  0xe9   :  { %v8372_v55 = vcombine.high %v478_v49, %v482_v50  ;;  %v8371_v62 = vcombine.low %v478_v49, %v482_v50  ;;  %v8373_v63 = vcombine.low %v479_v51, %v483_v52  ;;  %v530_v41 = vld [vmem:[#allocation5 + $0xc60] sm:$0xff]  ;;  %v8422_v50 = vcombine.high %v527_v42, %v531_v44  ;;  %v575_v34 = vld [vmem:[#allocation5 + $0xdc8] sm:$0xff] }
  0xea   :  { %v579_v35 = vld [vmem:[#allocation5 + $0xde8] sm:$0xff] }
  0xeb   :  { %6413 = vmatpush1.bf16.msra.mxu0 %v8307_v56  ;;  %6757 = vmatpush1.bf16.msra.mxu1 %v8309_v57  ;;  %v8374_v56 = vcombine.high %v479_v51, %v483_v52  ;;  %v486_v57 = vld [vmem:[#allocation5 + $0xb00] sm:$0xff] }
  0xec   :  { %6414 = vmatprep.subr.bf16.mxu0 %v8316_v59  ;;  %6758 = vmatprep.subr.bf16.mxu1 %v8318_v60  ;;  %v490_v59 = vld [vmem:[#allocation5 + $0xb20] sm:$0xff]  ;;  %v487_v60 = vld [vmem:[#allocation5 + $0xb08] sm:$0xff] }
  0xed   :  { %v8380_v0 = vcombine.high %v486_v57, %v490_v59  ;;  %v8379_v6 = vcombine.low %v486_v57, %v490_v59  ;;  %v8381_v7 = vcombine.low %v487_v60, %v491_v61  ;;  %v534_v51 = vld [vmem:[#allocation5 + $0xc80] sm:$0xff]  ;;  %v8421_v57 = vcombine.low %v527_v42, %v531_v44  ;;  %v583_v44 = vld [vmem:[#allocation5 + $0xe08] sm:$0xff] }
  0xee   :  { %v538_v52 = vld [vmem:[#allocation5 + $0xca0] sm:$0xff] }
  0xef   :  { %6415 = vmatpush1.bf16.msra.mxu0 %v8315_v1  ;;  %6759 = vmatpush1.bf16.msra.mxu1 %v8317_v2  ;;  %v8382_v1 = vcombine.high %v487_v60, %v491_v61  ;;  %v494_v2 = vld [vmem:[#allocation5 + $0xb40] sm:$0xff]  ;;  %v8428_v59 = vcombine.high %v534_v51, %v538_v52 }
  0xf0   :  { %6416 = vmatprep.subr.bf16.mxu0 %v8324_v3  ;;  %6760 = vmatprep.subr.bf16.mxu1 %v8326_v4  ;;  %v498_v3 = vld [vmem:[#allocation5 + $0xb60] sm:$0xff]  ;;  %v495_v4 = vld [vmem:[#allocation5 + $0xb48] sm:$0xff] }
  0xf1   :  { %v8388_v8 = vcombine.high %v494_v2, %v498_v3  ;;  %v8387_v14 = vcombine.low %v494_v2, %v498_v3  ;;  %v8389_v16 = vcombine.low %v495_v4, %v499_v5  ;;  %v542_v61 = vld [vmem:[#allocation5 + $0xcc0] sm:$0xff] }
  0xf2   :  { %v586_v42 = vld [vmem:[#allocation5 + $0xe20] sm:$0xff] }
  0xf3   :  { %6417 = vmatpush1.bf16.msra.mxu0 %v8323_v9  ;;  %6761 = vmatpush1.bf16.msra.mxu1 %v8325_v10  ;;  %v8390_v9 = vcombine.high %v495_v4, %v499_v5  ;;  %v502_v10 = vld [vmem:[#allocation5 + $0xb80] sm:$0xff] }
  0xf4   :  { %6418 = vmatprep.subr.bf16.mxu0 %v8332_v11  ;;  %6762 = vmatprep.subr.bf16.mxu1 %v8334_v12  ;;  %v506_v11 = vld [vmem:[#allocation5 + $0xba0] sm:$0xff]  ;;  %v503_v12 = vld [vmem:[#allocation5 + $0xb88] sm:$0xff] }
  0xf5   :  { %v8396_v17 = vcombine.high %v502_v10, %v506_v11  ;;  %v8395_v23 = vcombine.low %v502_v10, %v506_v11  ;;  %v8397_v24 = vcombine.low %v503_v12, %v507_v13  ;;  %v550_v5 = vld [vmem:[#allocation5 + $0xd00] sm:$0xff] }
  0xf7   :  { %6419 = vmatpush1.bf16.msra.mxu0 %v8331_v18  ;;  %6763 = vmatpush1.bf16.msra.mxu1 %v8333_v19  ;;  %v8398_v18 = vcombine.high %v503_v12, %v507_v13  ;;  %v510_v19 = vld [vmem:[#allocation5 + $0xbc0] sm:$0xff] }
  0xf8   :  { %6420 = vmatprep.subr.bf16.mxu0 %v8340_v20  ;;  %6764 = vmatprep.subr.bf16.mxu1 %v8342_v21  ;;  %v514_v20 = vld [vmem:[#allocation5 + $0xbe0] sm:$0xff]  ;;  %v511_v21 = vld [vmem:[#allocation5 + $0xbc8] sm:$0xff] }
  0xf9   :  { %v8404_v26 = vcombine.high %v510_v19, %v514_v20  ;;  %v8403_v33 = vcombine.low %v510_v19, %v514_v20  ;;  %v558_v13 = vld [vmem:[#allocation5 + $0xd40] sm:$0xff] }
  0xfb   :  { %6421 = vmatpush1.bf16.msra.mxu0 %v8339_v28  ;;  %6765 = vmatpush1.bf16.msra.mxu1 %v8341_v29  ;;  %v8406_v28 = vcombine.high %v511_v21, %v515_v22  ;;  %v518_v29 = vld [vmem:[#allocation5 + $0xc00] sm:$0xff] }
  0xfc   :  { %6422 = vmatprep.subr.bf16.mxu0 %v8348_v30  ;;  %6766 = vmatprep.subr.bf16.mxu1 %v8350_v31  ;;  %v522_v30 = vld [vmem:[#allocation5 + $0xc20] sm:$0xff]  ;;  %v519_v31 = vld [vmem:[#allocation5 + $0xc08] sm:$0xff] }
  0xff   :  { %6423 = vmatpush1.bf16.msra.mxu0 %v8347_v36  ;;  %6767 = vmatpush1.bf16.msra.mxu1 %v8349_v38  ;;  %v8405_v36 = vcombine.low %v511_v21, %v515_v22  ;;  %v8412_v38 = vcombine.high %v518_v29, %v522_v30  ;;  %v566_v22 = vld [vmem:[#allocation5 + $0xd80] sm:$0xff] }
 0x100   :  { %6424 = vmatprep.subr.bf16.mxu0 %v8356_v39  ;;  %6768 = vmatprep.subr.bf16.mxu1 %v8358_v40  ;;  %v8414_v39 = vcombine.high %v519_v31, %v523_v32  ;;  %v526_v40 = vld [vmem:[#allocation5 + $0xc40] sm:$0xff] }
 0x101   :  { %v8420_v49 = vcombine.high %v526_v40, %v530_v41 }
 0x103   :  { %6425 = vmatpush1.bf16.msra.mxu0 %v8355_v45  ;;  %6769 = vmatpush1.bf16.msra.mxu1 %v8357_v46  ;;  %v93_v45 = vld [vmem:[#allocation2 + $0x38] sm:$0xff] }
 0x104   :  { %6426 = vmatprep.subr.bf16.mxu0 %v8364_v47  ;;  %6770 = vmatprep.subr.bf16.mxu1 %v8366_v48  ;;  %v109_v46 = vld [vmem:[#allocation2 + $0xb8] sm:$0xff]  ;;  %v8411_v47 = vcombine.low %v518_v29, %v522_v30  ;;  %v8413_v48 = vcombine.low %v519_v31, %v523_v32  ;;  %v574_v32 = vld [vmem:[#allocation5 + $0xdc0] sm:$0xff] }
 0x107   :  { %6427 = vmatpush1.bf16.msra.mxu0 %v8363_v53  ;;  %6771 = vmatpush1.bf16.msra.mxu1 %v8365_v54  ;;  %v9483_v53 = vpack.c.bf16 %v109_v46, %v93_v45  ;;  %v535_v54 = vld [vmem:[#allocation5 + $0xc88] sm:$0xff] }
 0x108   :  { %6428 = vmatprep.subr.bf16.mxu0 %v8372_v55  ;;  %6772 = vmatprep.subr.bf16.mxu1 %v8374_v56  ;;  %v539_v55 = vld [vmem:[#allocation5 + $0xca8] sm:$0xff]  ;;  %v8419_v56 = vcombine.low %v526_v40, %v530_v41  ;;  %v8470_v40 = vcombine.high %v575_v34, %v579_v35  ;;  %v582_v41 = vld [vmem:[#allocation5 + $0xe00] sm:$0xff] }
 0x109   :  { %v8430_v60 = vcombine.high %v535_v54, %v539_v55  ;;  %v8429_v2 = vcombine.low %v535_v54, %v539_v55  ;;  %v587_v45 = vld [vmem:[#allocation5 + $0xe28] sm:$0xff]  ;;  %v8475_v55 = vcombine.low %v582_v41, %v586_v42 }
 0x10a   :  { %v595_v54 = vld [vmem:[#allocation5 + $0xe68] sm:$0xff] }
 0x10b   :  { %6429 = vmatpush1.bf16.msra.mxu0 %v8371_v62  ;;  %6773 = vmatpush1.bf16.msra.mxu1 %v8373_v63  ;;  %v546_v62 = vld [vmem:[#allocation5 + $0xce0] sm:$0xff]  ;;  %v543_v63 = vld [vmem:[#allocation5 + $0xcc8] sm:$0xff] }
 0x10c   :  { %6430 = vmatprep.subr.bf16.mxu0 %v8380_v0  ;;  %6774 = vmatprep.subr.bf16.mxu1 %v8382_v1  ;;  %v547_v0 = vld [vmem:[#allocation5 + $0xce8] sm:$0xff]  ;;  %v8427_v1 = vcombine.low %v534_v51, %v538_v52  ;;  %v8436_v3 = vcombine.high %v542_v61, %v546_v62  ;;  %v594_v51 = vld [vmem:[#allocation5 + $0xe60] sm:$0xff] }
 0x10d   :  { %v8438_v4 = vcombine.high %v543_v63, %v547_v0  ;;  %v8437_v10 = vcombine.low %v543_v63, %v547_v0  ;;  %v591_v52 = vld [vmem:[#allocation5 + $0xe48] sm:$0xff] }
 0x10e   :  { %v603_v63 = vld [vmem:[#allocation5 + $0xea8] sm:$0xff] }
 0x10f   :  { %6431 = vmatpush1.bf16.msra.mxu0 %v8379_v6  ;;  %6775 = vmatpush1.bf16.msra.mxu1 %v8381_v7  ;;  %v554_v6 = vld [vmem:[#allocation5 + $0xd20] sm:$0xff]  ;;  %v551_v7 = vld [vmem:[#allocation5 + $0xd08] sm:$0xff] }
 0x110   :  { %6432 = vmatprep.subr.bf16.mxu0 %v8388_v8  ;;  %6776 = vmatprep.subr.bf16.mxu1 %v8390_v9  ;;  %v555_v8 = vld [vmem:[#allocation5 + $0xd28] sm:$0xff]  ;;  %v8435_v9 = vcombine.low %v542_v61, %v546_v62  ;;  %v8444_v11 = vcombine.high %v550_v5, %v554_v6  ;;  %v602_v61 = vld [vmem:[#allocation5 + $0xea0] sm:$0xff] }
 0x111   :  { %v8446_v12 = vcombine.high %v551_v7, %v555_v8  ;;  %v8445_v19 = vcombine.low %v551_v7, %v555_v8  ;;  %v599_v62 = vld [vmem:[#allocation5 + $0xe88] sm:$0xff] }
 0x112   :  { %v611_v7 = vld [vmem:[#allocation5 + $0xee8] sm:$0xff] }
 0x113   :  { %6433 = vmatpush1.bf16.msra.mxu0 %v8387_v14  ;;  %6777 = vmatpush1.bf16.msra.mxu1 %v8389_v16  ;;  %v562_v14 = vld [vmem:[#allocation5 + $0xd60] sm:$0xff]  ;;  %v559_v16 = vld [vmem:[#allocation5 + $0xd48] sm:$0xff] }
 0x114   :  { %6434 = vmatprep.subr.bf16.mxu0 %v8396_v17  ;;  %6778 = vmatprep.subr.bf16.mxu1 %v8398_v18  ;;  %v563_v17 = vld [vmem:[#allocation5 + $0xd68] sm:$0xff]  ;;  %v8443_v18 = vcombine.low %v550_v5, %v554_v6  ;;  %v8452_v20 = vcombine.high %v558_v13, %v562_v14  ;;  %v610_v5 = vld [vmem:[#allocation5 + $0xee0] sm:$0xff] }
 0x115   :  { %v8454_v21 = vcombine.high %v559_v16, %v563_v17  ;;  %v8453_v29 = vcombine.low %v559_v16, %v563_v17  ;;  %v607_v6 = vld [vmem:[#allocation5 + $0xec8] sm:$0xff] }
 0x116   :  { %v619_v16 = vld [vmem:[#allocation5 + $0xf28] sm:$0xff] }
 0x117   :  { %6435 = vmatpush1.bf16.msra.mxu0 %v8395_v23  ;;  %6779 = vmatpush1.bf16.msra.mxu1 %v8397_v24  ;;  %v570_v23 = vld [vmem:[#allocation5 + $0xda0] sm:$0xff]  ;;  %v567_v24 = vld [vmem:[#allocation5 + $0xd88] sm:$0xff] }
 0x118   :  { %6436 = vmatprep.subr.bf16.mxu0 %v8404_v26  ;;  %6780 = vmatprep.subr.bf16.mxu1 %v8406_v28  ;;  %v571_v26 = vld [vmem:[#allocation5 + $0xda8] sm:$0xff]  ;;  %v8451_v28 = vcombine.low %v558_v13, %v562_v14  ;;  %v8460_v30 = vcombine.high %v566_v22, %v570_v23  ;;  %v618_v13 = vld [vmem:[#allocation5 + $0xf20] sm:$0xff] }
 0x119   :  { %v8462_v31 = vcombine.high %v567_v24, %v571_v26  ;;  %v615_v14 = vld [vmem:[#allocation5 + $0xf08] sm:$0xff] }
 0x11b   :  { %6437 = vmatpush1.bf16.msra.mxu0 %v8403_v33  ;;  %6781 = vmatpush1.bf16.msra.mxu1 %v8405_v36  ;;  %v578_v33 = vld [vmem:[#allocation5 + $0xde0] sm:$0xff]  ;;  %v8459_v36 = vcombine.low %v566_v22, %v570_v23  ;;  %v623_v23 = vld [vmem:[#allocation5 + $0xf48] sm:$0xff] }
 0x11c   :  { %6449 = vmatprep.subr.bf16.mxu0 %v8412_v38  ;;  %6793 = vmatprep.subr.bf16.mxu1 %v8414_v39  ;;  %v8461_v38 = vcombine.low %v567_v24, %v571_v26  ;;  %v8468_v39 = vcombine.high %v574_v32, %v578_v33  ;;  %v8467_v46 = vcombine.low %v574_v32, %v578_v33  ;;  %v626_v22 = vld [vmem:[#allocation5 + $0xf60] sm:$0xff]  ;;  %v627_v24 = vld [vmem:[#allocation5 + $0xf68] sm:$0xff] }
 0x11d   :  { %v634_v32 = vld [vmem:[#allocation5 + $0xfa0] sm:$0xff]  ;;  %v631_v33 = vld [vmem:[#allocation5 + $0xf88] sm:$0xff] }
 0x11e   :  { %6439 = vmatmul.mubr.bf16.vlgmr.msra.gmra.mrb[0].mxu0 %v9481_v43  ;;  %6783 = vmatmul.mubr.bf16.vlgmr.msra.gmra.mrb[0].mxu1 %v9481_v43 }
 0x11f   :  { %6450 = vmatpush1.bf16.msra.mxu0 %v8411_v47  ;;  %6794 = vmatpush1.bf16.msra.mxu1 %v8413_v48  ;;  %v8469_v47 = vcombine.low %v575_v34, %v579_v35  ;;  %v8476_v48 = vcombine.high %v582_v41, %v586_v42  ;;  %v635_v34 = vld [vmem:[#allocation5 + $0xfa8] sm:$0xff]  ;;  %v642_v41 = vld [vmem:[#allocation5 + $0xfe0] sm:$0xff] }
 0x120   :  { %6451 = vmatprep.subr.bf16.mxu0 %v8420_v49  ;;  %6795 = vmatprep.subr.bf16.mxu1 %v8422_v50  ;;  %v8478_v49 = vcombine.high %v583_v44, %v587_v45  ;;  %v590_v50 = vld [vmem:[#allocation5 + $0xe40] sm:$0xff]  ;;  %v639_v42 = vld [vmem:[#allocation5 + $0xfc8] sm:$0xff] }
 0x121   :  { %6481 = vmatprep.mubr.bf16.mxu0 %v9483_v53  ;;  %6825 = vmatprep.mubr.bf16.mxu1 %v9483_v53  ;;  %v8483_v0 = vcombine.low %v590_v50, %v594_v51 }
 0x123   :  { %6452 = vmatpush1.bf16.msra.mxu0 %v8419_v56  ;;  %6796 = vmatpush1.bf16.msra.mxu1 %v8421_v57  ;;  %v8477_v56 = vcombine.low %v583_v44, %v587_v45  ;;  %v8484_v57 = vcombine.high %v590_v50, %v594_v51  ;;  %v643_v44 = vld [vmem:[#allocation5 + $0xfe8] sm:$0xff]  ;;  %v650_v50 = vld [vmem:[#allocation5 + $0x1020] sm:$0xff] }
 0x124   :  { %6453 = vmatprep.subr.bf16.mxu0 %v8428_v59  ;;  %6797 = vmatprep.subr.bf16.mxu1 %v8430_v60  ;;  %v8486_v59 = vcombine.high %v591_v52, %v595_v54  ;;  %v598_v60 = vld [vmem:[#allocation5 + $0xe80] sm:$0xff]  ;;  %v647_v51 = vld [vmem:[#allocation5 + $0x1008] sm:$0xff] }
 0x125   :  { %v8491_v8 = vcombine.low %v598_v60, %v602_v61 }
 0x127   :  { %6454 = vmatpush1.bf16.msra.mxu0 %v8427_v1  ;;  %6798 = vmatpush1.bf16.msra.mxu1 %v8429_v2  ;;  %v8485_v1 = vcombine.low %v591_v52, %v595_v54  ;;  %v8492_v2 = vcombine.high %v598_v60, %v602_v61  ;;  %v651_v52 = vld [vmem:[#allocation5 + $0x1028] sm:$0xff]  ;;  %v654_v61 = vld [vmem:[#allocation5 + $0x1040] sm:$0xff] }
 0x128   :  { %6455 = vmatprep.subr.bf16.mxu0 %v8436_v3  ;;  %6799 = vmatprep.subr.bf16.mxu1 %v8438_v4  ;;  %v8494_v3 = vcombine.high %v599_v62, %v603_v63  ;;  %v606_v4 = vld [vmem:[#allocation5 + $0xec0] sm:$0xff]  ;;  %v8542_v60 = vcombine.high %v647_v51, %v651_v52 }
 0x129   :  { %v8499_v17 = vcombine.low %v606_v4, %v610_v5 }
 0x12b   :  { %6456 = vmatpush1.bf16.msra.mxu0 %v8435_v9  ;;  %6800 = vmatpush1.bf16.msra.mxu1 %v8437_v10  ;;  %v8493_v9 = vcombine.low %v599_v62, %v603_v63  ;;  %v8500_v10 = vcombine.high %v606_v4, %v610_v5  ;;  %v658_v62 = vld [vmem:[#allocation5 + $0x1060] sm:$0xff]  ;;  %v655_v63 = vld [vmem:[#allocation5 + $0x1048] sm:$0xff]  ;;  %v8541_v5 = vcombine.low %v647_v51, %v651_v52 }
 0x12c   :  { %6457 = vmatprep.subr.bf16.mxu0 %v8444_v11  ;;  %6801 = vmatprep.subr.bf16.mxu1 %v8446_v12  ;;  %v8502_v11 = vcombine.high %v607_v6, %v611_v7  ;;  %v614_v12 = vld [vmem:[#allocation5 + $0xf00] sm:$0xff] }
 0x12d   :  { %v8507_v26 = vcombine.low %v614_v12, %v618_v13 }
 0x12f   :  { %6458 = vmatpush1.bf16.msra.mxu0 %v8443_v18  ;;  %6802 = vmatpush1.bf16.msra.mxu1 %v8445_v19  ;;  %v8501_v18 = vcombine.low %v607_v6, %v611_v7  ;;  %v8508_v19 = vcombine.high %v614_v12, %v618_v13  ;;  %v8548_v6 = vcombine.high %v654_v61, %v658_v62  ;;  %v667_v12 = vld [vmem:[#allocation5 + $0x10a8] sm:$0xff] }
 0x130   :  { %6459 = vmatprep.subr.bf16.mxu0 %v8452_v20  ;;  %6803 = vmatprep.subr.bf16.mxu1 %v8454_v21  ;;  %v8510_v20 = vcombine.high %v615_v14, %v619_v16  ;;  %v622_v21 = vld [vmem:[#allocation5 + $0xf40] sm:$0xff]  ;;  %v8547_v13 = vcombine.low %v654_v61, %v658_v62 }
 0x131   :  { %v8515_v35 = vcombine.low %v622_v21, %v626_v22 }
 0x133   :  { %6460 = vmatpush1.bf16.msra.mxu0 %v8451_v28  ;;  %6804 = vmatpush1.bf16.msra.mxu1 %v8453_v29  ;;  %v8509_v28 = vcombine.low %v615_v14, %v619_v16  ;;  %v8516_v29 = vcombine.high %v622_v21, %v626_v22  ;;  %v675_v21 = vld [vmem:[#allocation5 + $0x10e8] sm:$0xff] }
 0x134   :  { %6461 = vmatprep.subr.bf16.mxu0 %v8460_v30  ;;  %6805 = vmatprep.subr.bf16.mxu1 %v8462_v31  ;;  %v8518_v30 = vcombine.high %v623_v23, %v627_v24  ;;  %v630_v31 = vld [vmem:[#allocation5 + $0xf80] sm:$0xff] }
 0x135   :  { %v8523_v45 = vcombine.low %v630_v31, %v634_v32 }
 0x137   :  { %6462 = vmatpush1.bf16.msra.mxu0 %v8459_v36  ;;  %6806 = vmatpush1.bf16.msra.mxu1 %v8461_v38  ;;  %v8517_v36 = vcombine.low %v623_v23, %v627_v24  ;;  %v8524_v38 = vcombine.high %v630_v31, %v634_v32  ;;  %v683_v31 = vld [vmem:[#allocation5 + $0x1128] sm:$0xff] }
 0x138   :  { %6463 = vmatprep.subr.bf16.mxu0 %v8468_v39  ;;  %6807 = vmatprep.subr.bf16.mxu1 %v8470_v40  ;;  %v8526_v39 = vcombine.high %v631_v33, %v635_v34  ;;  %v638_v40 = vld [vmem:[#allocation5 + $0xfc0] sm:$0xff] }
 0x139   :  { %v8531_v54 = vcombine.low %v638_v40, %v642_v41 }
 0x13b   :  { %6464 = vmatpush1.bf16.msra.mxu0 %v8467_v46  ;;  %6808 = vmatpush1.bf16.msra.mxu1 %v8469_v47  ;;  %v8525_v46 = vcombine.low %v631_v33, %v635_v34  ;;  %v8532_v47 = vcombine.high %v638_v40, %v642_v41  ;;  %v691_v40 = vld [vmem:[#allocation5 + $0x1168] sm:$0xff] }
 0x13c   :  { %6465 = vmatprep.subr.bf16.mxu0 %v8476_v48  ;;  %6809 = vmatprep.subr.bf16.mxu1 %v8478_v49  ;;  %v8534_v48 = vcombine.high %v639_v42, %v643_v44  ;;  %v646_v49 = vld [vmem:[#allocation5 + $0x1000] sm:$0xff] }
 0x13d   :  { %v8539_v4 = vcombine.low %v646_v49, %v650_v50 }
 0x13f   :  { %6466 = vmatpush1.bf16.msra.mxu0 %v8475_v55  ;;  %6810 = vmatpush1.bf16.msra.mxu1 %v8477_v56  ;;  %v92_v55 = vld [vmem:[#allocation2 + $0x30] sm:$0xff] }
 0x140   :  { %6467 = vmatprep.subr.bf16.mxu0 %v8484_v57  ;;  %6811 = vmatprep.subr.bf16.mxu1 %v8486_v59  ;;  %v108_v56 = vld [vmem:[#allocation2 + $0xb0] sm:$0xff]  ;;  %v8533_v57 = vcombine.low %v639_v42, %v643_v44  ;;  %v8540_v59 = vcombine.high %v646_v49, %v650_v50  ;;  %v699_v49 = vld [vmem:[#allocation5 + $0x11a8] sm:$0xff] }
 0x143   :  { %6468 = vmatpush1.bf16.msra.mxu0 %v8483_v0  ;;  %6812 = vmatpush1.bf16.msra.mxu1 %v8485_v1  ;;  %v9489_v0 = vpack.c.bf16 %v108_v56, %v92_v55  ;;  %v659_v1 = vld [vmem:[#allocation5 + $0x1068] sm:$0xff]  ;;  %v702_v55 = vld [vmem:[#allocation5 + $0x11c0] sm:$0xff] }
 0x144   :  { %6469 = vmatprep.subr.bf16.mxu0 %v8492_v2  ;;  %6813 = vmatprep.subr.bf16.mxu1 %v8494_v3  ;;  %v95_v2 = vld [vmem:[#allocation2 + $0x48] sm:$0xff]  ;;  %v8550_v7 = vcombine.high %v655_v63, %v659_v1  ;;  %v8549_v14 = vcombine.low %v655_v63, %v659_v1  ;;  %v706_v56 = vld [vmem:[#allocation5 + $0x11e0] sm:$0xff] }
 0x145   :  { %v111_v3 = vld [vmem:[#allocation2 + $0xc8] sm:$0xff]  ;;  %v8596_v62 = vcombine.high %v702_v55, %v706_v56  ;;  %v710_v1 = vld [vmem:[#allocation5 + $0x1200] sm:$0xff] }
 0x147   :  { %6470 = vmatpush1.bf16.msra.mxu0 %v8491_v8  ;;  %6814 = vmatpush1.bf16.msra.mxu1 %v8493_v9  ;;  %v662_v8 = vld [vmem:[#allocation5 + $0x1080] sm:$0xff] }
 0x148   :  { %6471 = vmatprep.subr.bf16.mxu0 %v8500_v10  ;;  %6815 = vmatprep.subr.bf16.mxu1 %v8502_v11  ;;  %v666_v9 = vld [vmem:[#allocation5 + $0x10a0] sm:$0xff]  ;;  %v9491_v10 = vpack.c.bf16 %v111_v3, %v95_v2  ;;  %v663_v11 = vld [vmem:[#allocation5 + $0x1088] sm:$0xff] }
 0x149   :  { %v8556_v16 = vcombine.high %v662_v8, %v666_v9  ;;  %v8555_v22 = vcombine.low %v662_v8, %v666_v9  ;;  %v8557_v23 = vcombine.low %v663_v11, %v667_v12  ;;  %v714_v2 = vld [vmem:[#allocation5 + $0x1220] sm:$0xff]  ;;  %v711_v3 = vld [vmem:[#allocation5 + $0x1208] sm:$0xff] }
 0x14a   :  { %v718_v9 = vld [vmem:[#allocation5 + $0x1240] sm:$0xff] }
 0x14b   :  { %6472 = vmatpush1.bf16.msra.mxu0 %v8499_v17  ;;  %6816 = vmatpush1.bf16.msra.mxu1 %v8501_v18  ;;  %v8558_v17 = vcombine.high %v663_v11, %v667_v12  ;;  %v670_v18 = vld [vmem:[#allocation5 + $0x10c0] sm:$0xff]  ;;  %v719_v12 = vld [vmem:[#allocation5 + $0x1248] sm:$0xff] }
 0x14c   :  { %6473 = vmatprep.subr.bf16.mxu0 %v8508_v19  ;;  %6817 = vmatprep.subr.bf16.mxu1 %v8510_v20  ;;  %v674_v19 = vld [vmem:[#allocation5 + $0x10e0] sm:$0xff]  ;;  %v671_v20 = vld [vmem:[#allocation5 + $0x10c8] sm:$0xff] }
 0x14d   :  { %v8564_v24 = vcombine.high %v670_v18, %v674_v19  ;;  %v8563_v32 = vcombine.low %v670_v18, %v674_v19  ;;  %v8565_v33 = vcombine.low %v671_v20, %v675_v21  ;;  %v722_v11 = vld [vmem:[#allocation5 + $0x1260] sm:$0xff] }
 0x14e   :  { %v726_v19 = vld [vmem:[#allocation5 + $0x1280] sm:$0xff] }
 0x14f   :  { %6474 = vmatpush1.bf16.msra.mxu0 %v8507_v26  ;;  %6818 = vmatpush1.bf16.msra.mxu1 %v8509_v28  ;;  %v8566_v26 = vcombine.high %v671_v20, %v675_v21  ;;  %v678_v28 = vld [vmem:[#allocation5 + $0x1100] sm:$0xff]  ;;  %v727_v21 = vld [vmem:[#allocation5 + $0x1288] sm:$0xff] }
 0x150   :  { %6475 = vmatprep.subr.bf16.mxu0 %v8516_v29  ;;  %6819 = vmatprep.subr.bf16.mxu1 %v8518_v30  ;;  %v682_v29 = vld [vmem:[#allocation5 + $0x1120] sm:$0xff]  ;;  %v679_v30 = vld [vmem:[#allocation5 + $0x1108] sm:$0xff] }
 0x151   :  { %v8572_v34 = vcombine.high %v678_v28, %v682_v29  ;;  %v8571_v41 = vcombine.low %v678_v28, %v682_v29  ;;  %v8573_v42 = vcombine.low %v679_v30, %v683_v31  ;;  %v730_v20 = vld [vmem:[#allocation5 + $0x12a0] sm:$0xff] }
 0x152   :  { %v734_v29 = vld [vmem:[#allocation5 + $0x12c0] sm:$0xff] }
 0x153   :  { %6476 = vmatpush1.bf16.msra.mxu0 %v8515_v35  ;;  %6820 = vmatpush1.bf16.msra.mxu1 %v8517_v36  ;;  %v8574_v35 = vcombine.high %v679_v30, %v683_v31  ;;  %v686_v36 = vld [vmem:[#allocation5 + $0x1140] sm:$0xff]  ;;  %v735_v31 = vld [vmem:[#allocation5 + $0x12c8] sm:$0xff] }
 0x154   :  { %6477 = vmatprep.subr.bf16.mxu0 %v8524_v38  ;;  %6821 = vmatprep.subr.bf16.mxu1 %v8526_v39  ;;  %v690_v38 = vld [vmem:[#allocation5 + $0x1160] sm:$0xff]  ;;  %v687_v39 = vld [vmem:[#allocation5 + $0x1148] sm:$0xff] }
 0x155   :  { %v8580_v44 = vcombine.high %v686_v36, %v690_v38  ;;  %v8579_v50 = vcombine.low %v686_v36, %v690_v38  ;;  %v8581_v51 = vcombine.low %v687_v39, %v691_v40  ;;  %v738_v30 = vld [vmem:[#allocation5 + $0x12e0] sm:$0xff] }
 0x156   :  { %v742_v38 = vld [vmem:[#allocation5 + $0x1300] sm:$0xff] }
 0x157   :  { %6478 = vmatpush1.bf16.msra.mxu0 %v8523_v45  ;;  %6822 = vmatpush1.bf16.msra.mxu1 %v8525_v46  ;;  %v8582_v45 = vcombine.high %v687_v39, %v691_v40  ;;  %v694_v46 = vld [vmem:[#allocation5 + $0x1180] sm:$0xff]  ;;  %v743_v40 = vld [vmem:[#allocation5 + $0x1308] sm:$0xff] }
 0x158   :  { %6479 = vmatprep.subr.bf16.mxu0 %v8532_v47  ;;  %6823 = vmatprep.subr.bf16.mxu1 %v8534_v48  ;;  %v698_v47 = vld [vmem:[#allocation5 + $0x11a0] sm:$0xff]  ;;  %v695_v48 = vld [vmem:[#allocation5 + $0x1188] sm:$0xff] }
 0x159   :  { %v8588_v52 = vcombine.high %v694_v46, %v698_v47  ;;  %v8589_v61 = vcombine.low %v695_v48, %v699_v49  ;;  %v746_v39 = vld [vmem:[#allocation5 + $0x1320] sm:$0xff] }
 0x15b   :  { %6480 = vmatpush1.bf16.msra.mxu0 %v8531_v54  ;;  %6824 = vmatpush1.bf16.msra.mxu1 %v8533_v57  ;;  %v8590_v54 = vcombine.high %v695_v48, %v699_v49  ;;  %v703_v57 = vld [vmem:[#allocation5 + $0x11c8] sm:$0xff]  ;;  %v754_v48 = vld [vmem:[#allocation5 + $0x1360] sm:$0xff] }
 0x15c   :  { %6492 = vmatprep.subr.bf16.mxu0 %v8540_v59  ;;  %6836 = vmatprep.subr.bf16.mxu1 %v8542_v60  ;;  %v707_v59 = vld [vmem:[#allocation5 + $0x11e8] sm:$0xff]  ;;  %v8587_v60 = vcombine.low %v694_v46, %v698_v47  ;;  %v750_v47 = vld [vmem:[#allocation5 + $0x1340] sm:$0xff] }
 0x15d   :  { %v8598_v63 = vcombine.high %v703_v57, %v707_v59  ;;  %v751_v49 = vld [vmem:[#allocation5 + $0x1348] sm:$0xff] }
 0x15e   :  { %6482 = vmatmul.mubr.bf16.vlgmr.msra.gmra.mrb[0].mxu0 %v9489_v0  ;;  %6826 = vmatmul.mubr.bf16.vlgmr.msra.gmra.mrb[0].mxu1 %v9489_v0 }
 0x15f   :  { %6493 = vmatpush1.bf16.msra.mxu0 %v8539_v4  ;;  %6837 = vmatpush1.bf16.msra.mxu1 %v8541_v5  ;;  %v715_v4 = vld [vmem:[#allocation5 + $0x1228] sm:$0xff]  ;;  %v8595_v5 = vcombine.low %v702_v55, %v706_v56  ;;  %v758_v56 = vld [vmem:[#allocation5 + $0x1380] sm:$0xff] }
 0x160   :  { %6494 = vmatprep.subr.bf16.mxu0 %v8548_v6  ;;  %6838 = vmatprep.subr.bf16.mxu1 %v8550_v7  ;;  %v8597_v6 = vcombine.low %v703_v57, %v707_v59  ;;  %v8604_v7 = vcombine.high %v710_v1, %v714_v2  ;;  %v8606_v8 = vcombine.high %v711_v3, %v715_v4  ;;  %v762_v57 = vld [vmem:[#allocation5 + $0x13a0] sm:$0xff]  ;;  %v759_v59 = vld [vmem:[#allocation5 + $0x1388] sm:$0xff] }
 0x161   :  { %6524 = vmatprep.mubr.bf16.mxu0 %v9491_v10  ;;  %6868 = vmatprep.mubr.bf16.mxu1 %v9491_v10 }
 0x163   :  { %6495 = vmatpush1.bf16.msra.mxu0 %v8547_v13  ;;  %6839 = vmatpush1.bf16.msra.mxu1 %v8549_v14  ;;  %v723_v13 = vld [vmem:[#allocation5 + $0x1268] sm:$0xff]  ;;  %v8603_v14 = vcombine.low %v710_v1, %v714_v2  ;;  %v766_v2 = vld [vmem:[#allocation5 + $0x13c0] sm:$0xff] }
 0x164   :  { %6496 = vmatprep.subr.bf16.mxu0 %v8556_v16  ;;  %6840 = vmatprep.subr.bf16.mxu1 %v8558_v17  ;;  %v8605_v16 = vcombine.low %v711_v3, %v715_v4  ;;  %v8612_v17 = vcombine.high %v718_v9, %v722_v11  ;;  %v8614_v18 = vcombine.high %v719_v12, %v723_v13  ;;  %v770_v3 = vld [vmem:[#allocation5 + $0x13e0] sm:$0xff]  ;;  %v767_v4 = vld [vmem:[#allocation5 + $0x13c8] sm:$0xff] }
 0x167   :  { %6497 = vmatpush1.bf16.msra.mxu0 %v8555_v22  ;;  %6841 = vmatpush1.bf16.msra.mxu1 %v8557_v23  ;;  %v731_v22 = vld [vmem:[#allocation5 + $0x12a8] sm:$0xff]  ;;  %v8611_v23 = vcombine.low %v718_v9, %v722_v11  ;;  %v774_v11 = vld [vmem:[#allocation5 + $0x1400] sm:$0xff] }
 0x168   :  { %6498 = vmatprep.subr.bf16.mxu0 %v8564_v24  ;;  %6842 = vmatprep.subr.bf16.mxu1 %v8566_v26  ;;  %v8613_v24 = vcombine.low %v719_v12, %v723_v13  ;;  %v8620_v26 = vcombine.high %v726_v19, %v730_v20  ;;  %v8622_v28 = vcombine.high %v727_v21, %v731_v22  ;;  %v778_v12 = vld [vmem:[#allocation5 + $0x1420] sm:$0xff]  ;;  %v775_v13 = vld [vmem:[#allocation5 + $0x1408] sm:$0xff] }
 0x16b   :  { %6499 = vmatpush1.bf16.msra.mxu0 %v8563_v32  ;;  %6843 = vmatpush1.bf16.msra.mxu1 %v8565_v33  ;;  %v739_v32 = vld [vmem:[#allocation5 + $0x12e8] sm:$0xff]  ;;  %v8619_v33 = vcombine.low %v726_v19, %v730_v20  ;;  %v8668_v20 = vcombine.high %v774_v11, %v778_v12 }
 0x16c   :  { %6500 = vmatprep.subr.bf16.mxu0 %v8572_v34  ;;  %6844 = vmatprep.subr.bf16.mxu1 %v8574_v35  ;;  %v8621_v34 = vcombine.low %v727_v21, %v731_v22  ;;  %v8628_v35 = vcombine.high %v734_v29, %v738_v30  ;;  %v8630_v36 = vcombine.high %v735_v31, %v739_v32  ;;  %v782_v22 = vld [vmem:[#allocation5 + $0x1440] sm:$0xff] }
 0x16f   :  { %6501 = vmatpush1.bf16.msra.mxu0 %v8571_v41  ;;  %6845 = vmatpush1.bf16.msra.mxu1 %v8573_v42  ;;  %v747_v41 = vld [vmem:[#allocation5 + $0x1328] sm:$0xff]  ;;  %v8627_v42 = vcombine.low %v734_v29, %v738_v30  ;;  %v97_v29 = vld [vmem:[#allocation2 + $0x58] sm:$0xff] }
 0x170   :  { %6502 = vmatprep.subr.bf16.mxu0 %v8580_v44  ;;  %6846 = vmatprep.subr.bf16.mxu1 %v8582_v45  ;;  %v8629_v44 = vcombine.low %v735_v31, %v739_v32  ;;  %v8636_v45 = vcombine.high %v742_v38, %v746_v39  ;;  %v8638_v46 = vcombine.high %v743_v40, %v747_v41  ;;  %v113_v30 = vld [vmem:[#allocation2 + $0xd8] sm:$0xff] }
 0x171   :  { %v8667_v31 = vcombine.low %v774_v11, %v778_v12  ;;  %v826_v11 = vld [vmem:[#allocation5 + $0x15a0] sm:$0xff]  ;;  %v823_v12 = vld [vmem:[#allocation5 + $0x1588] sm:$0xff] }
 0x173   :  { %6503 = vmatpush1.bf16.msra.mxu0 %v8579_v50  ;;  %6847 = vmatpush1.bf16.msra.mxu1 %v8581_v51  ;;  %v755_v50 = vld [vmem:[#allocation5 + $0x1368] sm:$0xff]  ;;  %v8635_v51 = vcombine.low %v742_v38, %v746_v39  ;;  %v9499_v38 = vpack.c.bf16 %v113_v30, %v97_v29  ;;  %v838_v30 = vld [vmem:[#allocation5 + $0x1600] sm:$0xff] }
 0x174   :  { %6504 = vmatprep.subr.bf16.mxu0 %v8588_v52  ;;  %6848 = vmatprep.subr.bf16.mxu1 %v8590_v54  ;;  %v8637_v52 = vcombine.low %v743_v40, %v747_v41  ;;  %v8644_v54 = vcombine.high %v750_v47, %v754_v48  ;;  %v8646_v55 = vcombine.high %v751_v49, %v755_v50  ;;  %v791_v39 = vld [vmem:[#allocation5 + $0x1488] sm:$0xff] }
 0x175   :  { %v795_v40 = vld [vmem:[#allocation5 + $0x14a8] sm:$0xff] }
 0x177   :  { %6505 = vmatpush1.bf16.msra.mxu0 %v8587_v60  ;;  %6849 = vmatpush1.bf16.msra.mxu1 %v8589_v61  ;;  %v763_v60 = vld [vmem:[#allocation5 + $0x13a8] sm:$0xff]  ;;  %v8643_v61 = vcombine.low %v750_v47, %v754_v48  ;;  %v802_v47 = vld [vmem:[#allocation5 + $0x14e0] sm:$0xff] }
 0x178   :  { %6506 = vmatprep.subr.bf16.mxu0 %v8596_v62  ;;  %6850 = vmatprep.subr.bf16.mxu1 %v8598_v63  ;;  %v8645_v62 = vcombine.low %v751_v49, %v755_v50  ;;  %v8652_v63 = vcombine.high %v758_v56, %v762_v57  ;;  %v8654_v1 = vcombine.high %v759_v59, %v763_v60  ;;  %v799_v48 = vld [vmem:[#allocation5 + $0x14c8] sm:$0xff] }
 0x179   :  { %v803_v49 = vld [vmem:[#allocation5 + $0x14e8] sm:$0xff] }
 0x17b   :  { %6507 = vmatpush1.bf16.msra.mxu0 %v8595_v5  ;;  %6851 = vmatpush1.bf16.msra.mxu1 %v8597_v6  ;;  %v771_v5 = vld [vmem:[#allocation5 + $0x13e8] sm:$0xff]  ;;  %v8651_v6 = vcombine.low %v758_v56, %v762_v57  ;;  %v810_v56 = vld [vmem:[#allocation5 + $0x1520] sm:$0xff] }
 0x17c   :  { %6508 = vmatprep.subr.bf16.mxu0 %v8604_v7  ;;  %6852 = vmatprep.subr.bf16.mxu1 %v8606_v8  ;;  %v8653_v7 = vcombine.low %v759_v59, %v763_v60  ;;  %v8660_v8 = vcombine.high %v766_v2, %v770_v3  ;;  %v8662_v9 = vcombine.high %v767_v4, %v771_v5  ;;  %v807_v57 = vld [vmem:[#allocation5 + $0x1508] sm:$0xff] }
 0x17d   :  { %v8661_v19 = vcombine.low %v767_v4, %v771_v5  ;;  %v811_v59 = vld [vmem:[#allocation5 + $0x1528] sm:$0xff] }
 0x17e   :  { %v819_v4 = vld [vmem:[#allocation5 + $0x1568] sm:$0xff] }
 0x17f   :  { %6509 = vmatpush1.bf16.msra.mxu0 %v8603_v14  ;;  %6853 = vmatpush1.bf16.msra.mxu1 %v8605_v16  ;;  %v779_v14 = vld [vmem:[#allocation5 + $0x1428] sm:$0xff]  ;;  %v8659_v16 = vcombine.low %v766_v2, %v770_v3  ;;  %v818_v2 = vld [vmem:[#allocation5 + $0x1560] sm:$0xff] }
 0x180   :  { %6510 = vmatprep.subr.bf16.mxu0 %v8612_v17  ;;  %6854 = vmatprep.subr.bf16.mxu1 %v8614_v18  ;;  %v94_v17 = vld [vmem:[#allocation2 + $0x40] sm:$0xff]  ;;  %v8670_v21 = vcombine.high %v775_v13, %v779_v14  ;;  %v8669_v32 = vcombine.low %v775_v13, %v779_v14  ;;  %v815_v3 = vld [vmem:[#allocation5 + $0x1548] sm:$0xff] }
 0x181   :  { %v110_v18 = vld [vmem:[#allocation2 + $0xc0] sm:$0xff]  ;;  %v827_v13 = vld [vmem:[#allocation5 + $0x15a8] sm:$0xff] }
 0x183   :  { %6511 = vmatpush1.bf16.msra.mxu0 %v8611_v23  ;;  %6855 = vmatpush1.bf16.msra.mxu1 %v8613_v24  ;;  %v786_v23 = vld [vmem:[#allocation5 + $0x1460] sm:$0xff]  ;;  %v783_v24 = vld [vmem:[#allocation5 + $0x1448] sm:$0xff] }
 0x184   :  { %6512 = vmatprep.subr.bf16.mxu0 %v8620_v26  ;;  %6856 = vmatprep.subr.bf16.mxu1 %v8622_v28  ;;  %v9497_v26 = vpack.c.bf16 %v110_v18, %v94_v17  ;;  %v787_v28 = vld [vmem:[#allocation5 + $0x1468] sm:$0xff]  ;;  %v8675_v41 = vcombine.low %v782_v22, %v786_v23  ;;  %v8718_v18 = vcombine.high %v823_v12, %v827_v13 }
 0x187   :  { %6513 = vmatpush1.bf16.msra.mxu0 %v8619_v33  ;;  %6857 = vmatpush1.bf16.msra.mxu1 %v8621_v34  ;;  %v8676_v33 = vcombine.high %v782_v22, %v786_v23  ;;  %v8678_v34 = vcombine.high %v783_v24, %v787_v28  ;;  %v835_v22 = vld [vmem:[#allocation5 + $0x15e8] sm:$0xff] }
 0x188   :  { %6514 = vmatprep.subr.bf16.mxu0 %v8628_v35  ;;  %6858 = vmatprep.subr.bf16.mxu1 %v8630_v36  ;;  %v790_v35 = vld [vmem:[#allocation5 + $0x1480] sm:$0xff] }
 0x189   :  { %v794_v36 = vld [vmem:[#allocation5 + $0x14a0] sm:$0xff] }
 0x18a   :  { %v8683_v50 = vcombine.low %v790_v35, %v794_v36 }
 0x18b   :  { %6515 = vmatpush1.bf16.msra.mxu0 %v8627_v42  ;;  %6859 = vmatpush1.bf16.msra.mxu1 %v8629_v44  ;;  %v8677_v42 = vcombine.low %v783_v24, %v787_v28  ;;  %v8684_v44 = vcombine.high %v790_v35, %v794_v36  ;;  %v8717_v24 = vcombine.low %v823_v12, %v827_v13  ;;  %v878_v13 = vld [vmem:[#allocation5 + $0x1740] sm:$0xff] }
 0x18c   :  { %6516 = vmatprep.subr.bf16.mxu0 %v8636_v45  ;;  %6860 = vmatprep.subr.bf16.mxu1 %v8638_v46  ;;  %v8686_v45 = vcombine.high %v791_v39, %v795_v40  ;;  %v798_v46 = vld [vmem:[#allocation5 + $0x14c0] sm:$0xff] }
 0x18d   :  { %v8691_v60 = vcombine.low %v798_v46, %v802_v47 }
 0x18f   :  { %6517 = vmatpush1.bf16.msra.mxu0 %v8635_v51  ;;  %6861 = vmatpush1.bf16.msra.mxu1 %v8637_v52  ;;  %v8685_v51 = vcombine.low %v791_v39, %v795_v40  ;;  %v8692_v52 = vcombine.high %v798_v46, %v802_v47  ;;  %v846_v40 = vld [vmem:[#allocation5 + $0x1640] sm:$0xff] }
 0x190   :  { %6518 = vmatprep.subr.bf16.mxu0 %v8644_v54  ;;  %6862 = vmatprep.subr.bf16.mxu1 %v8646_v55  ;;  %v8694_v54 = vcombine.high %v799_v48, %v803_v49  ;;  %v806_v55 = vld [vmem:[#allocation5 + $0x1500] sm:$0xff] }
 0x191   :  { %v8699_v5 = vcombine.low %v806_v55, %v810_v56 }
 0x193   :  { %6519 = vmatpush1.bf16.msra.mxu0 %v8643_v61  ;;  %6863 = vmatpush1.bf16.msra.mxu1 %v8645_v62  ;;  %v8693_v61 = vcombine.low %v799_v48, %v803_v49  ;;  %v8700_v62 = vcombine.high %v806_v55, %v810_v56  ;;  %v854_v49 = vld [vmem:[#allocation5 + $0x1680] sm:$0xff] }
 0x194   :  { %6520 = vmatprep.subr.bf16.mxu0 %v8652_v63  ;;  %6864 = vmatprep.subr.bf16.mxu1 %v8654_v1  ;;  %v8702_v63 = vcombine.high %v807_v57, %v811_v59  ;;  %v814_v1 = vld [vmem:[#allocation5 + $0x1540] sm:$0xff] }
 0x195   :  { %v8707_v14 = vcombine.low %v814_v1, %v818_v2 }
 0x197   :  { %6521 = vmatpush1.bf16.msra.mxu0 %v8651_v6  ;;  %6865 = vmatpush1.bf16.msra.mxu1 %v8653_v7  ;;  %v8701_v6 = vcombine.low %v807_v57, %v811_v59  ;;  %v8708_v7 = vcombine.high %v814_v1, %v818_v2  ;;  %v862_v59 = vld [vmem:[#allocation5 + $0x16c0] sm:$0xff] }
 0x198   :  { %6522 = vmatprep.subr.bf16.mxu0 %v8660_v8  ;;  %6866 = vmatprep.subr.bf16.mxu1 %v8662_v9  ;;  %v8710_v8 = vcombine.high %v815_v3, %v819_v4  ;;  %v822_v9 = vld [vmem:[#allocation5 + $0x1580] sm:$0xff] }
 0x199   :  { %v8716_v17 = vcombine.high %v822_v9, %v826_v11  ;;  %v8715_v23 = vcombine.low %v822_v9, %v826_v11 }
 0x19b   :  { %6523 = vmatpush1.bf16.msra.mxu0 %v8659_v16  ;;  %6867 = vmatpush1.bf16.msra.mxu1 %v8661_v19  ;;  %v8709_v16 = vcombine.low %v815_v3, %v819_v4  ;;  %v830_v19 = vld [vmem:[#allocation5 + $0x15c0] sm:$0xff] }
 0x19c   :  { %6535 = vmatprep.subr.bf16.mxu0 %v8668_v20  ;;  %6879 = vmatprep.subr.bf16.mxu1 %v8670_v21  ;;  %v834_v20 = vld [vmem:[#allocation5 + $0x15e0] sm:$0xff]  ;;  %v831_v21 = vld [vmem:[#allocation5 + $0x15c8] sm:$0xff] }
 0x19d   :  { %v8724_v28 = vcombine.high %v830_v19, %v834_v20  ;;  %v8726_v29 = vcombine.high %v831_v21, %v835_v22  ;;  %v8725_v35 = vcombine.low %v831_v21, %v835_v22  ;;  %v870_v4 = vld [vmem:[#allocation5 + $0x1700] sm:$0xff] }
 0x19e   :  { %6525 = vmatmul.mubr.bf16.vlgmr.msra.gmra.mrb[0].mxu0 %v9497_v26  ;;  %6869 = vmatmul.mubr.bf16.vlgmr.msra.gmra.mrb[0].mxu1 %v9497_v26  ;;  %v886_v22 = vld [vmem:[#allocation5 + $0x1780] sm:$0xff] }
 0x19f   :  { %6536 = vmatpush1.bf16.msra.mxu0 %v8667_v31  ;;  %6880 = vmatpush1.bf16.msra.mxu1 %v8669_v32  ;;  %v842_v31 = vld [vmem:[#allocation5 + $0x1620] sm:$0xff]  ;;  %v839_v32 = vld [vmem:[#allocation5 + $0x1608] sm:$0xff] }
 0x1a0   :  { %6537 = vmatprep.subr.bf16.mxu0 %v8676_v33  ;;  %6881 = vmatprep.subr.bf16.mxu1 %v8678_v34  ;;  %v843_v33 = vld [vmem:[#allocation5 + $0x1628] sm:$0xff]  ;;  %v8723_v34 = vcombine.low %v830_v19, %v834_v20  ;;  %v8732_v36 = vcombine.high %v838_v30, %v842_v31 }
 0x1a1   :  { %6567 = vmatprep.mubr.bf16.mxu0 %v9499_v38  ;;  %6911 = vmatprep.mubr.bf16.mxu1 %v9499_v38  ;;  %v8734_v39 = vcombine.high %v839_v32, %v843_v33  ;;  %v8733_v46 = vcombine.low %v839_v32, %v843_v33  ;;  %v894_v33 = vld [vmem:[#allocation5 + $0x17c0] sm:$0xff] }
 0x1a3   :  { %6538 = vmatpush1.bf16.msra.mxu0 %v8675_v41  ;;  %6882 = vmatpush1.bf16.msra.mxu1 %v8677_v42  ;;  %v850_v41 = vld [vmem:[#allocation5 + $0x1660] sm:$0xff]  ;;  %v847_v42 = vld [vmem:[#allocation5 + $0x1648] sm:$0xff] }
 0x1a4   :  { %6539 = vmatprep.subr.bf16.mxu0 %v8684_v44  ;;  %6883 = vmatprep.subr.bf16.mxu1 %v8686_v45  ;;  %v851_v44 = vld [vmem:[#allocation5 + $0x1668] sm:$0xff]  ;;  %v8731_v45 = vcombine.low %v838_v30, %v842_v31  ;;  %v8740_v47 = vcombine.high %v846_v40, %v850_v41 }
 0x1a5   :  { %v8742_v48 = vcombine.high %v847_v42, %v851_v44  ;;  %v8741_v55 = vcombine.low %v847_v42, %v851_v44  ;;  %v902_v44 = vld [vmem:[#allocation5 + $0x1800] sm:$0xff] }
 0x1a7   :  { %6540 = vmatpush1.bf16.msra.mxu0 %v8683_v50  ;;  %6884 = vmatpush1.bf16.msra.mxu1 %v8685_v51  ;;  %v858_v50 = vld [vmem:[#allocation5 + $0x16a0] sm:$0xff]  ;;  %v855_v51 = vld [vmem:[#allocation5 + $0x1688] sm:$0xff] }
 0x1a8   :  { %6541 = vmatprep.subr.bf16.mxu0 %v8692_v52  ;;  %6885 = vmatprep.subr.bf16.mxu1 %v8694_v54  ;;  %v859_v52 = vld [vmem:[#allocation5 + $0x16a8] sm:$0xff]  ;;  %v8739_v54 = vcombine.low %v846_v40, %v850_v41  ;;  %v8748_v56 = vcombine.high %v854_v49, %v858_v50 }
 0x1a9   :  { %v8750_v57 = vcombine.high %v855_v51, %v859_v52  ;;  %v8749_v1 = vcombine.low %v855_v51, %v859_v52 }
 0x1ab   :  { %6542 = vmatpush1.bf16.msra.mxu0 %v8691_v60  ;;  %6886 = vmatpush1.bf16.msra.mxu1 %v8693_v61  ;;  %v866_v60 = vld [vmem:[#allocation5 + $0x16e0] sm:$0xff]  ;;  %v863_v61 = vld [vmem:[#allocation5 + $0x16c8] sm:$0xff] }
 0x1ac   :  { %6543 = vmatprep.subr.bf16.mxu0 %v8700_v62  ;;  %6887 = vmatprep.subr.bf16.mxu1 %v8702_v63  ;;  %v867_v62 = vld [vmem:[#allocation5 + $0x16e8] sm:$0xff]  ;;  %v8747_v63 = vcombine.low %v854_v49, %v858_v50  ;;  %v8756_v2 = vcombine.high %v862_v59, %v866_v60  ;;  %v96_v49 = vld [vmem:[#allocation2 + $0x50] sm:$0xff] }
 0x1ad   :  { %v8758_v3 = vcombine.high %v863_v61, %v867_v62  ;;  %v8757_v9 = vcombine.low %v863_v61, %v867_v62  ;;  %v112_v50 = vld [vmem:[#allocation2 + $0xd0] sm:$0xff]  ;;  %v99_v61 = vld [vmem:[#allocation2 + $0x68] sm:$0xff] }
 0x1ae   :  { %v115_v62 = vld [vmem:[#allocation2 + $0xe8] sm:$0xff] }
 0x1af   :  { %6544 = vmatpush1.bf16.msra.mxu0 %v8699_v5  ;;  %6888 = vmatpush1.bf16.msra.mxu1 %v8701_v6  ;;  %v874_v5 = vld [vmem:[#allocation5 + $0x1720] sm:$0xff]  ;;  %v871_v6 = vld [vmem:[#allocation5 + $0x1708] sm:$0xff] }
 0x1b0   :  { %6545 = vmatprep.subr.bf16.mxu0 %v8708_v7  ;;  %6889 = vmatprep.subr.bf16.mxu1 %v8710_v8  ;;  %v875_v7 = vld [vmem:[#allocation5 + $0x1728] sm:$0xff]  ;;  %v8755_v8 = vcombine.low %v862_v59, %v866_v60  ;;  %v8764_v11 = vcombine.high %v870_v4, %v874_v5  ;;  %v9505_v59 = vpack.c.bf16 %v112_v50, %v96_v49 }
 0x1b1   :  { %v8766_v12 = vcombine.high %v871_v6, %v875_v7  ;;  %v8765_v19 = vcombine.low %v871_v6, %v875_v7  ;;  %v915_v60 = vld [vmem:[#allocation5 + $0x1868] sm:$0xff]  ;;  %v9507_v6 = vpack.c.bf16 %v115_v62, %v99_v61 }
 0x1b2   :  { %v919_v7 = vld [vmem:[#allocation5 + $0x1888] sm:$0xff] }
 0x1b3   :  { %6546 = vmatpush1.bf16.msra.mxu0 %v8707_v14  ;;  %6890 = vmatpush1.bf16.msra.mxu1 %v8709_v16  ;;  %v882_v14 = vld [vmem:[#allocation5 + $0x1760] sm:$0xff]  ;;  %v879_v16 = vld [vmem:[#allocation5 + $0x1748] sm:$0xff] }
 0x1b4   :  { %6547 = vmatprep.subr.bf16.mxu0 %v8716_v17  ;;  %6891 = vmatprep.subr.bf16.mxu1 %v8718_v18  ;;  %v883_v17 = vld [vmem:[#allocation5 + $0x1768] sm:$0xff]  ;;  %v8763_v18 = vcombine.low %v870_v4, %v874_v5  ;;  %v8772_v20 = vcombine.high %v878_v13, %v882_v14  ;;  %v918_v4 = vld [vmem:[#allocation5 + $0x1880] sm:$0xff] }
 0x1b5   :  { %v8774_v21 = vcombine.high %v879_v16, %v883_v17  ;;  %v8773_v30 = vcombine.low %v879_v16, %v883_v17  ;;  %v922_v5 = vld [vmem:[#allocation5 + $0x18a0] sm:$0xff]  ;;  %v927_v17 = vld [vmem:[#allocation5 + $0x18c8] sm:$0xff] }
 0x1b6   :  { %v930_v16 = vld [vmem:[#allocation5 + $0x18e0] sm:$0xff] }
 0x1b7   :  { %6548 = vmatpush1.bf16.msra.mxu0 %v8715_v23  ;;  %6892 = vmatpush1.bf16.msra.mxu1 %v8717_v24  ;;  %v890_v23 = vld [vmem:[#allocation5 + $0x17a0] sm:$0xff]  ;;  %v887_v24 = vld [vmem:[#allocation5 + $0x1788] sm:$0xff] }
 0x1b8   :  { %6549 = vmatprep.subr.bf16.mxu0 %v8724_v28  ;;  %6893 = vmatprep.subr.bf16.mxu1 %v8726_v29  ;;  %v891_v28 = vld [vmem:[#allocation5 + $0x17a8] sm:$0xff]  ;;  %v8771_v29 = vcombine.low %v878_v13, %v882_v14  ;;  %v8780_v31 = vcombine.high %v886_v22, %v890_v23  ;;  %v926_v14 = vld [vmem:[#allocation5 + $0x18c0] sm:$0xff] }
 0x1b9   :  { %v8782_v32 = vcombine.high %v887_v24, %v891_v28  ;;  %v8781_v40 = vcombine.low %v887_v24, %v891_v28  ;;  %v938_v24 = vld [vmem:[#allocation5 + $0x1920] sm:$0xff]  ;;  %v935_v28 = vld [vmem:[#allocation5 + $0x1908] sm:$0xff] }
 0x1bb   :  { %6550 = vmatpush1.bf16.msra.mxu0 %v8723_v34  ;;  %6894 = vmatpush1.bf16.msra.mxu1 %v8725_v35  ;;  %v898_v34 = vld [vmem:[#allocation5 + $0x17e0] sm:$0xff]  ;;  %v895_v35 = vld [vmem:[#allocation5 + $0x17c8] sm:$0xff] }
 0x1bc   :  { %6551 = vmatprep.subr.bf16.mxu0 %v8732_v36  ;;  %6895 = vmatprep.subr.bf16.mxu1 %v8734_v39  ;;  %v899_v36 = vld [vmem:[#allocation5 + $0x17e8] sm:$0xff]  ;;  %v8779_v39 = vcombine.low %v886_v22, %v890_v23  ;;  %v8788_v41 = vcombine.high %v894_v33, %v898_v34  ;;  %v934_v23 = vld [vmem:[#allocation5 + $0x1900] sm:$0xff] }
 0x1bd   :  { %v8790_v42 = vcombine.high %v895_v35, %v899_v36  ;;  %v8789_v51 = vcombine.low %v895_v35, %v899_v36  ;;  %v946_v35 = vld [vmem:[#allocation5 + $0x1960] sm:$0xff]  ;;  %v943_v36 = vld [vmem:[#allocation5 + $0x1948] sm:$0xff] }
 0x1bf   :  { %6552 = vmatpush1.bf16.msra.mxu0 %v8731_v45  ;;  %6896 = vmatpush1.bf16.msra.mxu1 %v8733_v46  ;;  %v906_v45 = vld [vmem:[#allocation5 + $0x1820] sm:$0xff]  ;;  %v903_v46 = vld [vmem:[#allocation5 + $0x1808] sm:$0xff] }
 0x1c0   :  { %6553 = vmatprep.subr.bf16.mxu0 %v8740_v47  ;;  %6897 = vmatprep.subr.bf16.mxu1 %v8742_v48  ;;  %v907_v47 = vld [vmem:[#allocation5 + $0x1828] sm:$0xff]  ;;  %v8787_v48 = vcombine.low %v894_v33, %v898_v34  ;;  %v8796_v52 = vcombine.high %v902_v44, %v906_v45  ;;  %v942_v34 = vld [vmem:[#allocation5 + $0x1940] sm:$0xff] }
 0x1c1   :  { %v8835_v49 = vcombine.low %v942_v34, %v946_v35 }
 0x1c3   :  { %6554 = vmatpush1.bf16.msra.mxu0 %v8739_v54  ;;  %6898 = vmatpush1.bf16.msra.mxu1 %v8741_v55  ;;  %v8798_v54 = vcombine.high %v903_v46, %v907_v47  ;;  %v910_v55 = vld [vmem:[#allocation5 + $0x1840] sm:$0xff] }
 0x1c4   :  { %6555 = vmatprep.subr.bf16.mxu0 %v8748_v56  ;;  %6899 = vmatprep.subr.bf16.mxu1 %v8750_v57  ;;  %v914_v56 = vld [vmem:[#allocation5 + $0x1860] sm:$0xff]  ;;  %v911_v57 = vld [vmem:[#allocation5 + $0x1848] sm:$0xff] }
 0x1c7   :  { %6556 = vmatpush1.bf16.msra.mxu0 %v8747_v63  ;;  %6900 = vmatpush1.bf16.msra.mxu1 %v8749_v1  ;;  %v8795_v63 = vcombine.low %v902_v44, %v906_v45  ;;  %v8797_v1 = vcombine.low %v903_v46, %v907_v47  ;;  %v950_v45 = vld [vmem:[#allocation5 + $0x1980] sm:$0xff]  ;;  %v951_v47 = vld [vmem:[#allocation5 + $0x1988] sm:$0xff] }
 0x1c8   :  { %6557 = vmatprep.subr.bf16.mxu0 %v8756_v2  ;;  %6901 = vmatprep.subr.bf16.mxu1 %v8758_v3  ;;  %v8804_v2 = vcombine.high %v910_v55, %v914_v56  ;;  %v8806_v3 = vcombine.high %v911_v57, %v915_v60  ;;  %v954_v46 = vld [vmem:[#allocation5 + $0x19a0] sm:$0xff] }
 0x1cb   :  { %6558 = vmatpush1.bf16.msra.mxu0 %v8755_v8  ;;  %6902 = vmatpush1.bf16.msra.mxu1 %v8757_v9  ;;  %v923_v8 = vld [vmem:[#allocation5 + $0x18a8] sm:$0xff]  ;;  %v8803_v9 = vcombine.low %v910_v55, %v914_v56  ;;  %v962_v55 = vld [vmem:[#allocation5 + $0x19e0] sm:$0xff] }
 0x1cc   :  { %6559 = vmatprep.subr.bf16.mxu0 %v8764_v11  ;;  %6903 = vmatprep.subr.bf16.mxu1 %v8766_v12  ;;  %v8805_v11 = vcombine.low %v911_v57, %v915_v60  ;;  %v8812_v12 = vcombine.high %v918_v4, %v922_v5  ;;  %v8814_v13 = vcombine.high %v919_v7, %v923_v8  ;;  %v959_v56 = vld [vmem:[#allocation5 + $0x19c8] sm:$0xff] }
 0x1cd   :  { %v963_v57 = vld [vmem:[#allocation5 + $0x19e8] sm:$0xff]  ;;  %v8843_v60 = vcombine.low %v950_v45, %v954_v46 }
 0x1cf   :  { %6560 = vmatpush1.bf16.msra.mxu0 %v8763_v18  ;;  %6904 = vmatpush1.bf16.msra.mxu1 %v8765_v19  ;;  %v931_v18 = vld [vmem:[#allocation5 + $0x18e8] sm:$0xff]  ;;  %v8811_v19 = vcombine.low %v918_v4, %v922_v5 }
 0x1d0   :  { %6561 = vmatprep.subr.bf16.mxu0 %v8772_v20  ;;  %6905 = vmatprep.subr.bf16.mxu1 %v8774_v21  ;;  %v8813_v20 = vcombine.low %v919_v7, %v923_v8  ;;  %v8820_v21 = vcombine.high %v926_v14, %v930_v16  ;;  %v8822_v22 = vcombine.high %v927_v17, %v931_v18  ;;  %v971_v4 = vld [vmem:[#allocation5 + $0x1a28] sm:$0xff] }
 0x1d1   :  { %v8853_v7 = vcombine.low %v959_v56, %v963_v57 }
 0x1d3   :  { %6562 = vmatpush1.bf16.msra.mxu0 %v8771_v29  ;;  %6906 = vmatpush1.bf16.msra.mxu1 %v8773_v30  ;;  %v939_v29 = vld [vmem:[#allocation5 + $0x1928] sm:$0xff]  ;;  %v8819_v30 = vcombine.low %v926_v14, %v930_v16 }
 0x1d4   :  { %6563 = vmatprep.subr.bf16.mxu0 %v8780_v31  ;;  %6907 = vmatprep.subr.bf16.mxu1 %v8782_v32  ;;  %v8821_v31 = vcombine.low %v927_v17, %v931_v18  ;;  %v8828_v32 = vcombine.high %v934_v23, %v938_v24  ;;  %v8830_v33 = vcombine.high %v935_v28, %v939_v29  ;;  %v979_v14 = vld [vmem:[#allocation5 + $0x1a68] sm:$0xff] }
 0x1d7   :  { %6564 = vmatpush1.bf16.msra.mxu0 %v8779_v39  ;;  %6908 = vmatpush1.bf16.msra.mxu1 %v8781_v40  ;;  %v947_v39 = vld [vmem:[#allocation5 + $0x1968] sm:$0xff]  ;;  %v8827_v40 = vcombine.low %v934_v23, %v938_v24 }
 0x1d8   :  { %6565 = vmatprep.subr.bf16.mxu0 %v8788_v41  ;;  %6909 = vmatprep.subr.bf16.mxu1 %v8790_v42  ;;  %v8829_v41 = vcombine.low %v935_v28, %v939_v29  ;;  %v8836_v42 = vcombine.high %v942_v34, %v946_v35  ;;  %v8838_v44 = vcombine.high %v943_v36, %v947_v39  ;;  %v987_v23 = vld [vmem:[#allocation5 + $0x1aa8] sm:$0xff] }
 0x1d9   :  { %v8837_v50 = vcombine.low %v943_v36, %v947_v39  ;;  %v995_v34 = vld [vmem:[#allocation5 + $0x1ae8] sm:$0xff] }
 0x1db   :  { %6566 = vmatpush1.bf16.msra.mxu0 %v8787_v48  ;;  %6910 = vmatpush1.bf16.msra.mxu1 %v8789_v51  ;;  %v955_v48 = vld [vmem:[#allocation5 + $0x19a8] sm:$0xff]  ;;  %v8844_v51 = vcombine.high %v950_v45, %v954_v46 }
 0x1dc   :  { %6578 = vmatprep.subr.bf16.mxu0 %v8796_v52  ;;  %6922 = vmatprep.subr.bf16.mxu1 %v8798_v54  ;;  %v8846_v52 = vcombine.high %v951_v47, %v955_v48  ;;  %v958_v54 = vld [vmem:[#allocation5 + $0x19c0] sm:$0xff]  ;;  %v8845_v61 = vcombine.low %v951_v47, %v955_v48  ;;  %v1003_v45 = vld [vmem:[#allocation5 + $0x1b28] sm:$0xff] }
 0x1dd   :  { %v8852_v62 = vcombine.high %v958_v54, %v962_v55  ;;  %v8851_v5 = vcombine.low %v958_v54, %v962_v55  ;;  %v1011_v54 = vld [vmem:[#allocation5 + $0x1b68] sm:$0xff] }
 0x1de   :  { %6568 = vmatmul.mubr.bf16.vlgmr.msra.gmra.mrb[0].mxu0 %v9505_v59  ;;  %6912 = vmatmul.mubr.bf16.vlgmr.msra.gmra.mrb[0].mxu1 %v9505_v59 }
 0x1df   :  { %6579 = vmatpush1.bf16.msra.mxu0 %v8795_v63  ;;  %6923 = vmatpush1.bf16.msra.mxu1 %v8797_v1  ;;  %v8854_v63 = vcombine.high %v959_v56, %v963_v57  ;;  %v966_v1 = vld [vmem:[#allocation5 + $0x1a00] sm:$0xff] }
 0x1e0   :  { %6580 = vmatprep.subr.bf16.mxu0 %v8804_v2  ;;  %6924 = vmatprep.subr.bf16.mxu1 %v8806_v3  ;;  %v970_v2 = vld [vmem:[#allocation5 + $0x1a20] sm:$0xff]  ;;  %v967_v3 = vld [vmem:[#allocation5 + $0x1a08] sm:$0xff] }
 0x1e1   :  { %6610 = vmatprep.mubr.bf16.mxu0 %v9507_v6  ;;  %6954 = vmatprep.mubr.bf16.mxu1 %v9507_v6  ;;  %v8860_v8 = vcombine.high %v966_v1, %v970_v2  ;;  %v8859_v16 = vcombine.low %v966_v1, %v970_v2  ;;  %v8861_v17 = vcombine.low %v967_v3, %v971_v4  ;;  %v1019_v1 = vld [vmem:[#allocation5 + $0x1ba8] sm:$0xff] }
 0x1e3   :  { %6581 = vmatpush1.bf16.msra.mxu0 %v8803_v9  ;;  %6925 = vmatpush1.bf16.msra.mxu1 %v8805_v11  ;;  %v8862_v9 = vcombine.high %v967_v3, %v971_v4  ;;  %v974_v11 = vld [vmem:[#allocation5 + $0x1a40] sm:$0xff] }
 0x1e4   :  { %6582 = vmatprep.subr.bf16.mxu0 %v8812_v12  ;;  %6926 = vmatprep.subr.bf16.mxu1 %v8814_v13  ;;  %v978_v12 = vld [vmem:[#allocation5 + $0x1a60] sm:$0xff]  ;;  %v975_v13 = vld [vmem:[#allocation5 + $0x1a48] sm:$0xff] }
 0x1e5   :  { %v8868_v18 = vcombine.high %v974_v11, %v978_v12  ;;  %v8867_v24 = vcombine.low %v974_v11, %v978_v12  ;;  %v8869_v28 = vcombine.low %v975_v13, %v979_v14  ;;  %v1027_v11 = vld [vmem:[#allocation5 + $0x1be8] sm:$0xff] }
 0x1e7   :  { %6583 = vmatpush1.bf16.msra.mxu0 %v8811_v19  ;;  %6927 = vmatpush1.bf16.msra.mxu1 %v8813_v20  ;;  %v8870_v19 = vcombine.high %v975_v13, %v979_v14  ;;  %v982_v20 = vld [vmem:[#allocation5 + $0x1a80] sm:$0xff] }
 0x1e8   :  { %6584 = vmatprep.subr.bf16.mxu0 %v8820_v21  ;;  %6928 = vmatprep.subr.bf16.mxu1 %v8822_v22  ;;  %v986_v21 = vld [vmem:[#allocation5 + $0x1aa0] sm:$0xff]  ;;  %v983_v22 = vld [vmem:[#allocation5 + $0x1a88] sm:$0xff] }
 0x1e9   :  { %v8876_v29 = vcombine.high %v982_v20, %v986_v21  ;;  %v8875_v35 = vcombine.low %v982_v20, %v986_v21  ;;  %v8877_v36 = vcombine.low %v983_v22, %v987_v23  ;;  %v1035_v20 = vld [vmem:[#allocation5 + $0x1c28] sm:$0xff] }
 0x1eb   :  { %6585 = vmatpush1.bf16.msra.mxu0 %v8819_v30  ;;  %6929 = vmatpush1.bf16.msra.mxu1 %v8821_v31  ;;  %v8878_v30 = vcombine.high %v983_v22, %v987_v23  ;;  %v990_v31 = vld [vmem:[#allocation5 + $0x1ac0] sm:$0xff] }
 0x1ec   :  { %6586 = vmatprep.subr.bf16.mxu0 %v8828_v32  ;;  %6930 = vmatprep.subr.bf16.mxu1 %v8830_v33  ;;  %v994_v32 = vld [vmem:[#allocation5 + $0x1ae0] sm:$0xff]  ;;  %v991_v33 = vld [vmem:[#allocation5 + $0x1ac8] sm:$0xff] }
 0x1ed   :  { %v8884_v39 = vcombine.high %v990_v31, %v994_v32  ;;  %v8883_v46 = vcombine.low %v990_v31, %v994_v32  ;;  %v8885_v47 = vcombine.low %v991_v33, %v995_v34  ;;  %v98_v22 = vld [vmem:[#allocation2 + $0x60] sm:$0xff]  ;;  %v1039_v32 = vld [vmem:[#allocation5 + $0x1c48] sm:$0xff] }
 0x1ee   :  { %v114_v23 = vld [vmem:[#allocation2 + $0xe0] sm:$0xff] }
 0x1ef   :  { %6587 = vmatpush1.bf16.msra.mxu0 %v8827_v40  ;;  %6931 = vmatpush1.bf16.msra.mxu1 %v8829_v41  ;;  %v8886_v40 = vcombine.high %v991_v33, %v995_v34  ;;  %v998_v41 = vld [vmem:[#allocation5 + $0x1b00] sm:$0xff]  ;;  %v9513_v33 = vpack.c.bf16 %v114_v23, %v98_v22  ;;  %v1043_v34 = vld [vmem:[#allocation5 + $0x1c68] sm:$0xff] }
 0x1f0   :  { %6588 = vmatprep.subr.bf16.mxu0 %v8836_v42  ;;  %6932 = vmatprep.subr.bf16.mxu1 %v8838_v44  ;;  %v1002_v42 = vld [vmem:[#allocation5 + $0x1b20] sm:$0xff]  ;;  %v999_v44 = vld [vmem:[#allocation5 + $0x1b08] sm:$0xff] }
 0x1f1   :  { %v8892_v48 = vcombine.high %v998_v41, %v1002_v42  ;;  %v8891_v55 = vcombine.low %v998_v41, %v1002_v42  ;;  %v8893_v56 = vcombine.low %v999_v44, %v1003_v45  ;;  %v1042_v31 = vld [vmem:[#allocation5 + $0x1c60] sm:$0xff]  ;;  %v8934_v42 = vcombine.high %v1039_v32, %v1043_v34  ;;  %v1079_v22 = vld [vmem:[#allocation5 + $0x1d88] sm:$0xff] }
 0x1f2   :  { %v1083_v23 = vld [vmem:[#allocation5 + $0x1da8] sm:$0xff] }
 0x1f3   :  { %6589 = vmatpush1.bf16.msra.mxu0 %v8835_v49  ;;  %6933 = vmatpush1.bf16.msra.mxu1 %v8837_v50  ;;  %v8894_v49 = vcombine.high %v999_v44, %v1003_v45  ;;  %v1006_v50 = vld [vmem:[#allocation5 + $0x1b40] sm:$0xff] }
 0x1f4   :  { %6590 = vmatprep.subr.bf16.mxu0 %v8844_v51  ;;  %6934 = vmatprep.subr.bf16.mxu1 %v8846_v52  ;;  %v1010_v51 = vld [vmem:[#allocation5 + $0x1b60] sm:$0xff]  ;;  %v1007_v52 = vld [vmem:[#allocation5 + $0x1b48] sm:$0xff] }
 0x1f5   :  { %v8900_v57 = vcombine.high %v1006_v50, %v1010_v51  ;;  %v8899_v2 = vcombine.low %v1006_v50, %v1010_v51  ;;  %v8901_v3 = vcombine.low %v1007_v52, %v1011_v54  ;;  %v1046_v44 = vld [vmem:[#allocation5 + $0x1c80] sm:$0xff]  ;;  %v8933_v50 = vcombine.low %v1039_v32, %v1043_v34  ;;  %v1087_v34 = vld [vmem:[#allocation5 + $0x1dc8] sm:$0xff] }
 0x1f6   :  { %v1050_v45 = vld [vmem:[#allocation5 + $0x1ca0] sm:$0xff] }
 0x1f7   :  { %6591 = vmatpush1.bf16.msra.mxu0 %v8843_v60  ;;  %6935 = vmatpush1.bf16.msra.mxu1 %v8845_v61  ;;  %v8902_v60 = vcombine.high %v1007_v52, %v1011_v54  ;;  %v1014_v61 = vld [vmem:[#allocation5 + $0x1b80] sm:$0xff]  ;;  %v8940_v51 = vcombine.high %v1046_v44, %v1050_v45 }
 0x1f8   :  { %6592 = vmatprep.subr.bf16.mxu0 %v8852_v62  ;;  %6936 = vmatprep.subr.bf16.mxu1 %v8854_v63  ;;  %v1018_v62 = vld [vmem:[#allocation5 + $0x1ba0] sm:$0xff]  ;;  %v1015_v63 = vld [vmem:[#allocation5 + $0x1b88] sm:$0xff] }
 0x1f9   :  { %v8908_v4 = vcombine.high %v1014_v61, %v1018_v62  ;;  %v8907_v12 = vcombine.low %v1014_v61, %v1018_v62  ;;  %v8909_v13 = vcombine.low %v1015_v63, %v1019_v1  ;;  %v1054_v54 = vld [vmem:[#allocation5 + $0x1cc0] sm:$0xff] }
 0x1fa   :  { %v1090_v32 = vld [vmem:[#allocation5 + $0x1de0] sm:$0xff] }
 0x1fb   :  { %6593 = vmatpush1.bf16.msra.mxu0 %v8851_v5  ;;  %6937 = vmatpush1.bf16.msra.mxu1 %v8853_v7  ;;  %v8910_v5 = vcombine.high %v1015_v63, %v1019_v1  ;;  %v1022_v7 = vld [vmem:[#allocation5 + $0x1bc0] sm:$0xff] }
 0x1fc   :  { %6594 = vmatprep.subr.bf16.mxu0 %v8860_v8  ;;  %6938 = vmatprep.subr.bf16.mxu1 %v8862_v9  ;;  %v1026_v8 = vld [vmem:[#allocation5 + $0x1be0] sm:$0xff]  ;;  %v1023_v9 = vld [vmem:[#allocation5 + $0x1bc8] sm:$0xff] }
 0x1fd   :  { %v8916_v14 = vcombine.high %v1022_v7, %v1026_v8  ;;  %v8915_v21 = vcombine.low %v1022_v7, %v1026_v8  ;;  %v1062_v1 = vld [vmem:[#allocation5 + $0x1d00] sm:$0xff] }
 0x1ff   :  { %6595 = vmatpush1.bf16.msra.mxu0 %v8859_v16  ;;  %6939 = vmatpush1.bf16.msra.mxu1 %v8861_v17  ;;  %v8918_v16 = vcombine.high %v1023_v9, %v1027_v11  ;;  %v1030_v17 = vld [vmem:[#allocation5 + $0x1c00] sm:$0xff] }
 0x200   :  { %6596 = vmatprep.subr.bf16.mxu0 %v8868_v18  ;;  %6940 = vmatprep.subr.bf16.mxu1 %v8870_v19  ;;  %v1034_v18 = vld [vmem:[#allocation5 + $0x1c20] sm:$0xff]  ;;  %v1031_v19 = vld [vmem:[#allocation5 + $0x1c08] sm:$0xff] }
 0x203   :  { %6597 = vmatpush1.bf16.msra.mxu0 %v8867_v24  ;;  %6941 = vmatpush1.bf16.msra.mxu1 %v8869_v28  ;;  %v8917_v24 = vcombine.low %v1023_v9, %v1027_v11  ;;  %v8924_v28 = vcombine.high %v1030_v17, %v1034_v18  ;;  %v1070_v11 = vld [vmem:[#allocation5 + $0x1d40] sm:$0xff] }
 0x204   :  { %6598 = vmatprep.subr.bf16.mxu0 %v8876_v29  ;;  %6942 = vmatprep.subr.bf16.mxu1 %v8878_v30  ;;  %v8926_v29 = vcombine.high %v1031_v19, %v1035_v20  ;;  %v1038_v30 = vld [vmem:[#allocation5 + $0x1c40] sm:$0xff] }
 0x205   :  { %v8932_v41 = vcombine.high %v1038_v30, %v1042_v31 }
 0x207   :  { %6599 = vmatpush1.bf16.msra.mxu0 %v8875_v35  ;;  %6943 = vmatpush1.bf16.msra.mxu1 %v8877_v36  ;;  %v101_v35 = vld [vmem:[#allocation2 + $0x78] sm:$0xff] }
 0x208   :  { %6600 = vmatprep.subr.bf16.mxu0 %v8884_v39  ;;  %6944 = vmatprep.subr.bf16.mxu1 %v8886_v40  ;;  %v117_v36 = vld [vmem:[#allocation2 + $0xf8] sm:$0xff]  ;;  %v8923_v39 = vcombine.low %v1030_v17, %v1034_v18  ;;  %v8925_v40 = vcombine.low %v1031_v19, %v1035_v20  ;;  %v1078_v20 = vld [vmem:[#allocation5 + $0x1d80] sm:$0xff] }
 0x20b   :  { %6601 = vmatpush1.bf16.msra.mxu0 %v8883_v46  ;;  %6945 = vmatpush1.bf16.msra.mxu1 %v8885_v47  ;;  %v9515_v46 = vpack.c.bf16 %v117_v36, %v101_v35  ;;  %v1047_v47 = vld [vmem:[#allocation5 + $0x1c88] sm:$0xff] }
 0x20c   :  { %6602 = vmatprep.subr.bf16.mxu0 %v8892_v48  ;;  %6946 = vmatprep.subr.bf16.mxu1 %v8894_v49  ;;  %v1051_v48 = vld [vmem:[#allocation5 + $0x1ca8] sm:$0xff]  ;;  %v8931_v49 = vcombine.low %v1038_v30, %v1042_v31  ;;  %v8974_v30 = vcombine.high %v1079_v22, %v1083_v23  ;;  %v1086_v31 = vld [vmem:[#allocation5 + $0x1dc0] sm:$0xff] }
 0x20d   :  { %v8942_v52 = vcombine.high %v1047_v47, %v1051_v48  ;;  %v8941_v61 = vcombine.low %v1047_v47, %v1051_v48  ;;  %v1091_v35 = vld [vmem:[#allocation5 + $0x1de8] sm:$0xff]  ;;  %v8979_v48 = vcombine.low %v1086_v31, %v1090_v32 }
 0x20e   :  { %v1099_v47 = vld [vmem:[#allocation5 + $0x1e28] sm:$0xff] }
 0x20f   :  { %6603 = vmatpush1.bf16.msra.mxu0 %v8891_v55  ;;  %6947 = vmatpush1.bf16.msra.mxu1 %v8893_v56  ;;  %v1058_v55 = vld [vmem:[#allocation5 + $0x1ce0] sm:$0xff]  ;;  %v1055_v56 = vld [vmem:[#allocation5 + $0x1cc8] sm:$0xff] }
 0x210   :  { %6604 = vmatprep.subr.bf16.mxu0 %v8900_v57  ;;  %6948 = vmatprep.subr.bf16.mxu1 %v8902_v60  ;;  %v1059_v57 = vld [vmem:[#allocation5 + $0x1ce8] sm:$0xff]  ;;  %v8939_v60 = vcombine.low %v1046_v44, %v1050_v45  ;;  %v8948_v62 = vcombine.high %v1054_v54, %v1058_v55  ;;  %v1098_v44 = vld [vmem:[#allocation5 + $0x1e20] sm:$0xff] }
 0x211   :  { %v8950_v63 = vcombine.high %v1055_v56, %v1059_v57  ;;  %v8949_v7 = vcombine.low %v1055_v56, %v1059_v57  ;;  %v1095_v45 = vld [vmem:[#allocation5 + $0x1e08] sm:$0xff] }
 0x212   :  { %v1107_v56 = vld [vmem:[#allocation5 + $0x1e68] sm:$0xff] }
 0x213   :  { %6605 = vmatpush1.bf16.msra.mxu0 %v8899_v2  ;;  %6949 = vmatpush1.bf16.msra.mxu1 %v8901_v3  ;;  %v1066_v2 = vld [vmem:[#allocation5 + $0x1d20] sm:$0xff]  ;;  %v1063_v3 = vld [vmem:[#allocation5 + $0x1d08] sm:$0xff] }
 0x214   :  { %6606 = vmatprep.subr.bf16.mxu0 %v8908_v4  ;;  %6950 = vmatprep.subr.bf16.mxu1 %v8910_v5  ;;  %v1067_v4 = vld [vmem:[#allocation5 + $0x1d28] sm:$0xff]  ;;  %v8947_v5 = vcombine.low %v1054_v54, %v1058_v55  ;;  %v8956_v8 = vcombine.high %v1062_v1, %v1066_v2  ;;  %v1106_v54 = vld [vmem:[#allocation5 + $0x1e60] sm:$0xff] }
 0x215   :  { %v8958_v9 = vcombine.high %v1063_v3, %v1067_v4  ;;  %v8957_v17 = vcombine.low %v1063_v3, %v1067_v4  ;;  %v1103_v55 = vld [vmem:[#allocation5 + $0x1e48] sm:$0xff] }
 0x216   :  { %v1115_v3 = vld [vmem:[#allocation5 + $0x1ea8] sm:$0xff] }
 0x217   :  { %6607 = vmatpush1.bf16.msra.mxu0 %v8907_v12  ;;  %6951 = vmatpush1.bf16.msra.mxu1 %v8909_v13  ;;  %v1074_v12 = vld [vmem:[#allocation5 + $0x1d60] sm:$0xff]  ;;  %v1071_v13 = vld [vmem:[#allocation5 + $0x1d48] sm:$0xff] }
 0x218   :  { %6608 = vmatprep.subr.bf16.mxu0 %v8916_v14  ;;  %6952 = vmatprep.subr.bf16.mxu1 %v8918_v16  ;;  %v1075_v14 = vld [vmem:[#allocation5 + $0x1d68] sm:$0xff]  ;;  %v8955_v16 = vcombine.low %v1062_v1, %v1066_v2  ;;  %v8964_v18 = vcombine.high %v1070_v11, %v1074_v12  ;;  %v1114_v1 = vld [vmem:[#allocation5 + $0x1ea0] sm:$0xff] }
 0x219   :  { %v8966_v19 = vcombine.high %v1071_v13, %v1075_v14  ;;  %v1111_v2 = vld [vmem:[#allocation5 + $0x1e88] sm:$0xff] }
 0x21b   :  { %6609 = vmatpush1.bf16.msra.mxu0 %v8915_v21  ;;  %6953 = vmatpush1.bf16.msra.mxu1 %v8917_v24  ;;  %v1082_v21 = vld [vmem:[#allocation5 + $0x1da0] sm:$0xff]  ;;  %v8963_v24 = vcombine.low %v1070_v11, %v1074_v12  ;;  %v1119_v12 = vld [vmem:[#allocation5 + $0x1ec8] sm:$0xff] }
 0x21c   :  { %6621 = vmatprep.subr.bf16.mxu0 %v8924_v28  ;;  %6965 = vmatprep.subr.bf16.mxu1 %v8926_v29  ;;  %v8965_v28 = vcombine.low %v1071_v13, %v1075_v14  ;;  %v8972_v29 = vcombine.high %v1078_v20, %v1082_v21  ;;  %v8971_v36 = vcombine.low %v1078_v20, %v1082_v21  ;;  %v1122_v11 = vld [vmem:[#allocation5 + $0x1ee0] sm:$0xff]  ;;  %v1123_v13 = vld [vmem:[#allocation5 + $0x1ee8] sm:$0xff] }
 0x21d   :  { %v1130_v20 = vld [vmem:[#allocation5 + $0x1f20] sm:$0xff]  ;;  %v1127_v21 = vld [vmem:[#allocation5 + $0x1f08] sm:$0xff] }
 0x21e   :  { %6611 = vmatmul.mubr.bf16.vlgmr.msra.gmra.mrb[0].mxu0 %v9513_v33  ;;  %6955 = vmatmul.mubr.bf16.vlgmr.msra.gmra.mrb[0].mxu1 %v9513_v33 }
 0x21f   :  { %6622 = vmatpush1.bf16.msra.mxu0 %v8923_v39  ;;  %6966 = vmatpush1.bf16.msra.mxu1 %v8925_v40  ;;  %v8973_v39 = vcombine.low %v1079_v22, %v1083_v23  ;;  %v8980_v40 = vcombine.high %v1086_v31, %v1090_v32  ;;  %v1131_v22 = vld [vmem:[#allocation5 + $0x1f28] sm:$0xff]  ;;  %v1138_v31 = vld [vmem:[#allocation5 + $0x1f60] sm:$0xff] }
 0x220   :  { %6623 = vmatprep.subr.bf16.mxu0 %v8932_v41  ;;  %6967 = vmatprep.subr.bf16.mxu1 %v8934_v42  ;;  %v8982_v41 = vcombine.high %v1087_v34, %v1091_v35  ;;  %v1094_v42 = vld [vmem:[#allocation5 + $0x1e00] sm:$0xff]  ;;  %v1135_v32 = vld [vmem:[#allocation5 + $0x1f48] sm:$0xff] }
 0x221   :  { %6653 = vmatprep.mubr.bf16.mxu0 %v9515_v46  ;;  %6997 = vmatprep.mubr.bf16.mxu1 %v9515_v46  ;;  %v8987_v57 = vcombine.low %v1094_v42, %v1098_v44 }
 0x223   :  { %6624 = vmatpush1.bf16.msra.mxu0 %v8931_v49  ;;  %6968 = vmatpush1.bf16.msra.mxu1 %v8933_v50  ;;  %v8981_v49 = vcombine.low %v1087_v34, %v1091_v35  ;;  %v8988_v50 = vcombine.high %v1094_v42, %v1098_v44  ;;  %v1139_v34 = vld [vmem:[#allocation5 + $0x1f68] sm:$0xff]  ;;  %v1146_v42 = vld [vmem:[#allocation5 + $0x1fa0] sm:$0xff] }
 0x224   :  { %6625 = vmatprep.subr.bf16.mxu0 %v8940_v51  ;;  %6969 = vmatprep.subr.bf16.mxu1 %v8942_v52  ;;  %v8990_v51 = vcombine.high %v1095_v45, %v1099_v47  ;;  %v1102_v52 = vld [vmem:[#allocation5 + $0x1e40] sm:$0xff]  ;;  %v1143_v44 = vld [vmem:[#allocation5 + $0x1f88] sm:$0xff] }
 0x225   :  { %v8995_v4 = vcombine.low %v1102_v52, %v1106_v54 }
 0x227   :  { %6626 = vmatpush1.bf16.msra.mxu0 %v8939_v60  ;;  %6970 = vmatpush1.bf16.msra.mxu1 %v8941_v61  ;;  %v8989_v60 = vcombine.low %v1095_v45, %v1099_v47  ;;  %v8996_v61 = vcombine.high %v1102_v52, %v1106_v54  ;;  %v1147_v45 = vld [vmem:[#allocation5 + $0x1fa8] sm:$0xff]  ;;  %v1154_v52 = vld [vmem:[#allocation5 + $0x1fe0] sm:$0xff] }
 0x228   :  { %6627 = vmatprep.subr.bf16.mxu0 %v8948_v62  ;;  %6971 = vmatprep.subr.bf16.mxu1 %v8950_v63  ;;  %v8998_v62 = vcombine.high %v1103_v55, %v1107_v56  ;;  %v1110_v63 = vld [vmem:[#allocation5 + $0x1e80] sm:$0xff]  ;;  %v1151_v54 = vld [vmem:[#allocation5 + $0x1fc8] sm:$0xff] }
 0x229   :  { %v9003_v14 = vcombine.low %v1110_v63, %v1114_v1 }
 0x22b   :  { %6628 = vmatpush1.bf16.msra.mxu0 %v8947_v5  ;;  %6972 = vmatpush1.bf16.msra.mxu1 %v8949_v7  ;;  %v8997_v5 = vcombine.low %v1103_v55, %v1107_v56  ;;  %v9004_v7 = vcombine.high %v1110_v63, %v1114_v1  ;;  %v1155_v55 = vld [vmem:[#allocation5 + $0x1fe8] sm:$0xff]  ;;  %v140_v63 = vld [vmem:[#allocation5 + $0x30] sm:$0xff]  ;;  %v137_v1 = vld [vmem:[#allocation5 + $0x18] sm:$0xff] }
 0x22c   :  { %6629 = vmatprep.subr.bf16.mxu0 %v8956_v8  ;;  %6973 = vmatprep.subr.bf16.mxu1 %v8958_v9  ;;  %v9006_v8 = vcombine.high %v1111_v2, %v1115_v3  ;;  %v1118_v9 = vld [vmem:[#allocation5 + $0x1ec0] sm:$0xff] }
 0x22d   :  { %v9011_v23 = vcombine.low %v1118_v9, %v1122_v11 }
 0x22f   :  { %6630 = vmatpush1.bf16.msra.mxu0 %v8955_v16  ;;  %6974 = vmatpush1.bf16.msra.mxu1 %v8957_v17  ;;  %v9005_v16 = vcombine.low %v1111_v2, %v1115_v3  ;;  %v9012_v17 = vcombine.high %v1118_v9, %v1122_v11  ;;  %v141_v2 = vld [vmem:[#allocation5 + $0x38] sm:$0xff]  ;;  %v144_v11 = vld [vmem:[#allocation5 + $0x50] sm:$0xff] }
 0x230   :  { %6631 = vmatprep.subr.bf16.mxu0 %v8964_v18  ;;  %6975 = vmatprep.subr.bf16.mxu1 %v8966_v19  ;;  %v9014_v18 = vcombine.high %v1119_v12, %v1123_v13  ;;  %v1126_v19 = vld [vmem:[#allocation5 + $0x1f00] sm:$0xff]  ;;  %v8034_v9 = vcombine.high %v137_v1, %v141_v2 }
 0x231   :  { %v9019_v35 = vcombine.low %v1126_v19, %v1130_v20 }
 0x233   :  { %6632 = vmatpush1.bf16.msra.mxu0 %v8963_v24  ;;  %6976 = vmatpush1.bf16.msra.mxu1 %v8965_v28  ;;  %v9013_v24 = vcombine.low %v1119_v12, %v1123_v13  ;;  %v9020_v28 = vcombine.high %v1126_v19, %v1130_v20  ;;  %v148_v12 = vld [vmem:[#allocation5 + $0x70] sm:$0xff] }
 0x234   :  { %6633 = vmatprep.subr.bf16.mxu0 %v8972_v29  ;;  %6977 = vmatprep.subr.bf16.mxu1 %v8974_v30  ;;  %v9022_v29 = vcombine.high %v1127_v21, %v1131_v22  ;;  %v1134_v30 = vld [vmem:[#allocation5 + $0x1f40] sm:$0xff]  ;;  %v8040_v19 = vcombine.high %v144_v11, %v148_v12 }
 0x235   :  { %v9027_v47 = vcombine.low %v1134_v30, %v1138_v31 }
 0x237   :  { %6634 = vmatpush1.bf16.msra.mxu0 %v8971_v36  ;;  %6978 = vmatpush1.bf16.msra.mxu1 %v8973_v39  ;;  %v9021_v36 = vcombine.low %v1127_v21, %v1131_v22  ;;  %v9028_v39 = vcombine.high %v1134_v30, %v1138_v31  ;;  %v152_v21 = vld [vmem:[#allocation5 + $0x90] sm:$0xff] }
 0x238   :  { %6635 = vmatprep.subr.bf16.mxu0 %v8980_v40  ;;  %6979 = vmatprep.subr.bf16.mxu1 %v8982_v41  ;;  %v9030_v40 = vcombine.high %v1135_v32, %v1139_v34  ;;  %v1142_v41 = vld [vmem:[#allocation5 + $0x1f80] sm:$0xff]  ;;  %v156_v22 = vld [vmem:[#allocation5 + $0xb0] sm:$0xff] }
 0x239   :  { %v9035_v56 = vcombine.low %v1142_v41, %v1146_v42  ;;  %v8048_v30 = vcombine.high %v152_v21, %v156_v22 }
 0x23b   :  { %6636 = vmatpush1.bf16.msra.mxu0 %v8979_v48  ;;  %6980 = vmatpush1.bf16.msra.mxu1 %v8981_v49  ;;  %v9029_v48 = vcombine.low %v1135_v32, %v1139_v34  ;;  %v9036_v49 = vcombine.high %v1142_v41, %v1146_v42  ;;  %v160_v32 = vld [vmem:[#allocation5 + $0xd0] sm:$0xff] }
 0x23c   :  { %6637 = vmatprep.subr.bf16.mxu0 %v8988_v50  ;;  %6981 = vmatprep.subr.bf16.mxu1 %v8990_v51  ;;  %v9038_v50 = vcombine.high %v1143_v44, %v1147_v45  ;;  %v1150_v51 = vld [vmem:[#allocation5 + $0x1fc0] sm:$0xff]  ;;  %v164_v34 = vld [vmem:[#allocation5 + $0xf0] sm:$0xff] }
 0x23d   :  { %v9043_v3 = vcombine.low %v1150_v51, %v1154_v52  ;;  %v8056_v41 = vcombine.high %v160_v32, %v164_v34 }
 0x23f   :  { %6638 = vmatpush1.bf16.msra.mxu0 %v8987_v57  ;;  %6982 = vmatpush1.bf16.msra.mxu1 %v8989_v60  ;;  %v9037_v57 = vcombine.low %v1143_v44, %v1147_v45  ;;  %v9044_v60 = vcombine.high %v1150_v51, %v1154_v52  ;;  %v168_v44 = vld [vmem:[#allocation5 + $0x110] sm:$0xff] }
 0x240   :  { %6639 = vmatprep.subr.bf16.mxu0 %v8996_v61  ;;  %6983 = vmatprep.subr.bf16.mxu1 %v8998_v62  ;;  %v9046_v61 = vcombine.high %v1151_v54, %v1155_v55  ;;  %v136_v62 = vld [vmem:[#allocation5 + $0x10] sm:$0xff] }
 0x241   :  { %v172_v45 = vld [vmem:[#allocation5 + $0x130] sm:$0xff] }
 0x242   :  { %v8064_v51 = vcombine.high %v168_v44, %v172_v45  ;;  %v176_v52 = vld [vmem:[#allocation5 + $0x150] sm:$0xff] }
 0x243   :  { %6640 = vmatpush1.bf16.msra.mxu0 %v8995_v4  ;;  %6984 = vmatpush1.bf16.msra.mxu1 %v8997_v5  ;;  %v100_v4 = vld [vmem:[#allocation2 + $0x70] sm:$0xff] }
 0x244   :  { %6641 = vmatprep.subr.bf16.mxu0 %v9004_v7  ;;  %6985 = vmatprep.subr.bf16.mxu1 %v9006_v8  ;;  %v116_v5 = vld [vmem:[#allocation2 + $0xf0] sm:$0xff]  ;;  %v9045_v7 = vcombine.low %v1151_v54, %v1155_v55  ;;  %v8032_v8 = vcombine.high %v136_v62, %v140_v63  ;;  %v177_v55 = vld [vmem:[#allocation5 + $0x158] sm:$0xff] }
 0x245   :  { %v9521_v13 = vpack.c.bf16 %v116_v5, %v100_v4  ;;  %v180_v54 = vld [vmem:[#allocation5 + $0x170] sm:$0xff] }
 0x246   :  { %v8071_v4 = vcombine.low %v176_v52, %v180_v54 }
 0x247   :  { %6642 = vmatpush1.bf16.msra.mxu0 %v9003_v14  ;;  %6986 = vmatpush1.bf16.msra.mxu1 %v9005_v16  ;;  %v145_v14 = vld [vmem:[#allocation5 + $0x58] sm:$0xff] }
 0x248   :  { %6643 = vmatprep.subr.bf16.mxu0 %v9012_v17  ;;  %6987 = vmatprep.subr.bf16.mxu1 %v9014_v18  ;;  %v149_v16 = vld [vmem:[#allocation5 + $0x78] sm:$0xff]  ;;  %v8031_v17 = vcombine.low %v136_v62, %v140_v63  ;;  %v8033_v18 = vcombine.low %v137_v1, %v141_v2  ;;  %v184_v63 = vld [vmem:[#allocation5 + $0x190] sm:$0xff] }
 0x249   :  { %v8042_v20 = vcombine.high %v145_v14, %v149_v16  ;;  %v188_v1 = vld [vmem:[#allocation5 + $0x1b0] sm:$0xff]  ;;  %v185_v2 = vld [vmem:[#allocation5 + $0x198] sm:$0xff] }
 0x24b   :  { %6644 = vmatpush1.bf16.msra.mxu0 %v9011_v23  ;;  %6988 = vmatpush1.bf16.msra.mxu1 %v9013_v24  ;;  %v153_v23 = vld [vmem:[#allocation5 + $0x98] sm:$0xff] }
 0x24c   :  { %6645 = vmatprep.subr.bf16.mxu0 %v9020_v28  ;;  %6989 = vmatprep.subr.bf16.mxu1 %v9022_v29  ;;  %v157_v24 = vld [vmem:[#allocation5 + $0xb8] sm:$0xff]  ;;  %v8039_v28 = vcombine.low %v144_v11, %v148_v12  ;;  %v8041_v29 = vcombine.low %v145_v14, %v149_v16  ;;  %v196_v11 = vld [vmem:[#allocation5 + $0x1f0] sm:$0xff]  ;;  %v8079_v16 = vcombine.low %v184_v63, %v188_v1 }
 0x24d   :  { %v8050_v31 = vcombine.high %v153_v23, %v157_v24  ;;  %v193_v12 = vld [vmem:[#allocation5 + $0x1d8] sm:$0xff] }
 0x24e   :  { %v197_v14 = vld [vmem:[#allocation5 + $0x1f8] sm:$0xff] }
 0x24f   :  { %6646 = vmatpush1.bf16.msra.mxu0 %v9019_v35  ;;  %6990 = vmatpush1.bf16.msra.mxu1 %v9021_v36  ;;  %v161_v35 = vld [vmem:[#allocation5 + $0xd8] sm:$0xff] }
 0x250   :  { %6647 = vmatprep.subr.bf16.mxu0 %v9028_v39  ;;  %6991 = vmatprep.subr.bf16.mxu1 %v9030_v40  ;;  %v165_v36 = vld [vmem:[#allocation5 + $0xf8] sm:$0xff]  ;;  %v8047_v39 = vcombine.low %v152_v21, %v156_v22  ;;  %v8049_v40 = vcombine.low %v153_v23, %v157_v24  ;;  %v204_v21 = vld [vmem:[#allocation5 + $0x230] sm:$0xff] }
 0x251   :  { %v8058_v42 = vcombine.high %v161_v35, %v165_v36  ;;  %v201_v22 = vld [vmem:[#allocation5 + $0x218] sm:$0xff] }
 0x252   :  { %v205_v23 = vld [vmem:[#allocation5 + $0x238] sm:$0xff] }
 0x253   :  { %6648 = vmatpush1.bf16.msra.mxu0 %v9027_v47  ;;  %6992 = vmatpush1.bf16.msra.mxu1 %v9029_v48  ;;  %v169_v47 = vld [vmem:[#allocation5 + $0x118] sm:$0xff] }
 0x254   :  { %6649 = vmatprep.subr.bf16.mxu0 %v9036_v49  ;;  %6993 = vmatprep.subr.bf16.mxu1 %v9038_v50  ;;  %v173_v48 = vld [vmem:[#allocation5 + $0x138] sm:$0xff]  ;;  %v8055_v49 = vcombine.low %v160_v32, %v164_v34  ;;  %v8057_v50 = vcombine.low %v161_v35, %v165_v36  ;;  %v212_v32 = vld [vmem:[#allocation5 + $0x270] sm:$0xff] }
 0x255   :  { %v209_v34 = vld [vmem:[#allocation5 + $0x258] sm:$0xff] }
 0x256   :  { %v213_v35 = vld [vmem:[#allocation5 + $0x278] sm:$0xff] }
 0x257   :  { %6650 = vmatpush1.bf16.msra.mxu0 %v9035_v56  ;;  %6994 = vmatpush1.bf16.msra.mxu1 %v9037_v57  ;;  %v181_v56 = vld [vmem:[#allocation5 + $0x178] sm:$0xff]  ;;  %v8063_v57 = vcombine.low %v168_v44, %v172_v45  ;;  %v220_v44 = vld [vmem:[#allocation5 + $0x2b0] sm:$0xff] }
 0x258   :  { %6651 = vmatprep.subr.bf16.mxu0 %v9044_v60  ;;  %6995 = vmatprep.subr.bf16.mxu1 %v9046_v61  ;;  %v8065_v60 = vcombine.low %v169_v47, %v173_v48  ;;  %v8072_v61 = vcombine.high %v176_v52, %v180_v54  ;;  %v8074_v62 = vcombine.high %v177_v55, %v181_v56  ;;  %v217_v45 = vld [vmem:[#allocation5 + $0x298] sm:$0xff]  ;;  %v228_v52 = vld [vmem:[#allocation5 + $0x2f0] sm:$0xff] }
 0x259   :  { %v8073_v5 = vcombine.low %v177_v55, %v181_v56  ;;  %v225_v54 = vld [vmem:[#allocation5 + $0x2d8] sm:$0xff] }
 0x25a   :  { %v229_v55 = vld [vmem:[#allocation5 + $0x2f8] sm:$0xff] }
 0x25b   :  { %6652 = vmatpush1.bf16.msra.mxu0 %v9043_v3  ;;  %6996 = vmatpush1.bf16.msra.mxu1 %v9045_v7  ;;  %v189_v3 = vld [vmem:[#allocation5 + $0x1b8] sm:$0xff]  ;;  %v8080_v7 = vcombine.high %v184_v63, %v188_v1  ;;  %v236_v63 = vld [vmem:[#allocation5 + $0x330] sm:$0xff] }
 0x25c   :  { %7008 = vmatprep.subr.bf16.mxu0 %v8032_v8  ;;  %7352 = vmatprep.subr.bf16.mxu1 %v8034_v9  ;;  %v8082_v8 = vcombine.high %v185_v2, %v189_v3  ;;  %v192_v9 = vld [vmem:[#allocation5 + $0x1d0] sm:$0xff]  ;;  %v233_v1 = vld [vmem:[#allocation5 + $0x318] sm:$0xff] }
 0x25d   :  { %v8087_v24 = vcombine.low %v192_v9, %v196_v11 }
 0x25e   :  { %6654 = vmatmul.mubr.bf16.vlgmr.msra.gmra.mrb[0].mxu0 %v9521_v13  ;;  %6998 = vmatmul.mubr.bf16.vlgmr.msra.gmra.mrb[0].mxu1 %v9521_v13 }
 0x25f   :  { %7009 = vmatpush1.bf16.msra.mxu0 %v8031_v17  ;;  %7353 = vmatpush1.bf16.msra.mxu1 %v8033_v18  ;;  %v8081_v17 = vcombine.low %v185_v2, %v189_v3  ;;  %v8088_v18 = vcombine.high %v192_v9, %v196_v11  ;;  %v237_v2 = vld [vmem:[#allocation5 + $0x338] sm:$0xff]  ;;  %v244_v9 = vld [vmem:[#allocation5 + $0x370] sm:$0xff] }
 0x260   :  { %7010 = vmatprep.subr.bf16.mxu0 %v8040_v19  ;;  %7354 = vmatprep.subr.bf16.mxu1 %v8042_v20  ;;  %v8090_v19 = vcombine.high %v193_v12, %v197_v14  ;;  %v200_v20 = vld [vmem:[#allocation5 + $0x210] sm:$0xff]  ;;  %v241_v11 = vld [vmem:[#allocation5 + $0x358] sm:$0xff] }
 0x261   :  { %7040 = vmatprep.mubr.bf16.mxu0 %v9461_v58  ;;  %7384 = vmatprep.mubr.bf16.mxu1 %v9461_v58  ;;  %v8066_v58 = vcombine.high %v169_v47, %v173_v48  ;;  %v8095_v36 = vcombine.low %v200_v20, %v204_v21  ;;  %v221_v47 = vld [vmem:[#allocation5 + $0x2b8] sm:$0xff] }
 0x263   :  { %7011 = vmatpush1.bf16.msra.mxu0 %v8039_v28  ;;  %7355 = vmatpush1.bf16.msra.mxu1 %v8041_v29  ;;  %v8089_v28 = vcombine.low %v193_v12, %v197_v14  ;;  %v8096_v29 = vcombine.high %v200_v20, %v204_v21  ;;  %v245_v12 = vld [vmem:[#allocation5 + $0x378] sm:$0xff]  ;;  %v252_v20 = vld [vmem:[#allocation5 + $0x3b0] sm:$0xff] }
 0x264   :  { %7012 = vmatprep.subr.bf16.mxu0 %v8048_v30  ;;  %7356 = vmatprep.subr.bf16.mxu1 %v8050_v31  ;;  %v8098_v30 = vcombine.high %v201_v22, %v205_v23  ;;  %v208_v31 = vld [vmem:[#allocation5 + $0x250] sm:$0xff]  ;;  %v249_v21 = vld [vmem:[#allocation5 + $0x398] sm:$0xff] }
 0x265   :  { %v8103_v48 = vcombine.low %v208_v31, %v212_v32 }
 0x267   :  { %7013 = vmatpush1.bf16.msra.mxu0 %v8047_v39  ;;  %7357 = vmatpush1.bf16.msra.mxu1 %v8049_v40  ;;  %v8097_v39 = vcombine.low %v201_v22, %v205_v23  ;;  %v8104_v40 = vcombine.high %v208_v31, %v212_v32  ;;  %v253_v22 = vld [vmem:[#allocation5 + $0x3b8] sm:$0xff]  ;;  %v260_v31 = vld [vmem:[#allocation5 + $0x3f0] sm:$0xff] }
 0x268   :  { %7014 = vmatprep.subr.bf16.mxu0 %v8056_v41  ;;  %7358 = vmatprep.subr.bf16.mxu1 %v8058_v42  ;;  %v8106_v41 = vcombine.high %v209_v34, %v213_v35  ;;  %v216_v42 = vld [vmem:[#allocation5 + $0x290] sm:$0xff]  ;;  %v257_v32 = vld [vmem:[#allocation5 + $0x3d8] sm:$0xff] }
 0x269   :  { %v8111_v56 = vcombine.low %v216_v42, %v220_v44 }
 0x26b   :  { %7015 = vmatpush1.bf16.msra.mxu0 %v8055_v49  ;;  %7359 = vmatpush1.bf16.msra.mxu1 %v8057_v50  ;;  %v8105_v49 = vcombine.low %v209_v34, %v213_v35  ;;  %v8112_v50 = vcombine.high %v216_v42, %v220_v44  ;;  %v261_v34 = vld [vmem:[#allocation5 + $0x3f8] sm:$0xff]  ;;  %v268_v42 = vld [vmem:[#allocation5 + $0x430] sm:$0xff] }
 0x26c   :  { %7016 = vmatprep.subr.bf16.mxu0 %v8064_v51  ;;  %7360 = vmatprep.subr.bf16.mxu1 %v8066_v58  ;;  %v8114_v51 = vcombine.high %v217_v45, %v221_v47  ;;  %v224_v58 = vld [vmem:[#allocation5 + $0x2d0] sm:$0xff]  ;;  %v265_v44 = vld [vmem:[#allocation5 + $0x418] sm:$0xff] }
 0x26d   :  { %v8119_v3 = vcombine.low %v224_v58, %v228_v52 }
 0x26f   :  { %7017 = vmatpush1.bf16.msra.mxu0 %v8063_v57  ;;  %7361 = vmatpush1.bf16.msra.mxu1 %v8065_v60  ;;  %v8113_v57 = vcombine.low %v217_v45, %v221_v47  ;;  %v8120_v60 = vcombine.high %v224_v58, %v228_v52  ;;  %v269_v45 = vld [vmem:[#allocation5 + $0x438] sm:$0xff]  ;;  %v276_v58 = vld [vmem:[#allocation5 + $0x470] sm:$0xff] }
 0x270   :  { %7018 = vmatprep.subr.bf16.mxu0 %v8072_v61  ;;  %7362 = vmatprep.subr.bf16.mxu1 %v8074_v62  ;;  %v8122_v61 = vcombine.high %v225_v54, %v229_v55  ;;  %v232_v62 = vld [vmem:[#allocation5 + $0x310] sm:$0xff]  ;;  %v273_v52 = vld [vmem:[#allocation5 + $0x458] sm:$0xff] }
 0x271   :  { %v8127_v14 = vcombine.low %v232_v62, %v236_v63 }
 0x273   :  { %7019 = vmatpush1.bf16.msra.mxu0 %v8071_v4  ;;  %7363 = vmatpush1.bf16.msra.mxu1 %v8073_v5  ;;  %v8121_v4 = vcombine.low %v225_v54, %v229_v55  ;;  %v8128_v5 = vcombine.high %v232_v62, %v236_v63  ;;  %v277_v54 = vld [vmem:[#allocation5 + $0x478] sm:$0xff]  ;;  %v284_v62 = vld [vmem:[#allocation5 + $0x4b0] sm:$0xff] }
 0x274   :  { %7020 = vmatprep.subr.bf16.mxu0 %v8080_v7  ;;  %7364 = vmatprep.subr.bf16.mxu1 %v8082_v8  ;;  %v8130_v7 = vcombine.high %v233_v1, %v237_v2  ;;  %v240_v8 = vld [vmem:[#allocation5 + $0x350] sm:$0xff]  ;;  %v281_v63 = vld [vmem:[#allocation5 + $0x498] sm:$0xff] }
 0x275   :  { %v8135_v23 = vcombine.low %v240_v8, %v244_v9 }
 0x277   :  { %7021 = vmatpush1.bf16.msra.mxu0 %v8079_v16  ;;  %7365 = vmatpush1.bf16.msra.mxu1 %v8081_v17  ;;  %v8129_v16 = vcombine.low %v233_v1, %v237_v2  ;;  %v8136_v17 = vcombine.high %v240_v8, %v244_v9  ;;  %v285_v1 = vld [vmem:[#allocation5 + $0x4b8] sm:$0xff]  ;;  %v292_v8 = vld [vmem:[#allocation5 + $0x4f0] sm:$0xff] }
 0x278   :  { %7022 = vmatprep.subr.bf16.mxu0 %v8088_v18  ;;  %7366 = vmatprep.subr.bf16.mxu1 %v8090_v19  ;;  %v8138_v18 = vcombine.high %v241_v11, %v245_v12  ;;  %v248_v19 = vld [vmem:[#allocation5 + $0x390] sm:$0xff]  ;;  %v289_v9 = vld [vmem:[#allocation5 + $0x4d8] sm:$0xff] }
 0x279   :  { %v8143_v35 = vcombine.low %v248_v19, %v252_v20 }
 0x27b   :  { %7023 = vmatpush1.bf16.msra.mxu0 %v8087_v24  ;;  %7367 = vmatpush1.bf16.msra.mxu1 %v8089_v28  ;;  %v8137_v24 = vcombine.low %v241_v11, %v245_v12  ;;  %v8144_v28 = vcombine.high %v248_v19, %v252_v20  ;;  %v293_v11 = vld [vmem:[#allocation5 + $0x4f8] sm:$0xff] }
 0x27c   :  { %7024 = vmatprep.subr.bf16.mxu0 %v8096_v29  ;;  %7368 = vmatprep.subr.bf16.mxu1 %v8098_v30  ;;  %v8146_v29 = vcombine.high %v249_v21, %v253_v22  ;;  %v256_v30 = vld [vmem:[#allocation5 + $0x3d0] sm:$0xff]  ;;  %v297_v19 = vld [vmem:[#allocation5 + $0x518] sm:$0xff] }
 0x27d   :  { %v8151_v47 = vcombine.low %v256_v30, %v260_v31  ;;  %v301_v20 = vld [vmem:[#allocation5 + $0x538] sm:$0xff] }
 0x27f   :  { %7025 = vmatpush1.bf16.msra.mxu0 %v8095_v36  ;;  %7369 = vmatpush1.bf16.msra.mxu1 %v8097_v39  ;;  %v8145_v36 = vcombine.low %v249_v21, %v253_v22  ;;  %v8152_v39 = vcombine.high %v256_v30, %v260_v31  ;;  %v8185_v22 = vcombine.low %v289_v9, %v293_v11  ;;  %v309_v30 = vld [vmem:[#allocation5 + $0x578] sm:$0xff] }
 0x280   :  { %7026 = vmatprep.subr.bf16.mxu0 %v8104_v40  ;;  %7370 = vmatprep.subr.bf16.mxu1 %v8106_v41  ;;  %v8154_v40 = vcombine.high %v257_v32, %v261_v34  ;;  %v264_v41 = vld [vmem:[#allocation5 + $0x410] sm:$0xff] }
 0x281   :  { %v8159_v55 = vcombine.low %v264_v41, %v268_v42 }
 0x283   :  { %7027 = vmatpush1.bf16.msra.mxu0 %v8103_v48  ;;  %7371 = vmatpush1.bf16.msra.mxu1 %v8105_v49  ;;  %v8153_v48 = vcombine.low %v257_v32, %v261_v34  ;;  %v8160_v49 = vcombine.high %v264_v41, %v268_v42  ;;  %v8193_v32 = vcombine.low %v297_v19, %v301_v20  ;;  %v317_v41 = vld [vmem:[#allocation5 + $0x5b8] sm:$0xff] }
 0x284   :  { %7028 = vmatprep.subr.bf16.mxu0 %v8112_v50  ;;  %7372 = vmatprep.subr.bf16.mxu1 %v8114_v51  ;;  %v8162_v50 = vcombine.high %v265_v44, %v269_v45  ;;  %v272_v51 = vld [vmem:[#allocation5 + $0x450] sm:$0xff] }
 0x285   :  { %v8167_v2 = vcombine.low %v272_v51, %v276_v58 }
 0x287   :  { %7029 = vmatpush1.bf16.msra.mxu0 %v8111_v56  ;;  %7373 = vmatpush1.bf16.msra.mxu1 %v8113_v57  ;;  %v8161_v56 = vcombine.low %v265_v44, %v269_v45  ;;  %v8168_v57 = vcombine.high %v272_v51, %v276_v58  ;;  %v325_v51 = vld [vmem:[#allocation5 + $0x5f8] sm:$0xff] }
 0x288   :  { %7030 = vmatprep.subr.bf16.mxu0 %v8120_v60  ;;  %7374 = vmatprep.subr.bf16.mxu1 %v8122_v61  ;;  %v8170_v60 = vcombine.high %v273_v52, %v277_v54  ;;  %v280_v61 = vld [vmem:[#allocation5 + $0x490] sm:$0xff] }
 0x289   :  { %v8175_v12 = vcombine.low %v280_v61, %v284_v62 }
 0x28b   :  { %7031 = vmatpush1.bf16.msra.mxu0 %v8119_v3  ;;  %7375 = vmatpush1.bf16.msra.mxu1 %v8121_v4  ;;  %v8169_v3 = vcombine.low %v273_v52, %v277_v54  ;;  %v8176_v4 = vcombine.high %v280_v61, %v284_v62  ;;  %v333_v61 = vld [vmem:[#allocation5 + $0x638] sm:$0xff] }
 0x28c   :  { %7032 = vmatprep.subr.bf16.mxu0 %v8128_v5  ;;  %7376 = vmatprep.subr.bf16.mxu1 %v8130_v7  ;;  %v8178_v5 = vcombine.high %v281_v63, %v285_v1  ;;  %v288_v7 = vld [vmem:[#allocation5 + $0x4d0] sm:$0xff] }
 0x28d   :  { %v8183_v21 = vcombine.low %v288_v7, %v292_v8 }
 0x28f   :  { %7033 = vmatpush1.bf16.msra.mxu0 %v8127_v14  ;;  %7377 = vmatpush1.bf16.msra.mxu1 %v8129_v16  ;;  %v8184_v14 = vcombine.high %v288_v7, %v292_v8  ;;  %v8186_v16 = vcombine.high %v289_v9, %v293_v11  ;;  %v341_v7 = vld [vmem:[#allocation5 + $0x678] sm:$0xff] }
 0x290   :  { %7034 = vmatprep.subr.bf16.mxu0 %v8136_v17  ;;  %7378 = vmatprep.subr.bf16.mxu1 %v8138_v18  ;;  %v296_v17 = vld [vmem:[#allocation5 + $0x510] sm:$0xff] }
 0x291   :  { %v300_v18 = vld [vmem:[#allocation5 + $0x530] sm:$0xff] }
 0x292   :  { %v8191_v31 = vcombine.low %v296_v17, %v300_v18 }
 0x293   :  { %7035 = vmatpush1.bf16.msra.mxu0 %v8135_v23  ;;  %7379 = vmatpush1.bf16.msra.mxu1 %v8137_v24  ;;  %v8192_v23 = vcombine.high %v296_v17, %v300_v18  ;;  %v304_v24 = vld [vmem:[#allocation5 + $0x550] sm:$0xff]  ;;  %v349_v17 = vld [vmem:[#allocation5 + $0x6b8] sm:$0xff] }
 0x294   :  { %7036 = vmatprep.subr.bf16.mxu0 %v8144_v28  ;;  %7380 = vmatprep.subr.bf16.mxu1 %v8146_v29  ;;  %v308_v28 = vld [vmem:[#allocation5 + $0x570] sm:$0xff]  ;;  %v305_v29 = vld [vmem:[#allocation5 + $0x558] sm:$0xff] }
 0x295   :  { %v8200_v34 = vcombine.high %v304_v24, %v308_v28  ;;  %v8199_v42 = vcombine.low %v304_v24, %v308_v28  ;;  %v8201_v44 = vcombine.low %v305_v29, %v309_v30  ;;  %v357_v24 = vld [vmem:[#allocation5 + $0x6f8] sm:$0xff] }
 0x297   :  { %7037 = vmatpush1.bf16.msra.mxu0 %v8143_v35  ;;  %7381 = vmatpush1.bf16.msra.mxu1 %v8145_v36  ;;  %v8202_v35 = vcombine.high %v305_v29, %v309_v30  ;;  %v312_v36 = vld [vmem:[#allocation5 + $0x590] sm:$0xff] }
 0x298   :  { %7038 = vmatprep.subr.bf16.mxu0 %v8152_v39  ;;  %7382 = vmatprep.subr.bf16.mxu1 %v8154_v40  ;;  %v316_v39 = vld [vmem:[#allocation5 + $0x5b0] sm:$0xff]  ;;  %v313_v40 = vld [vmem:[#allocation5 + $0x598] sm:$0xff] }
 0x299   :  { %v8208_v45 = vcombine.high %v312_v36, %v316_v39  ;;  %v8207_v58 = vcombine.low %v312_v36, %v316_v39  ;;  %v8209_v52 = vcombine.low %v313_v40, %v317_v41  ;;  %v365_v36 = vld [vmem:[#allocation5 + $0x738] sm:$0xff] }
 0x29b   :  { %7039 = vmatpush1.bf16.msra.mxu0 %v8151_v47  ;;  %7383 = vmatpush1.bf16.msra.mxu1 %v8153_v48  ;;  %v8210_v47 = vcombine.high %v313_v40, %v317_v41  ;;  %v320_v48 = vld [vmem:[#allocation5 + $0x5d0] sm:$0xff] }
 0x29c   :  { %7051 = vmatprep.subr.bf16.mxu0 %v8160_v49  ;;  %7395 = vmatprep.subr.bf16.mxu1 %v8162_v50  ;;  %v324_v49 = vld [vmem:[#allocation5 + $0x5f0] sm:$0xff]  ;;  %v321_v50 = vld [vmem:[#allocation5 + $0x5d8] sm:$0xff] }
 0x29d   :  { %v8216_v54 = vcombine.high %v320_v48, %v324_v49  ;;  %v8215_v62 = vcombine.low %v320_v48, %v324_v49  ;;  %v373_v48 = vld [vmem:[#allocation5 + $0x778] sm:$0xff] }
 0x29e   :  { %7041 = vmatmul.mubr.bf16.vlgmr.msra.gmra.mrb[4].mxu0 %v9465_v15  ;;  %7385 = vmatmul.mubr.bf16.vlgmr.msra.gmra.mrb[4].mxu1 %v9465_v15  ;;  %v8177_v15 = vcombine.low %v281_v63, %v285_v1  ;;  %v8217_v63 = vcombine.low %v321_v50, %v325_v51 }
 0x29f   :  { %7052 = vmatpush1.bf16.msra.mxu0 %v8159_v55  ;;  %7396 = vmatpush1.bf16.msra.mxu1 %v8161_v56  ;;  %v8218_v55 = vcombine.high %v321_v50, %v325_v51  ;;  %v328_v56 = vld [vmem:[#allocation5 + $0x610] sm:$0xff] }
 0x2a0   :  { %7053 = vmatprep.subr.bf16.mxu0 %v8168_v57  ;;  %7397 = vmatprep.subr.bf16.mxu1 %v8170_v60  ;;  %v332_v57 = vld [vmem:[#allocation5 + $0x630] sm:$0xff]  ;;  %v329_v60 = vld [vmem:[#allocation5 + $0x618] sm:$0xff] }
 0x2a1   :  { %7083 = vmatprep.mubr.bf16.mxu0 %v9467_v25  ;;  %7427 = vmatprep.mubr.bf16.mxu1 %v9467_v25  ;;  %v8194_v25 = vcombine.high %v297_v19, %v301_v20  ;;  %v8224_v1 = vcombine.high %v328_v56, %v332_v57  ;;  %v8223_v8 = vcombine.low %v328_v56, %v332_v57  ;;  %v381_v56 = vld [vmem:[#allocation5 + $0x7b8] sm:$0xff] }
 0x2a2   :  { %v8225_v9 = vcombine.low %v329_v60, %v333_v61 }
 0x2a3   :  { %7054 = vmatpush1.bf16.msra.mxu0 %v8167_v2  ;;  %7398 = vmatpush1.bf16.msra.mxu1 %v8169_v3  ;;  %v8226_v2 = vcombine.high %v329_v60, %v333_v61  ;;  %v336_v3 = vld [vmem:[#allocation5 + $0x650] sm:$0xff] }
 0x2a4   :  { %7055 = vmatprep.subr.bf16.mxu0 %v8176_v4  ;;  %7399 = vmatprep.subr.bf16.mxu1 %v8178_v5  ;;  %v340_v4 = vld [vmem:[#allocation5 + $0x670] sm:$0xff]  ;;  %v337_v5 = vld [vmem:[#allocation5 + $0x658] sm:$0xff] }
 0x2a5   :  { %v8232_v11 = vcombine.high %v336_v3, %v340_v4  ;;  %v8231_v18 = vcombine.low %v336_v3, %v340_v4  ;;  %v8233_v19 = vcombine.low %v337_v5, %v341_v7  ;;  %v389_v3 = vld [vmem:[#allocation5 + $0x7f8] sm:$0xff] }
 0x2a7   :  { %7056 = vmatpush1.bf16.msra.mxu0 %v8175_v12  ;;  %7400 = vmatpush1.bf16.msra.mxu1 %v8177_v15  ;;  %v8234_v12 = vcombine.high %v337_v5, %v341_v7  ;;  %v344_v15 = vld [vmem:[#allocation5 + $0x690] sm:$0xff] }
 0x2a8   :  { %7057 = vmatprep.subr.bf16.mxu0 %v8184_v14  ;;  %7401 = vmatprep.subr.bf16.mxu1 %v8186_v16  ;;  %v348_v14 = vld [vmem:[#allocation5 + $0x6b0] sm:$0xff]  ;;  %v345_v16 = vld [vmem:[#allocation5 + $0x698] sm:$0xff] }
 0x2a9   :  { %v8240_v20 = vcombine.high %v344_v15, %v348_v14  ;;  %v8239_v28 = vcombine.low %v344_v15, %v348_v14  ;;  %v8241_v29 = vcombine.low %v345_v16, %v349_v17  ;;  %v397_v15 = vld [vmem:[#allocation5 + $0x838] sm:$0xff] }
 0x2ab   :  { %7058 = vmatpush1.bf16.msra.mxu0 %v8183_v21  ;;  %7402 = vmatpush1.bf16.msra.mxu1 %v8185_v22  ;;  %v8242_v21 = vcombine.high %v345_v16, %v349_v17  ;;  %v352_v22 = vld [vmem:[#allocation5 + $0x6d0] sm:$0xff] }
 0x2ac   :  { %7059 = vmatprep.subr.bf16.mxu0 %v8192_v23  ;;  %7403 = vmatprep.subr.bf16.mxu1 %v8194_v25  ;;  %v356_v23 = vld [vmem:[#allocation5 + $0x6f0] sm:$0xff]  ;;  %v353_v25 = vld [vmem:[#allocation5 + $0x6d8] sm:$0xff] }
 0x2ad   :  { %v8248_v30 = vcombine.high %v352_v22, %v356_v23  ;;  %v8247_v39 = vcombine.low %v352_v22, %v356_v23  ;;  %v8249_v40 = vcombine.low %v353_v25, %v357_v24  ;;  %v405_v22 = vld [vmem:[#allocation5 + $0x878] sm:$0xff] }
 0x2af   :  { %7060 = vmatpush1.bf16.msra.mxu0 %v8191_v31  ;;  %7404 = vmatpush1.bf16.msra.mxu1 %v8193_v32  ;;  %v8250_v31 = vcombine.high %v353_v25, %v357_v24  ;;  %v360_v32 = vld [vmem:[#allocation5 + $0x710] sm:$0xff] }
 0x2b0   :  { %7061 = vmatprep.subr.bf16.mxu0 %v8200_v34  ;;  %7405 = vmatprep.subr.bf16.mxu1 %v8202_v35  ;;  %v364_v34 = vld [vmem:[#allocation5 + $0x730] sm:$0xff]  ;;  %v361_v35 = vld [vmem:[#allocation5 + $0x718] sm:$0xff] }
 0x2b1   :  { %v8256_v41 = vcombine.high %v360_v32, %v364_v34  ;;  %v8255_v49 = vcombine.low %v360_v32, %v364_v34  ;;  %v8257_v50 = vcombine.low %v361_v35, %v365_v36  ;;  %v413_v32 = vld [vmem:[#allocation5 + $0x8b8] sm:$0xff] }
 0x2b3   :  { %7062 = vmatpush1.bf16.msra.mxu0 %v8199_v42  ;;  %7406 = vmatpush1.bf16.msra.mxu1 %v8201_v44  ;;  %v8258_v42 = vcombine.high %v361_v35, %v365_v36  ;;  %v368_v44 = vld [vmem:[#allocation5 + $0x750] sm:$0xff] }
 0x2b4   :  { %7063 = vmatprep.subr.bf16.mxu0 %v8208_v45  ;;  %7407 = vmatprep.subr.bf16.mxu1 %v8210_v47  ;;  %v372_v45 = vld [vmem:[#allocation5 + $0x770] sm:$0xff]  ;;  %v369_v47 = vld [vmem:[#allocation5 + $0x758] sm:$0xff] }
 0x2b5   :  { %v8264_v51 = vcombine.high %v368_v44, %v372_v45  ;;  %v8263_v57 = vcombine.low %v368_v44, %v372_v45  ;;  %v8265_v60 = vcombine.low %v369_v47, %v373_v48  ;;  %v421_v44 = vld [vmem:[#allocation5 + $0x8f8] sm:$0xff] }
 0x2b7   :  { %7064 = vmatpush1.bf16.msra.mxu0 %v8207_v58  ;;  %7408 = vmatpush1.bf16.msra.mxu1 %v8209_v52  ;;  %v8266_v58 = vcombine.high %v369_v47, %v373_v48  ;;  %v376_v52 = vld [vmem:[#allocation5 + $0x790] sm:$0xff] }
 0x2b8   :  { %7065 = vmatprep.subr.bf16.mxu0 %v8216_v54  ;;  %7409 = vmatprep.subr.bf16.mxu1 %v8218_v55  ;;  %v380_v54 = vld [vmem:[#allocation5 + $0x7b0] sm:$0xff]  ;;  %v377_v55 = vld [vmem:[#allocation5 + $0x798] sm:$0xff] }
 0x2b9   :  { %v8272_v61 = vcombine.high %v376_v52, %v380_v54  ;;  %v8271_v4 = vcombine.low %v376_v52, %v380_v54  ;;  %v8273_v5 = vcombine.low %v377_v55, %v381_v56 }
 0x2bb   :  { %7066 = vmatpush1.bf16.msra.mxu0 %v8215_v62  ;;  %7410 = vmatpush1.bf16.msra.mxu1 %v8217_v63  ;;  %v8274_v62 = vcombine.high %v377_v55, %v381_v56  ;;  %v384_v63 = vld [vmem:[#allocation5 + $0x7d0] sm:$0xff] }
 0x2bc   :  { %7067 = vmatprep.subr.bf16.mxu0 %v8224_v1  ;;  %7411 = vmatprep.subr.bf16.mxu1 %v8226_v2  ;;  %v388_v1 = vld [vmem:[#allocation5 + $0x7f0] sm:$0xff]  ;;  %v385_v2 = vld [vmem:[#allocation5 + $0x7d8] sm:$0xff] }
 0x2bd   :  { %v8280_v7 = vcombine.high %v384_v63, %v388_v1  ;;  %v8279_v14 = vcombine.low %v384_v63, %v388_v1  ;;  %v8281_v16 = vcombine.low %v385_v2, %v389_v3  ;;  %v432_v56 = vld [vmem:[#allocation5 + $0x950] sm:$0xff] }
 0x2bf   :  { %7068 = vmatpush1.bf16.msra.mxu0 %v8223_v8  ;;  %7412 = vmatpush1.bf16.msra.mxu1 %v8225_v9  ;;  %v8282_v8 = vcombine.high %v385_v2, %v389_v3  ;;  %v392_v9 = vld [vmem:[#allocation5 + $0x810] sm:$0xff] }
 0x2c0   :  { %7069 = vmatprep.subr.bf16.mxu0 %v8232_v11  ;;  %7413 = vmatprep.subr.bf16.mxu1 %v8234_v12  ;;  %v396_v11 = vld [vmem:[#allocation5 + $0x830] sm:$0xff]  ;;  %v393_v12 = vld [vmem:[#allocation5 + $0x818] sm:$0xff] }
 0x2c1   :  { %v8288_v17 = vcombine.high %v392_v9, %v396_v11  ;;  %v8287_v23 = vcombine.low %v392_v9, %v396_v11  ;;  %v8289_v25 = vcombine.low %v393_v12, %v397_v15  ;;  %v440_v3 = vld [vmem:[#allocation5 + $0x990] sm:$0xff] }
 0x2c3   :  { %7070 = vmatpush1.bf16.msra.mxu0 %v8231_v18  ;;  %7414 = vmatpush1.bf16.msra.mxu1 %v8233_v19  ;;  %v8290_v18 = vcombine.high %v393_v12, %v397_v15  ;;  %v400_v19 = vld [vmem:[#allocation5 + $0x850] sm:$0xff] }
 0x2c4   :  { %7071 = vmatprep.subr.bf16.mxu0 %v8240_v20  ;;  %7415 = vmatprep.subr.bf16.mxu1 %v8242_v21  ;;  %v404_v20 = vld [vmem:[#allocation5 + $0x870] sm:$0xff]  ;;  %v401_v21 = vld [vmem:[#allocation5 + $0x858] sm:$0xff] }
 0x2c5   :  { %v8296_v24 = vcombine.high %v400_v19, %v404_v20  ;;  %v8295_v34 = vcombine.low %v400_v19, %v404_v20  ;;  %v8297_v35 = vcombine.low %v401_v21, %v405_v22  ;;  %v448_v15 = vld [vmem:[#allocation5 + $0x9d0] sm:$0xff] }
 0x2c7   :  { %7072 = vmatpush1.bf16.msra.mxu0 %v8239_v28  ;;  %7416 = vmatpush1.bf16.msra.mxu1 %v8241_v29  ;;  %v8298_v28 = vcombine.high %v401_v21, %v405_v22  ;;  %v408_v29 = vld [vmem:[#allocation5 + $0x890] sm:$0xff] }
 0x2c8   :  { %7073 = vmatprep.subr.bf16.mxu0 %v8248_v30  ;;  %7417 = vmatprep.subr.bf16.mxu1 %v8250_v31  ;;  %v412_v30 = vld [vmem:[#allocation5 + $0x8b0] sm:$0xff]  ;;  %v409_v31 = vld [vmem:[#allocation5 + $0x898] sm:$0xff] }
 0x2c9   :  { %v8304_v36 = vcombine.high %v408_v29, %v412_v30  ;;  %v8303_v45 = vcombine.low %v408_v29, %v412_v30  ;;  %v456_v22 = vld [vmem:[#allocation5 + $0xa10] sm:$0xff] }
 0x2cb   :  { %7074 = vmatpush1.bf16.msra.mxu0 %v8247_v39  ;;  %7418 = vmatpush1.bf16.msra.mxu1 %v8249_v40  ;;  %v8306_v39 = vcombine.high %v409_v31, %v413_v32  ;;  %v416_v40 = vld [vmem:[#allocation5 + $0x8d0] sm:$0xff] }
 0x2cc   :  { %7075 = vmatprep.subr.bf16.mxu0 %v8256_v41  ;;  %7419 = vmatprep.subr.bf16.mxu1 %v8258_v42  ;;  %v420_v41 = vld [vmem:[#allocation5 + $0x8f0] sm:$0xff]  ;;  %v417_v42 = vld [vmem:[#allocation5 + $0x8d8] sm:$0xff] }
 0x2cd   :  { %v8312_v47 = vcombine.high %v416_v40, %v420_v41  ;;  %v8314_v48 = vcombine.high %v417_v42, %v421_v44  ;;  %v8311_v52 = vcombine.low %v416_v40, %v420_v41  ;;  %v8313_v54 = vcombine.low %v417_v42, %v421_v44  ;;  %v472_v44 = vld [vmem:[#allocation5 + $0xa90] sm:$0xff] }
 0x2cf   :  { %7076 = vmatpush1.bf16.msra.mxu0 %v8255_v49  ;;  %7420 = vmatpush1.bf16.msra.mxu1 %v8257_v50  ;;  %v424_v49 = vld [vmem:[#allocation5 + $0x910] sm:$0xff] }
 0x2d0   :  { %7077 = vmatprep.subr.bf16.mxu0 %v8264_v51  ;;  %7421 = vmatprep.subr.bf16.mxu1 %v8266_v58  ;;  %v428_v50 = vld [vmem:[#allocation5 + $0x930] sm:$0xff]  ;;  %v425_v51 = vld [vmem:[#allocation5 + $0x918] sm:$0xff] }
 0x2d1   :  { %v429_v58 = vld [vmem:[#allocation5 + $0x938] sm:$0xff]  ;;  %v8320_v55 = vcombine.high %v424_v49, %v428_v50 }
 0x2d2   :  { %v8321_v63 = vcombine.low %v425_v51, %v429_v58 }
 0x2d3   :  { %7078 = vmatpush1.bf16.msra.mxu0 %v8263_v57  ;;  %7422 = vmatpush1.bf16.msra.mxu1 %v8265_v60  ;;  %v436_v57 = vld [vmem:[#allocation5 + $0x970] sm:$0xff]  ;;  %v433_v60 = vld [vmem:[#allocation5 + $0x958] sm:$0xff] }
 0x2d4   :  { %7079 = vmatprep.subr.bf16.mxu0 %v8272_v61  ;;  %7423 = vmatprep.subr.bf16.mxu1 %v8274_v62  ;;  %v437_v61 = vld [vmem:[#allocation5 + $0x978] sm:$0xff]  ;;  %v8319_v62 = vcombine.low %v424_v49, %v428_v50  ;;  %v8328_v1 = vcombine.high %v432_v56, %v436_v57 }
 0x2d5   :  { %v8330_v2 = vcombine.high %v433_v60, %v437_v61  ;;  %v8329_v9 = vcombine.low %v433_v60, %v437_v61  ;;  %v488_v61 = vld [vmem:[#allocation5 + $0xb10] sm:$0xff] }
 0x2d7   :  { %7080 = vmatpush1.bf16.msra.mxu0 %v8271_v4  ;;  %7424 = vmatpush1.bf16.msra.mxu1 %v8273_v5  ;;  %v444_v4 = vld [vmem:[#allocation5 + $0x9b0] sm:$0xff]  ;;  %v441_v5 = vld [vmem:[#allocation5 + $0x998] sm:$0xff] }
 0x2d8   :  { %7081 = vmatprep.subr.bf16.mxu0 %v8280_v7  ;;  %7425 = vmatprep.subr.bf16.mxu1 %v8282_v8  ;;  %v445_v7 = vld [vmem:[#allocation5 + $0x9b8] sm:$0xff]  ;;  %v8327_v8 = vcombine.low %v432_v56, %v436_v57  ;;  %v8336_v11 = vcombine.high %v440_v3, %v444_v4 }
 0x2d9   :  { %v8338_v12 = vcombine.high %v441_v5, %v445_v7  ;;  %v8337_v19 = vcombine.low %v441_v5, %v445_v7  ;;  %v496_v7 = vld [vmem:[#allocation5 + $0xb50] sm:$0xff] }
 0x2db   :  { %7082 = vmatpush1.bf16.msra.mxu0 %v8279_v14  ;;  %7426 = vmatpush1.bf16.msra.mxu1 %v8281_v16  ;;  %v452_v14 = vld [vmem:[#allocation5 + $0x9f0] sm:$0xff]  ;;  %v449_v16 = vld [vmem:[#allocation5 + $0x9d8] sm:$0xff] }
 0x2dc   :  { %7094 = vmatprep.subr.bf16.mxu0 %v8288_v17  ;;  %7438 = vmatprep.subr.bf16.mxu1 %v8290_v18  ;;  %v453_v17 = vld [vmem:[#allocation5 + $0x9f8] sm:$0xff]  ;;  %v8335_v18 = vcombine.low %v440_v3, %v444_v4  ;;  %v8344_v20 = vcombine.high %v448_v15, %v452_v14 }
 0x2dd   :  { %v8346_v21 = vcombine.high %v449_v16, %v453_v17  ;;  %v8345_v29 = vcombine.low %v449_v16, %v453_v17  ;;  %v504_v17 = vld [vmem:[#allocation5 + $0xb90] sm:$0xff] }
 0x2de   :  { %7084 = vmatmul.mubr.bf16.vlgmr.msra.gmra.mrb[4].mxu0 %v9473_v27  ;;  %7428 = vmatmul.mubr.bf16.vlgmr.msra.gmra.mrb[4].mxu1 %v9473_v27  ;;  %v8305_v27 = vcombine.low %v409_v31, %v413_v32  ;;  %v464_v32 = vld [vmem:[#allocation5 + $0xa50] sm:$0xff] }
 0x2df   :  { %7095 = vmatpush1.bf16.msra.mxu0 %v8287_v23  ;;  %7439 = vmatpush1.bf16.msra.mxu1 %v8289_v25  ;;  %v460_v23 = vld [vmem:[#allocation5 + $0xa30] sm:$0xff]  ;;  %v457_v25 = vld [vmem:[#allocation5 + $0xa18] sm:$0xff] }
 0x2e0   :  { %7096 = vmatprep.subr.bf16.mxu0 %v8296_v24  ;;  %7440 = vmatprep.subr.bf16.mxu1 %v8298_v28  ;;  %v461_v24 = vld [vmem:[#allocation5 + $0xa38] sm:$0xff]  ;;  %v8343_v28 = vcombine.low %v448_v15, %v452_v14  ;;  %v8352_v30 = vcombine.high %v456_v22, %v460_v23 }
 0x2e1   :  { %7126 = vmatprep.mubr.bf16.mxu0 %v9475_v37  ;;  %7470 = vmatprep.mubr.bf16.mxu1 %v9475_v37  ;;  %v8322_v37 = vcombine.high %v425_v51, %v429_v58  ;;  %v8354_v31 = vcombine.high %v457_v25, %v461_v24  ;;  %v8353_v40 = vcombine.low %v457_v25, %v461_v24  ;;  %v480_v58 = vld [vmem:[#allocation5 + $0xad0] sm:$0xff] }
 0x2e2   :  { %v512_v24 = vld [vmem:[#allocation5 + $0xbd0] sm:$0xff] }
 0x2e3   :  { %7097 = vmatpush1.bf16.msra.mxu0 %v8295_v34  ;;  %7441 = vmatpush1.bf16.msra.mxu1 %v8297_v35  ;;  %v468_v34 = vld [vmem:[#allocation5 + $0xa70] sm:$0xff]  ;;  %v465_v35 = vld [vmem:[#allocation5 + $0xa58] sm:$0xff] }
 0x2e4   :  { %7098 = vmatprep.subr.bf16.mxu0 %v8304_v36  ;;  %7442 = vmatprep.subr.bf16.mxu1 %v8306_v39  ;;  %v469_v36 = vld [vmem:[#allocation5 + $0xa78] sm:$0xff]  ;;  %v8351_v39 = vcombine.low %v456_v22, %v460_v23  ;;  %v8360_v41 = vcombine.high %v464_v32, %v468_v34 }
 0x2e5   :  { %v8362_v42 = vcombine.high %v465_v35, %v469_v36  ;;  %v8361_v49 = vcombine.low %v465_v35, %v469_v36  ;;  %v520_v36 = vld [vmem:[#allocation5 + $0xc10] sm:$0xff] }
 0x2e7   :  { %7099 = vmatpush1.bf16.msra.mxu0 %v8303_v45  ;;  %7443 = vmatpush1.bf16.msra.mxu1 %v8305_v27  ;;  %v476_v45 = vld [vmem:[#allocation5 + $0xab0] sm:$0xff]  ;;  %v473_v27 = vld [vmem:[#allocation5 + $0xa98] sm:$0xff] }
 0x2e8   :  { %7100 = vmatprep.subr.bf16.mxu0 %v8312_v47  ;;  %7444 = vmatprep.subr.bf16.mxu1 %v8314_v48  ;;  %v477_v47 = vld [vmem:[#allocation5 + $0xab8] sm:$0xff]  ;;  %v8359_v48 = vcombine.low %v464_v32, %v468_v34  ;;  %v8368_v50 = vcombine.high %v472_v44, %v476_v45 }
 0x2e9   :  { %v8370_v51 = vcombine.high %v473_v27, %v477_v47  ;;  %v8369_v56 = vcombine.low %v473_v27, %v477_v47  ;;  %v528_v47 = vld [vmem:[#allocation5 + $0xc50] sm:$0xff] }
 0x2eb   :  { %7101 = vmatpush1.bf16.msra.mxu0 %v8311_v52  ;;  %7445 = vmatpush1.bf16.msra.mxu1 %v8313_v54  ;;  %v484_v52 = vld [vmem:[#allocation5 + $0xaf0] sm:$0xff]  ;;  %v481_v54 = vld [vmem:[#allocation5 + $0xad8] sm:$0xff] }
 0x2ec   :  { %7102 = vmatprep.subr.bf16.mxu0 %v8320_v55  ;;  %7446 = vmatprep.subr.bf16.mxu1 %v8322_v37  ;;  %v485_v55 = vld [vmem:[#allocation5 + $0xaf8] sm:$0xff]  ;;  %v8367_v37 = vcombine.low %v472_v44, %v476_v45  ;;  %v8376_v57 = vcombine.high %v480_v58, %v484_v52 }
 0x2ed   :  { %v8378_v60 = vcombine.high %v481_v54, %v485_v55  ;;  %v8377_v3 = vcombine.low %v481_v54, %v485_v55  ;;  %v536_v55 = vld [vmem:[#allocation5 + $0xc90] sm:$0xff] }
 0x2ef   :  { %7103 = vmatpush1.bf16.msra.mxu0 %v8319_v62  ;;  %7447 = vmatpush1.bf16.msra.mxu1 %v8321_v63  ;;  %v492_v62 = vld [vmem:[#allocation5 + $0xb30] sm:$0xff]  ;;  %v489_v63 = vld [vmem:[#allocation5 + $0xb18] sm:$0xff] }
 0x2f0   :  { %7104 = vmatprep.subr.bf16.mxu0 %v8328_v1  ;;  %7448 = vmatprep.subr.bf16.mxu1 %v8330_v2  ;;  %v493_v1 = vld [vmem:[#allocation5 + $0xb38] sm:$0xff]  ;;  %v8375_v2 = vcombine.low %v480_v58, %v484_v52  ;;  %v8384_v4 = vcombine.high %v488_v61, %v492_v62 }
 0x2f1   :  { %v8386_v5 = vcombine.high %v489_v63, %v493_v1  ;;  %v8385_v15 = vcombine.low %v489_v63, %v493_v1  ;;  %v544_v1 = vld [vmem:[#allocation5 + $0xcd0] sm:$0xff] }
 0x2f3   :  { %7105 = vmatpush1.bf16.msra.mxu0 %v8327_v8  ;;  %7449 = vmatpush1.bf16.msra.mxu1 %v8329_v9  ;;  %v500_v8 = vld [vmem:[#allocation5 + $0xb70] sm:$0xff]  ;;  %v497_v9 = vld [vmem:[#allocation5 + $0xb58] sm:$0xff] }
 0x2f4   :  { %7106 = vmatprep.subr.bf16.mxu0 %v8336_v11  ;;  %7450 = vmatprep.subr.bf16.mxu1 %v8338_v12  ;;  %v501_v11 = vld [vmem:[#allocation5 + $0xb78] sm:$0xff]  ;;  %v8383_v12 = vcombine.low %v488_v61, %v492_v62  ;;  %v8392_v14 = vcombine.high %v496_v7, %v500_v8 }
 0x2f5   :  { %v8394_v16 = vcombine.high %v497_v9, %v501_v11  ;;  %v8393_v22 = vcombine.low %v497_v9, %v501_v11  ;;  %v552_v9 = vld [vmem:[#allocation5 + $0xd10] sm:$0xff] }
 0x2f6   :  { %v556_v11 = vld [vmem:[#allocation5 + $0xd30] sm:$0xff] }
 0x2f7   :  { %7107 = vmatpush1.bf16.msra.mxu0 %v8335_v18  ;;  %7451 = vmatpush1.bf16.msra.mxu1 %v8337_v19  ;;  %v508_v18 = vld [vmem:[#allocation5 + $0xbb0] sm:$0xff]  ;;  %v505_v19 = vld [vmem:[#allocation5 + $0xb98] sm:$0xff] }
 0x2f8   :  { %7108 = vmatprep.subr.bf16.mxu0 %v8344_v20  ;;  %7452 = vmatprep.subr.bf16.mxu1 %v8346_v21  ;;  %v509_v20 = vld [vmem:[#allocation5 + $0xbb8] sm:$0xff]  ;;  %v8391_v21 = vcombine.low %v496_v7, %v500_v8  ;;  %v8400_v23 = vcombine.high %v504_v17, %v508_v18 }
 0x2f9   :  { %v8402_v25 = vcombine.high %v505_v19, %v509_v20  ;;  %v8401_v32 = vcombine.low %v505_v19, %v509_v20  ;;  %v564_v19 = vld [vmem:[#allocation5 + $0xd70] sm:$0xff]  ;;  %v561_v20 = vld [vmem:[#allocation5 + $0xd58] sm:$0xff] }
 0x2fb   :  { %7109 = vmatpush1.bf16.msra.mxu0 %v8343_v28  ;;  %7453 = vmatpush1.bf16.msra.mxu1 %v8345_v29  ;;  %v516_v28 = vld [vmem:[#allocation5 + $0xbf0] sm:$0xff]  ;;  %v513_v29 = vld [vmem:[#allocation5 + $0xbd8] sm:$0xff] }
 0x2fc   :  { %7110 = vmatprep.subr.bf16.mxu0 %v8352_v30  ;;  %7454 = vmatprep.subr.bf16.mxu1 %v8354_v31  ;;  %v517_v30 = vld [vmem:[#allocation5 + $0xbf8] sm:$0xff]  ;;  %v8399_v31 = vcombine.low %v504_v17, %v508_v18  ;;  %v8408_v34 = vcombine.high %v512_v24, %v516_v28  ;;  %v8448_v17 = vcombine.high %v552_v9, %v556_v11  ;;  %v560_v18 = vld [vmem:[#allocation5 + $0xd50] sm:$0xff] }
 0x2fd   :  { %v8410_v35 = vcombine.high %v513_v29, %v517_v30  ;;  %v8409_v44 = vcombine.low %v513_v29, %v517_v30  ;;  %v572_v29 = vld [vmem:[#allocation5 + $0xdb0] sm:$0xff]  ;;  %v569_v30 = vld [vmem:[#allocation5 + $0xd98] sm:$0xff] }
 0x2ff   :  { %7111 = vmatpush1.bf16.msra.mxu0 %v8351_v39  ;;  %7455 = vmatpush1.bf16.msra.mxu1 %v8353_v40  ;;  %v524_v39 = vld [vmem:[#allocation5 + $0xc30] sm:$0xff]  ;;  %v521_v40 = vld [vmem:[#allocation5 + $0xc18] sm:$0xff] }
 0x300   :  { %7112 = vmatprep.subr.bf16.mxu0 %v8360_v41  ;;  %7456 = vmatprep.subr.bf16.mxu1 %v8362_v42  ;;  %v525_v41 = vld [vmem:[#allocation5 + $0xc38] sm:$0xff]  ;;  %v8407_v42 = vcombine.low %v512_v24, %v516_v28  ;;  %v8416_v45 = vcombine.high %v520_v36, %v524_v39  ;;  %v568_v28 = vld [vmem:[#allocation5 + $0xd90] sm:$0xff] }
 0x301   :  { %v8418_v27 = vcombine.high %v521_v40, %v525_v41  ;;  %v8417_v58 = vcombine.low %v521_v40, %v525_v41  ;;  %v576_v40 = vld [vmem:[#allocation5 + $0xdd0] sm:$0xff] }
 0x302   :  { %v580_v41 = vld [vmem:[#allocation5 + $0xdf0] sm:$0xff] }
 0x303   :  { %7113 = vmatpush1.bf16.msra.mxu0 %v8359_v48  ;;  %7457 = vmatpush1.bf16.msra.mxu1 %v8361_v49  ;;  %v532_v48 = vld [vmem:[#allocation5 + $0xc70] sm:$0xff]  ;;  %v529_v49 = vld [vmem:[#allocation5 + $0xc58] sm:$0xff] }
 0x304   :  { %7114 = vmatprep.subr.bf16.mxu0 %v8368_v50  ;;  %7458 = vmatprep.subr.bf16.mxu1 %v8370_v51  ;;  %v533_v50 = vld [vmem:[#allocation5 + $0xc78] sm:$0xff]  ;;  %v8415_v51 = vcombine.low %v520_v36, %v524_v39  ;;  %v8424_v52 = vcombine.high %v528_v47, %v532_v48 }
 0x305   :  { %v8426_v54 = vcombine.high %v529_v49, %v533_v50  ;;  %v8425_v61 = vcombine.low %v529_v49, %v533_v50  ;;  %v8463_v49 = vcombine.low %v568_v28, %v572_v29 }
 0x307   :  { %7115 = vmatpush1.bf16.msra.mxu0 %v8367_v37  ;;  %7459 = vmatpush1.bf16.msra.mxu1 %v8369_v56  ;;  %v540_v37 = vld [vmem:[#allocation5 + $0xcb0] sm:$0xff]  ;;  %v537_v56 = vld [vmem:[#allocation5 + $0xc98] sm:$0xff] }
 0x308   :  { %7116 = vmatprep.subr.bf16.mxu0 %v8376_v57  ;;  %7460 = vmatprep.subr.bf16.mxu1 %v8378_v60  ;;  %v541_v57 = vld [vmem:[#allocation5 + $0xcb8] sm:$0xff]  ;;  %v8423_v60 = vcombine.low %v528_v47, %v532_v48  ;;  %v8432_v62 = vcombine.high %v536_v55, %v540_v37 }
 0x309   :  { %v8434_v63 = vcombine.high %v537_v56, %v541_v57 }
 0x30b   :  { %7117 = vmatpush1.bf16.msra.mxu0 %v8375_v2  ;;  %7461 = vmatpush1.bf16.msra.mxu1 %v8377_v3  ;;  %v548_v2 = vld [vmem:[#allocation5 + $0xcf0] sm:$0xff]  ;;  %v545_v3 = vld [vmem:[#allocation5 + $0xcd8] sm:$0xff] }
 0x30c   :  { %7118 = vmatprep.subr.bf16.mxu0 %v8384_v4  ;;  %7462 = vmatprep.subr.bf16.mxu1 %v8386_v5  ;;  %v549_v4 = vld [vmem:[#allocation5 + $0xcf8] sm:$0xff]  ;;  %v8431_v5 = vcombine.low %v536_v55, %v540_v37  ;;  %v8440_v7 = vcombine.high %v544_v1, %v548_v2  ;;  %v584_v37 = vld [vmem:[#allocation5 + $0xe10] sm:$0xff] }
 0x30d   :  { %v8442_v8 = vcombine.high %v545_v3, %v549_v4 }
 0x30f   :  { %7119 = vmatpush1.bf16.msra.mxu0 %v8383_v12  ;;  %7463 = vmatpush1.bf16.msra.mxu1 %v8385_v15  ;;  %v553_v12 = vld [vmem:[#allocation5 + $0xd18] sm:$0xff] }
 0x310   :  { %7120 = vmatprep.subr.bf16.mxu0 %v8392_v14  ;;  %7464 = vmatprep.subr.bf16.mxu1 %v8394_v16  ;;  %v557_v15 = vld [vmem:[#allocation5 + $0xd38] sm:$0xff]  ;;  %v8439_v14 = vcombine.low %v544_v1, %v548_v2  ;;  %v8441_v16 = vcombine.low %v545_v3, %v549_v4  ;;  %v592_v2 = vld [vmem:[#allocation5 + $0xe50] sm:$0xff] }
 0x311   :  { %v596_v3 = vld [vmem:[#allocation5 + $0xe70] sm:$0xff]  ;;  %v593_v4 = vld [vmem:[#allocation5 + $0xe58] sm:$0xff] }
 0x313   :  { %7121 = vmatpush1.bf16.msra.mxu0 %v8391_v21  ;;  %7465 = vmatpush1.bf16.msra.mxu1 %v8393_v22  ;;  %v565_v21 = vld [vmem:[#allocation5 + $0xd78] sm:$0xff]  ;;  %v8447_v22 = vcombine.low %v552_v9, %v556_v11  ;;  %v600_v11 = vld [vmem:[#allocation5 + $0xe90] sm:$0xff] }
 0x314   :  { %7122 = vmatprep.subr.bf16.mxu0 %v8400_v23  ;;  %7466 = vmatprep.subr.bf16.mxu1 %v8402_v25  ;;  %v8449_v23 = vcombine.low %v553_v12, %v557_v15  ;;  %v8456_v25 = vcombine.high %v560_v18, %v564_v19  ;;  %v8458_v24 = vcombine.high %v561_v20, %v565_v21 }
 0x317   :  { %7123 = vmatpush1.bf16.msra.mxu0 %v8399_v31  ;;  %7467 = vmatpush1.bf16.msra.mxu1 %v8401_v32  ;;  %v573_v31 = vld [vmem:[#allocation5 + $0xdb8] sm:$0xff]  ;;  %v8455_v32 = vcombine.low %v560_v18, %v564_v19  ;;  %v608_v19 = vld [vmem:[#allocation5 + $0xed0] sm:$0xff] }
 0x318   :  { %7124 = vmatprep.subr.bf16.mxu0 %v8408_v34  ;;  %7468 = vmatprep.subr.bf16.mxu1 %v8410_v35  ;;  %v8457_v34 = vcombine.low %v561_v20, %v565_v21  ;;  %v8464_v35 = vcombine.high %v568_v28, %v572_v29  ;;  %v8466_v39 = vcombine.high %v569_v30, %v573_v31  ;;  %v612_v20 = vld [vmem:[#allocation5 + $0xef0] sm:$0xff]  ;;  %v609_v21 = vld [vmem:[#allocation5 + $0xed8] sm:$0xff] }
 0x319   :  { %v616_v29 = vld [vmem:[#allocation5 + $0xf10] sm:$0xff] }
 0x31b   :  { %7125 = vmatpush1.bf16.msra.mxu0 %v8407_v42  ;;  %7469 = vmatpush1.bf16.msra.mxu1 %v8409_v44 }
 0x31c   :  { %7137 = vmatprep.subr.bf16.mxu0 %v8416_v45  ;;  %7481 = vmatprep.subr.bf16.mxu1 %v8418_v27  ;;  %v577_v45 = vld [vmem:[#allocation5 + $0xdd8] sm:$0xff] }
 0x31d   :  { %v581_v27 = vld [vmem:[#allocation5 + $0xdf8] sm:$0xff] }
 0x31e   :  { %7127 = vmatmul.mubr.bf16.vlgmr.msra.gmra.mrb[4].mxu0 %v9481_v43  ;;  %7471 = vmatmul.mubr.bf16.vlgmr.msra.gmra.mrb[4].mxu1 %v9481_v43  ;;  %v8433_v43 = vcombine.low %v537_v56, %v541_v57  ;;  %v8474_v55 = vcombine.high %v577_v45, %v581_v27  ;;  %v588_v56 = vld [vmem:[#allocation5 + $0xe30] sm:$0xff]  ;;  %v585_v57 = vld [vmem:[#allocation5 + $0xe18] sm:$0xff] }
 0x31f   :  { %7138 = vmatpush1.bf16.msra.mxu0 %v8415_v51  ;;  %7482 = vmatpush1.bf16.msra.mxu1 %v8417_v58  ;;  %v8465_v58 = vcombine.low %v569_v30, %v573_v31  ;;  %v620_v30 = vld [vmem:[#allocation5 + $0xf30] sm:$0xff]  ;;  %v617_v31 = vld [vmem:[#allocation5 + $0xf18] sm:$0xff] }
 0x320   :  { %7139 = vmatprep.subr.bf16.mxu0 %v8424_v52  ;;  %7483 = vmatprep.subr.bf16.mxu1 %v8426_v54  ;;  %v8472_v52 = vcombine.high %v576_v40, %v580_v41 }
 0x321   :  { %7169 = vmatprep.mubr.bf16.mxu0 %v9483_v53  ;;  %7513 = vmatprep.mubr.bf16.mxu1 %v9483_v53  ;;  %v8450_v53 = vcombine.high %v553_v12, %v557_v15  ;;  %v604_v12 = vld [vmem:[#allocation5 + $0xeb0] sm:$0xff]  ;;  %v601_v15 = vld [vmem:[#allocation5 + $0xe98] sm:$0xff] }
 0x323   :  { %7140 = vmatpush1.bf16.msra.mxu0 %v8423_v60  ;;  %7484 = vmatpush1.bf16.msra.mxu1 %v8425_v61  ;;  %v589_v60 = vld [vmem:[#allocation5 + $0xe38] sm:$0xff]  ;;  %v8471_v61 = vcombine.low %v576_v40, %v580_v41  ;;  %v624_v41 = vld [vmem:[#allocation5 + $0xf50] sm:$0xff] }
 0x324   :  { %7141 = vmatprep.subr.bf16.mxu0 %v8432_v62  ;;  %7485 = vmatprep.subr.bf16.mxu1 %v8434_v63  ;;  %v8473_v62 = vcombine.low %v577_v45, %v581_v27  ;;  %v8480_v63 = vcombine.high %v584_v37, %v588_v56  ;;  %v8482_v1 = vcombine.high %v585_v57, %v589_v60  ;;  %v628_v45 = vld [vmem:[#allocation5 + $0xf70] sm:$0xff]  ;;  %v625_v27 = vld [vmem:[#allocation5 + $0xf58] sm:$0xff] }
 0x327   :  { %7142 = vmatpush1.bf16.msra.mxu0 %v8431_v5  ;;  %7486 = vmatpush1.bf16.msra.mxu1 %v8433_v43  ;;  %v597_v5 = vld [vmem:[#allocation5 + $0xe78] sm:$0xff]  ;;  %v8479_v43 = vcombine.low %v584_v37, %v588_v56  ;;  %v632_v56 = vld [vmem:[#allocation5 + $0xf90] sm:$0xff] }
 0x328   :  { %7143 = vmatprep.subr.bf16.mxu0 %v8440_v7  ;;  %7487 = vmatprep.subr.bf16.mxu1 %v8442_v8  ;;  %v8481_v7 = vcombine.low %v585_v57, %v589_v60  ;;  %v8488_v8 = vcombine.high %v592_v2, %v596_v3  ;;  %v8490_v9 = vcombine.high %v593_v4, %v597_v5  ;;  %v636_v57 = vld [vmem:[#allocation5 + $0xfb0] sm:$0xff]  ;;  %v633_v60 = vld [vmem:[#allocation5 + $0xf98] sm:$0xff] }
 0x32b   :  { %7144 = vmatpush1.bf16.msra.mxu0 %v8439_v14  ;;  %7488 = vmatpush1.bf16.msra.mxu1 %v8441_v16  ;;  %v605_v14 = vld [vmem:[#allocation5 + $0xeb8] sm:$0xff]  ;;  %v8487_v16 = vcombine.low %v592_v2, %v596_v3  ;;  %v640_v3 = vld [vmem:[#allocation5 + $0xfd0] sm:$0xff] }
 0x32c   :  { %7145 = vmatprep.subr.bf16.mxu0 %v8448_v17  ;;  %7489 = vmatprep.subr.bf16.mxu1 %v8450_v53  ;;  %v8489_v17 = vcombine.low %v593_v4, %v597_v5  ;;  %v8496_v53 = vcombine.high %v600_v11, %v604_v12  ;;  %v8498_v18 = vcombine.high %v601_v15, %v605_v14  ;;  %v644_v4 = vld [vmem:[#allocation5 + $0xff0] sm:$0xff]  ;;  %v641_v5 = vld [vmem:[#allocation5 + $0xfd8] sm:$0xff] }
 0x32f   :  { %7146 = vmatpush1.bf16.msra.mxu0 %v8447_v22  ;;  %7490 = vmatpush1.bf16.msra.mxu1 %v8449_v23  ;;  %v613_v22 = vld [vmem:[#allocation5 + $0xef8] sm:$0xff]  ;;  %v8495_v23 = vcombine.low %v600_v11, %v604_v12  ;;  %v648_v12 = vld [vmem:[#allocation5 + $0x1010] sm:$0xff] }
 0x330   :  { %7147 = vmatprep.subr.bf16.mxu0 %v8456_v25  ;;  %7491 = vmatprep.subr.bf16.mxu1 %v8458_v24  ;;  %v8497_v25 = vcombine.low %v601_v15, %v605_v14  ;;  %v8504_v24 = vcombine.high %v608_v19, %v612_v20  ;;  %v8506_v28 = vcombine.high %v609_v21, %v613_v22  ;;  %v652_v15 = vld [vmem:[#allocation5 + $0x1030] sm:$0xff]  ;;  %v649_v14 = vld [vmem:[#allocation5 + $0x1018] sm:$0xff] }
 0x331   :  { %v9539_v36 = vpop.f32.mrb[0].mxu0  ;;  %v9541_v42 = vpop.f32.mrb[0].mxu1 }
 0x332   :  { %v9543_v44 = vpop.f32.mrb[1].mxu0  ;;  %v9545_v47 = vpop.f32.mrb[1].mxu1 }
 0x333   :  { %v9547_v48 = vpop.f32.mrb[2].mxu0  ;;  %7148 = vmatpush1.bf16.msra.mxu0 %v8455_v32  ;;  %v9549_v50 = vpop.f32.mrb[2].mxu1  ;;  %7492 = vmatpush1.bf16.msra.mxu1 %v8457_v34  ;;  %v621_v32 = vld [vmem:[#allocation5 + $0xf38] sm:$0xff]  ;;  %v8503_v34 = vcombine.low %v608_v19, %v612_v20  ;;  %v656_v20 = vld [vmem:[#allocation5 + $0x1050] sm:$0xff] }
 0x334   :  { %v9551_v51 = vpop.f32.mrb[3].mxu0  ;;  %7149 = vmatprep.subr.bf16.mxu0 %v8464_v35  ;;  %v9553_v54 = vpop.f32.mrb[3].mxu1  ;;  %7493 = vmatprep.subr.bf16.mxu1 %v8466_v39  ;;  %v8505_v35 = vcombine.low %v609_v21, %v613_v22  ;;  %v8512_v39 = vcombine.high %v616_v29, %v620_v30  ;;  %v8514_v40 = vcombine.high %v617_v31, %v621_v32  ;;  %v660_v21 = vld [vmem:[#allocation5 + $0x1070] sm:$0xff]  ;;  %v657_v22 = vld [vmem:[#allocation5 + $0x1058] sm:$0xff] }
 0x337   :  { %7150 = vmatpush1.bf16.msra.mxu0 %v8463_v49  ;;  %7494 = vmatpush1.bf16.msra.mxu1 %v8465_v58  ;;  %v629_v49 = vld [vmem:[#allocation5 + $0xf78] sm:$0xff]  ;;  %v8511_v58 = vcombine.low %v616_v29, %v620_v30  ;;  %v664_v30 = vld [vmem:[#allocation5 + $0x1090] sm:$0xff] }
 0x338   :  { %7151 = vmatprep.subr.bf16.mxu0 %v8472_v52  ;;  %7495 = vmatprep.subr.bf16.mxu1 %v8474_v55  ;;  %v8513_v52 = vcombine.low %v617_v31, %v621_v32  ;;  %v8520_v55 = vcombine.high %v624_v41, %v628_v45  ;;  %v8522_v37 = vcombine.high %v625_v27, %v629_v49  ;;  %v668_v31 = vld [vmem:[#allocation5 + $0x10b0] sm:$0xff]  ;;  %v665_v32 = vld [vmem:[#allocation5 + $0x1098] sm:$0xff] }
 0x33b   :  { %7152 = vmatpush1.bf16.msra.mxu0 %v8471_v61  ;;  %7496 = vmatpush1.bf16.msra.mxu1 %v8473_v62  ;;  %v637_v61 = vld [vmem:[#allocation5 + $0xfb8] sm:$0xff]  ;;  %v8519_v62 = vcombine.low %v624_v41, %v628_v45  ;;  %v672_v45 = vld [vmem:[#allocation5 + $0x10d0] sm:$0xff] }
 0x33c   :  { %7153 = vmatprep.subr.bf16.mxu0 %v8480_v63  ;;  %7497 = vmatprep.subr.bf16.mxu1 %v8482_v1  ;;  %v8521_v63 = vcombine.low %v625_v27, %v629_v49  ;;  %v8528_v1 = vcombine.high %v632_v56, %v636_v57  ;;  %v8530_v2 = vcombine.high %v633_v60, %v637_v61  ;;  %v676_v27 = vld [vmem:[#allocation5 + $0x10f0] sm:$0xff]  ;;  %v673_v49 = vld [vmem:[#allocation5 + $0x10d8] sm:$0xff] }
 0x33f   :  { %7154 = vmatpush1.bf16.msra.mxu0 %v8479_v43  ;;  %7498 = vmatpush1.bf16.msra.mxu1 %v8481_v7  ;;  %v645_v43 = vld [vmem:[#allocation5 + $0xff8] sm:$0xff]  ;;  %v8527_v7 = vcombine.low %v632_v56, %v636_v57  ;;  %v680_v56 = vld [vmem:[#allocation5 + $0x1110] sm:$0xff] }
 0x340   :  { %7155 = vmatprep.subr.bf16.mxu0 %v8488_v8  ;;  %7499 = vmatprep.subr.bf16.mxu1 %v8490_v9  ;;  %v8529_v8 = vcombine.low %v633_v60, %v637_v61  ;;  %v8536_v9 = vcombine.high %v640_v3, %v644_v4  ;;  %v8538_v11 = vcombine.high %v641_v5, %v645_v43  ;;  %v684_v57 = vld [vmem:[#allocation5 + $0x1130] sm:$0xff]  ;;  %v681_v60 = vld [vmem:[#allocation5 + $0x1118] sm:$0xff] }
 0x341   :  { %v685_v61 = vld [vmem:[#allocation5 + $0x1138] sm:$0xff] }
 0x343   :  { %7156 = vmatpush1.bf16.msra.mxu0 %v8487_v16  ;;  %7500 = vmatpush1.bf16.msra.mxu1 %v8489_v17  ;;  %v653_v16 = vld [vmem:[#allocation5 + $0x1038] sm:$0xff]  ;;  %v8535_v17 = vcombine.low %v640_v3, %v644_v4  ;;  %v692_v3 = vld [vmem:[#allocation5 + $0x1170] sm:$0xff] }
 0x344   :  { %7157 = vmatprep.subr.bf16.mxu0 %v8496_v53  ;;  %7501 = vmatprep.subr.bf16.mxu1 %v8498_v18  ;;  %v8537_v53 = vcombine.low %v641_v5, %v645_v43  ;;  %v8544_v18 = vcombine.high %v648_v12, %v652_v15  ;;  %v8546_v19 = vcombine.high %v649_v14, %v653_v16  ;;  %v689_v4 = vld [vmem:[#allocation5 + $0x1158] sm:$0xff] }
 0x345   :  { %v693_v5 = vld [vmem:[#allocation5 + $0x1178] sm:$0xff]  ;;  %v8575_v43 = vcombine.low %v680_v56, %v684_v57 }
 0x347   :  { %7158 = vmatpush1.bf16.msra.mxu0 %v8495_v23  ;;  %7502 = vmatpush1.bf16.msra.mxu1 %v8497_v25  ;;  %v661_v23 = vld [vmem:[#allocation5 + $0x1078] sm:$0xff]  ;;  %v8543_v25 = vcombine.low %v648_v12, %v652_v15  ;;  %v700_v12 = vld [vmem:[#allocation5 + $0x11b0] sm:$0xff] }
 0x348   :  { %7159 = vmatprep.subr.bf16.mxu0 %v8504_v24  ;;  %7503 = vmatprep.subr.bf16.mxu1 %v8506_v28  ;;  %v8545_v24 = vcombine.low %v649_v14, %v653_v16  ;;  %v8552_v28 = vcombine.high %v656_v20, %v660_v21  ;;  %v8554_v29 = vcombine.high %v657_v22, %v661_v23  ;;  %v697_v15 = vld [vmem:[#allocation5 + $0x1198] sm:$0xff] }
 0x349   :  { %v701_v14 = vld [vmem:[#allocation5 + $0x11b8] sm:$0xff] }
 0x34b   :  { %7160 = vmatpush1.bf16.msra.mxu0 %v8503_v34  ;;  %7504 = vmatpush1.bf16.msra.mxu1 %v8505_v35  ;;  %v669_v34 = vld [vmem:[#allocation5 + $0x10b8] sm:$0xff]  ;;  %v8551_v35 = vcombine.low %v656_v20, %v660_v21  ;;  %v708_v20 = vld [vmem:[#allocation5 + $0x11f0] sm:$0xff] }
 0x34c   :  { %7161 = vmatprep.subr.bf16.mxu0 %v8512_v39  ;;  %7505 = vmatprep.subr.bf16.mxu1 %v8514_v40  ;;  %v8553_v39 = vcombine.low %v657_v22, %v661_v23  ;;  %v8560_v40 = vcombine.high %v664_v30, %v668_v31  ;;  %v8562_v41 = vcombine.high %v665_v32, %v669_v34  ;;  %v705_v21 = vld [vmem:[#allocation5 + $0x11d8] sm:$0xff] }
 0x34d   :  { %v709_v22 = vld [vmem:[#allocation5 + $0x11f8] sm:$0xff] }
 0x34f   :  { %7162 = vmatpush1.bf16.msra.mxu0 %v8511_v58  ;;  %7506 = vmatpush1.bf16.msra.mxu1 %v8513_v52  ;;  %v677_v58 = vld [vmem:[#allocation5 + $0x10f8] sm:$0xff]  ;;  %v8559_v52 = vcombine.low %v664_v30, %v668_v31  ;;  %v716_v30 = vld [vmem:[#allocation5 + $0x1230] sm:$0xff] }
 0x350   :  { %7163 = vmatprep.subr.bf16.mxu0 %v8520_v55  ;;  %7507 = vmatprep.subr.bf16.mxu1 %v8522_v37  ;;  %v8568_v55 = vcombine.high %v672_v45, %v676_v27  ;;  %v8570_v37 = vcombine.high %v673_v49, %v677_v58  ;;  %v713_v31 = vld [vmem:[#allocation5 + $0x1218] sm:$0xff] }
 0x353   :  { %7164 = vmatpush1.bf16.msra.mxu0 %v8519_v62  ;;  %7508 = vmatpush1.bf16.msra.mxu1 %v8521_v63  ;;  %v8567_v62 = vcombine.low %v672_v45, %v676_v27  ;;  %v8569_v63 = vcombine.low %v673_v49, %v677_v58  ;;  %v724_v45 = vld [vmem:[#allocation5 + $0x1270] sm:$0xff]  ;;  %v721_v27 = vld [vmem:[#allocation5 + $0x1258] sm:$0xff] }
 0x354   :  { %7165 = vmatprep.subr.bf16.mxu0 %v8528_v1  ;;  %7509 = vmatprep.subr.bf16.mxu1 %v8530_v2  ;;  %v8576_v1 = vcombine.high %v680_v56, %v684_v57  ;;  %v688_v2 = vld [vmem:[#allocation5 + $0x1150] sm:$0xff]  ;;  %v725_v49 = vld [vmem:[#allocation5 + $0x1278] sm:$0xff] }
 0x355   :  { %v8583_v16 = vcombine.low %v688_v2, %v692_v3  ;;  %v732_v56 = vld [vmem:[#allocation5 + $0x12b0] sm:$0xff]  ;;  %v729_v57 = vld [vmem:[#allocation5 + $0x1298] sm:$0xff] }
 0x357   :  { %7166 = vmatpush1.bf16.msra.mxu0 %v8527_v7  ;;  %7510 = vmatpush1.bf16.msra.mxu1 %v8529_v8  ;;  %v8577_v7 = vcombine.low %v681_v60, %v685_v61  ;;  %v8584_v8 = vcombine.high %v688_v2, %v692_v3  ;;  %v740_v2 = vld [vmem:[#allocation5 + $0x12f0] sm:$0xff]  ;;  %v737_v3 = vld [vmem:[#allocation5 + $0x12d8] sm:$0xff] }
 0x358   :  { %7167 = vmatprep.subr.bf16.mxu0 %v8536_v9  ;;  %7511 = vmatprep.subr.bf16.mxu1 %v8538_v11  ;;  %v8586_v9 = vcombine.high %v689_v4, %v693_v5  ;;  %v696_v11 = vld [vmem:[#allocation5 + $0x1190] sm:$0xff] }
 0x359   :  { %v8591_v23 = vcombine.low %v696_v11, %v700_v12 }
 0x35b   :  { %7168 = vmatpush1.bf16.msra.mxu0 %v8535_v17  ;;  %7512 = vmatpush1.bf16.msra.mxu1 %v8537_v53  ;;  %v8585_v17 = vcombine.low %v689_v4, %v693_v5  ;;  %v8592_v53 = vcombine.high %v696_v11, %v700_v12  ;;  %v741_v4 = vld [vmem:[#allocation5 + $0x12f8] sm:$0xff]  ;;  %v748_v11 = vld [vmem:[#allocation5 + $0x1330] sm:$0xff] }
 0x35c   :  { %7180 = vmatprep.subr.bf16.mxu0 %v8544_v18  ;;  %7524 = vmatprep.subr.bf16.mxu1 %v8546_v19  ;;  %v8594_v18 = vcombine.high %v697_v15, %v701_v14  ;;  %v704_v19 = vld [vmem:[#allocation5 + $0x11d0] sm:$0xff]  ;;  %v745_v12 = vld [vmem:[#allocation5 + $0x1318] sm:$0xff] }
 0x35e   :  { %7170 = vmatmul.mubr.bf16.vlgmr.msra.gmra.mrb[4].mxu0 %v9489_v0  ;;  %7514 = vmatmul.mubr.bf16.vlgmr.msra.gmra.mrb[4].mxu1 %v9489_v0  ;;  %v8561_v0 = vcombine.low %v665_v32, %v669_v34  ;;  %v717_v32 = vld [vmem:[#allocation5 + $0x1238] sm:$0xff]  ;;  %v8599_v34 = vcombine.low %v704_v19, %v708_v20 }
 0x35f   :  { %7181 = vmatpush1.bf16.msra.mxu0 %v8543_v25  ;;  %7525 = vmatpush1.bf16.msra.mxu1 %v8545_v24  ;;  %v8593_v25 = vcombine.low %v697_v15, %v701_v14  ;;  %v8600_v24 = vcombine.high %v704_v19, %v708_v20  ;;  %v749_v15 = vld [vmem:[#allocation5 + $0x1338] sm:$0xff]  ;;  %v756_v19 = vld [vmem:[#allocation5 + $0x1370] sm:$0xff] }
 0x360   :  { %7182 = vmatprep.subr.bf16.mxu0 %v8552_v28  ;;  %7526 = vmatprep.subr.bf16.mxu1 %v8554_v29  ;;  %v8602_v28 = vcombine.high %v705_v21, %v709_v22  ;;  %v712_v29 = vld [vmem:[#allocation5 + $0x1210] sm:$0xff]  ;;  %v753_v20 = vld [vmem:[#allocation5 + $0x1358] sm:$0xff] }
 0x361   :  { %7212 = vmatprep.mubr.bf16.mxu0 %v9491_v10  ;;  %7556 = vmatprep.mubr.bf16.mxu1 %v9491_v10  ;;  %v8578_v10 = vcombine.high %v681_v60, %v685_v61  ;;  %v8607_v58 = vcombine.low %v712_v29, %v716_v30  ;;  %v733_v60 = vld [vmem:[#allocation5 + $0x12b8] sm:$0xff] }
 0x363   :  { %7183 = vmatpush1.bf16.msra.mxu0 %v8551_v35  ;;  %7527 = vmatpush1.bf16.msra.mxu1 %v8553_v39  ;;  %v8601_v35 = vcombine.low %v705_v21, %v709_v22  ;;  %v8608_v39 = vcombine.high %v712_v29, %v716_v30  ;;  %v757_v21 = vld [vmem:[#allocation5 + $0x1378] sm:$0xff]  ;;  %v764_v29 = vld [vmem:[#allocation5 + $0x13b0] sm:$0xff] }
 0x364   :  { %7184 = vmatprep.subr.bf16.mxu0 %v8560_v40  ;;  %7528 = vmatprep.subr.bf16.mxu1 %v8562_v41  ;;  %v8610_v40 = vcombine.high %v713_v31, %v717_v32  ;;  %v720_v41 = vld [vmem:[#allocation5 + $0x1250] sm:$0xff]  ;;  %v761_v30 = vld [vmem:[#allocation5 + $0x1398] sm:$0xff] }
 0x365   :  { %v8615_v61 = vcombine.low %v720_v41, %v724_v45 }
 0x367   :  { %7185 = vmatpush1.bf16.msra.mxu0 %v8559_v52  ;;  %7529 = vmatpush1.bf16.msra.mxu1 %v8561_v0  ;;  %v8609_v52 = vcombine.low %v713_v31, %v717_v32  ;;  %v8616_v0 = vcombine.high %v720_v41, %v724_v45  ;;  %v765_v31 = vld [vmem:[#allocation5 + $0x13b8] sm:$0xff]  ;;  %v772_v41 = vld [vmem:[#allocation5 + $0x13f0] sm:$0xff] }
 0x368   :  { %7186 = vmatprep.subr.bf16.mxu0 %v8568_v55  ;;  %7530 = vmatprep.subr.bf16.mxu1 %v8570_v37  ;;  %v8618_v55 = vcombine.high %v721_v27, %v725_v49  ;;  %v728_v37 = vld [vmem:[#allocation5 + $0x1290] sm:$0xff]  ;;  %v769_v45 = vld [vmem:[#allocation5 + $0x13d8] sm:$0xff] }
 0x369   :  { %v8623_v5 = vcombine.low %v728_v37, %v732_v56 }
 0x36b   :  { %7187 = vmatpush1.bf16.msra.mxu0 %v8567_v62  ;;  %7531 = vmatpush1.bf16.msra.mxu1 %v8569_v63  ;;  %v8617_v62 = vcombine.low %v721_v27, %v725_v49  ;;  %v8624_v63 = vcombine.high %v728_v37, %v732_v56  ;;  %v773_v27 = vld [vmem:[#allocation5 + $0x13f8] sm:$0xff]  ;;  %v780_v37 = vld [vmem:[#allocation5 + $0x1430] sm:$0xff] }
 0x36c   :  { %7188 = vmatprep.subr.bf16.mxu0 %v8576_v1  ;;  %7532 = vmatprep.subr.bf16.mxu1 %v8578_v10  ;;  %v8626_v1 = vcombine.high %v729_v57, %v733_v60  ;;  %v736_v10 = vld [vmem:[#allocation5 + $0x12d0] sm:$0xff]  ;;  %v777_v56 = vld [vmem:[#allocation5 + $0x1418] sm:$0xff] }
 0x36d   :  { %v8631_v14 = vcombine.low %v736_v10, %v740_v2 }
 0x36f   :  { %7189 = vmatpush1.bf16.msra.mxu0 %v8575_v43  ;;  %7533 = vmatpush1.bf16.msra.mxu1 %v8577_v7  ;;  %v8625_v43 = vcombine.low %v729_v57, %v733_v60  ;;  %v8632_v7 = vcombine.high %v736_v10, %v740_v2  ;;  %v781_v57 = vld [vmem:[#allocation5 + $0x1438] sm:$0xff]  ;;  %v788_v10 = vld [vmem:[#allocation5 + $0x1470] sm:$0xff] }
 0x370   :  { %7190 = vmatprep.subr.bf16.mxu0 %v8584_v8  ;;  %7534 = vmatprep.subr.bf16.mxu1 %v8586_v9  ;;  %v8634_v8 = vcombine.high %v737_v3, %v741_v4  ;;  %v744_v9 = vld [vmem:[#allocation5 + $0x1310] sm:$0xff]  ;;  %v785_v2 = vld [vmem:[#allocation5 + $0x1458] sm:$0xff] }
 0x371   :  { %v8639_v22 = vcombine.low %v744_v9, %v748_v11 }
 0x373   :  { %7191 = vmatpush1.bf16.msra.mxu0 %v8583_v16  ;;  %7535 = vmatpush1.bf16.msra.mxu1 %v8585_v17  ;;  %v8633_v16 = vcombine.low %v737_v3, %v741_v4  ;;  %v8640_v17 = vcombine.high %v744_v9, %v748_v11  ;;  %v789_v3 = vld [vmem:[#allocation5 + $0x1478] sm:$0xff]  ;;  %v796_v9 = vld [vmem:[#allocation5 + $0x14b0] sm:$0xff] }
 0x374   :  { %7192 = vmatprep.subr.bf16.mxu0 %v8592_v53  ;;  %7536 = vmatprep.subr.bf16.mxu1 %v8594_v18  ;;  %v8642_v53 = vcombine.high %v745_v12, %v749_v15  ;;  %v752_v18 = vld [vmem:[#allocation5 + $0x1350] sm:$0xff]  ;;  %v793_v11 = vld [vmem:[#allocation5 + $0x1498] sm:$0xff] }
 0x375   :  { %v8647_v32 = vcombine.low %v752_v18, %v756_v19 }
 0x377   :  { %7193 = vmatpush1.bf16.msra.mxu0 %v8591_v23  ;;  %7537 = vmatpush1.bf16.msra.mxu1 %v8593_v25  ;;  %v8641_v23 = vcombine.low %v745_v12, %v749_v15  ;;  %v8648_v25 = vcombine.high %v752_v18, %v756_v19  ;;  %v797_v12 = vld [vmem:[#allocation5 + $0x14b8] sm:$0xff]  ;;  %v804_v18 = vld [vmem:[#allocation5 + $0x14f0] sm:$0xff] }
 0x378   :  { %7194 = vmatprep.subr.bf16.mxu0 %v8600_v24  ;;  %7538 = vmatprep.subr.bf16.mxu1 %v8602_v28  ;;  %v8650_v24 = vcombine.high %v753_v20, %v757_v21  ;;  %v760_v28 = vld [vmem:[#allocation5 + $0x1390] sm:$0xff]  ;;  %v801_v19 = vld [vmem:[#allocation5 + $0x14d8] sm:$0xff] }
 0x379   :  { %v8655_v49 = vcombine.low %v760_v28, %v764_v29 }
 0x37b   :  { %7195 = vmatpush1.bf16.msra.mxu0 %v8599_v34  ;;  %7539 = vmatpush1.bf16.msra.mxu1 %v8601_v35  ;;  %v8649_v34 = vcombine.low %v753_v20, %v757_v21  ;;  %v8656_v35 = vcombine.high %v760_v28, %v764_v29  ;;  %v805_v20 = vld [vmem:[#allocation5 + $0x14f8] sm:$0xff] }
 0x37c   :  { %7196 = vmatprep.subr.bf16.mxu0 %v8608_v39  ;;  %7540 = vmatprep.subr.bf16.mxu1 %v8610_v40  ;;  %v8658_v39 = vcombine.high %v761_v30, %v765_v31  ;;  %v768_v40 = vld [vmem:[#allocation5 + $0x13d0] sm:$0xff]  ;;  %v809_v28 = vld [vmem:[#allocation5 + $0x1518] sm:$0xff] }
 0x37d   :  { %v8663_v60 = vcombine.low %v768_v40, %v772_v41  ;;  %v813_v29 = vld [vmem:[#allocation5 + $0x1538] sm:$0xff] }
 0x37f   :  { %7197 = vmatpush1.bf16.msra.mxu0 %v8607_v58  ;;  %7541 = vmatpush1.bf16.msra.mxu1 %v8609_v52  ;;  %v8657_v58 = vcombine.low %v761_v30, %v765_v31  ;;  %v8664_v52 = vcombine.high %v768_v40, %v772_v41  ;;  %v8697_v31 = vcombine.low %v801_v19, %v805_v20  ;;  %v821_v40 = vld [vmem:[#allocation5 + $0x1578] sm:$0xff] }
 0x380   :  { %7198 = vmatprep.subr.bf16.mxu0 %v8616_v0  ;;  %7542 = vmatprep.subr.bf16.mxu1 %v8618_v55  ;;  %v8666_v0 = vcombine.high %v769_v45, %v773_v27  ;;  %v776_v55 = vld [vmem:[#allocation5 + $0x1410] sm:$0xff] }
 0x381   :  { %v8671_v4 = vcombine.low %v776_v55, %v780_v37 }
 0x383   :  { %7199 = vmatpush1.bf16.msra.mxu0 %v8615_v61  ;;  %7543 = vmatpush1.bf16.msra.mxu1 %v8617_v62  ;;  %v8665_v61 = vcombine.low %v769_v45, %v773_v27  ;;  %v8672_v62 = vcombine.high %v776_v55, %v780_v37  ;;  %v8705_v45 = vcombine.low %v809_v28, %v813_v29  ;;  %v829_v55 = vld [vmem:[#allocation5 + $0x15b8] sm:$0xff] }
 0x384   :  { %7200 = vmatprep.subr.bf16.mxu0 %v8624_v63  ;;  %7544 = vmatprep.subr.bf16.mxu1 %v8626_v1  ;;  %v8674_v63 = vcombine.high %v777_v56, %v781_v57  ;;  %v784_v1 = vld [vmem:[#allocation5 + $0x1450] sm:$0xff] }
 0x385   :  { %v8679_v15 = vcombine.low %v784_v1, %v788_v10 }
 0x387   :  { %7201 = vmatpush1.bf16.msra.mxu0 %v8623_v5  ;;  %7545 = vmatpush1.bf16.msra.mxu1 %v8625_v43  ;;  %v8673_v5 = vcombine.low %v777_v56, %v781_v57  ;;  %v8680_v43 = vcombine.high %v784_v1, %v788_v10  ;;  %v837_v1 = vld [vmem:[#allocation5 + $0x15f8] sm:$0xff] }
 0x388   :  { %7202 = vmatprep.subr.bf16.mxu0 %v8632_v7  ;;  %7546 = vmatprep.subr.bf16.mxu1 %v8634_v8  ;;  %v8682_v7 = vcombine.high %v785_v2, %v789_v3  ;;  %v792_v8 = vld [vmem:[#allocation5 + $0x1490] sm:$0xff] }
 0x389   :  { %v8687_v21 = vcombine.low %v792_v8, %v796_v9 }
 0x38b   :  { %7203 = vmatpush1.bf16.msra.mxu0 %v8631_v14  ;;  %7547 = vmatpush1.bf16.msra.mxu1 %v8633_v16  ;;  %v8681_v14 = vcombine.low %v785_v2, %v789_v3  ;;  %v8688_v16 = vcombine.high %v792_v8, %v796_v9  ;;  %v845_v8 = vld [vmem:[#allocation5 + $0x1638] sm:$0xff] }
 0x38c   :  { %7204 = vmatprep.subr.bf16.mxu0 %v8640_v17  ;;  %7548 = vmatprep.subr.bf16.mxu1 %v8642_v53  ;;  %v8690_v17 = vcombine.high %v793_v11, %v797_v12  ;;  %v800_v53 = vld [vmem:[#allocation5 + $0x14d0] sm:$0xff] }
 0x38d   :  { %v8695_v30 = vcombine.low %v800_v53, %v804_v18 }
 0x38f   :  { %7205 = vmatpush1.bf16.msra.mxu0 %v8639_v22  ;;  %7549 = vmatpush1.bf16.msra.mxu1 %v8641_v23  ;;  %v8696_v22 = vcombine.high %v800_v53, %v804_v18  ;;  %v8698_v23 = vcombine.high %v801_v19, %v805_v20  ;;  %v853_v53 = vld [vmem:[#allocation5 + $0x1678] sm:$0xff] }
 0x390   :  { %7206 = vmatprep.subr.bf16.mxu0 %v8648_v25  ;;  %7550 = vmatprep.subr.bf16.mxu1 %v8650_v24  ;;  %v808_v25 = vld [vmem:[#allocation5 + $0x1510] sm:$0xff] }
 0x391   :  { %v812_v24 = vld [vmem:[#allocation5 + $0x1530] sm:$0xff] }
 0x392   :  { %v8703_v41 = vcombine.low %v808_v25, %v812_v24 }
 0x393   :  { %7207 = vmatpush1.bf16.msra.mxu0 %v8647_v32  ;;  %7551 = vmatpush1.bf16.msra.mxu1 %v8649_v34  ;;  %v8704_v32 = vcombine.high %v808_v25, %v812_v24  ;;  %v816_v34 = vld [vmem:[#allocation5 + $0x1550] sm:$0xff]  ;;  %v861_v25 = vld [vmem:[#allocation5 + $0x16b8] sm:$0xff] }
 0x394   :  { %7208 = vmatprep.subr.bf16.mxu0 %v8656_v35  ;;  %7552 = vmatprep.subr.bf16.mxu1 %v8658_v39  ;;  %v820_v35 = vld [vmem:[#allocation5 + $0x1570] sm:$0xff]  ;;  %v817_v39 = vld [vmem:[#allocation5 + $0x1558] sm:$0xff] }
 0x395   :  { %v8712_v27 = vcombine.high %v816_v34, %v820_v35  ;;  %v8711_v37 = vcombine.low %v816_v34, %v820_v35  ;;  %v8713_v56 = vcombine.low %v817_v39, %v821_v40  ;;  %v869_v34 = vld [vmem:[#allocation5 + $0x16f8] sm:$0xff] }
 0x397   :  { %7209 = vmatpush1.bf16.msra.mxu0 %v8655_v49  ;;  %7553 = vmatpush1.bf16.msra.mxu1 %v8657_v58  ;;  %v8714_v49 = vcombine.high %v817_v39, %v821_v40  ;;  %v824_v58 = vld [vmem:[#allocation5 + $0x1590] sm:$0xff] }
 0x398   :  { %7210 = vmatprep.subr.bf16.mxu0 %v8664_v52  ;;  %7554 = vmatprep.subr.bf16.mxu1 %v8666_v0  ;;  %v828_v52 = vld [vmem:[#allocation5 + $0x15b0] sm:$0xff]  ;;  %v825_v0 = vld [vmem:[#allocation5 + $0x1598] sm:$0xff] }
 0x399   :  { %v8720_v57 = vcombine.high %v824_v58, %v828_v52  ;;  %v8719_v10 = vcombine.low %v824_v58, %v828_v52  ;;  %v8721_v2 = vcombine.low %v825_v0, %v829_v55  ;;  %v877_v58 = vld [vmem:[#allocation5 + $0x1738] sm:$0xff] }
 0x39b   :  { %7211 = vmatpush1.bf16.msra.mxu0 %v8663_v60  ;;  %7555 = vmatpush1.bf16.msra.mxu1 %v8665_v61  ;;  %v8722_v60 = vcombine.high %v825_v0, %v829_v55  ;;  %v832_v61 = vld [vmem:[#allocation5 + $0x15d0] sm:$0xff] }
 0x39c   :  { %7223 = vmatprep.subr.bf16.mxu0 %v8672_v62  ;;  %7567 = vmatprep.subr.bf16.mxu1 %v8674_v63  ;;  %v836_v62 = vld [vmem:[#allocation5 + $0x15f0] sm:$0xff]  ;;  %v833_v63 = vld [vmem:[#allocation5 + $0x15d8] sm:$0xff] }
 0x39d   :  { %v8728_v3 = vcombine.high %v832_v61, %v836_v62  ;;  %v8727_v9 = vcombine.low %v832_v61, %v836_v62  ;;  %v885_v61 = vld [vmem:[#allocation5 + $0x1778] sm:$0xff] }
 0x39e   :  { %7213 = vmatmul.mubr.bf16.vlgmr.msra.gmra.mrb[4].mxu0 %v9497_v26  ;;  %7557 = vmatmul.mubr.bf16.vlgmr.msra.gmra.mrb[4].mxu1 %v9497_v26  ;;  %v8689_v26 = vcombine.low %v793_v11, %v797_v12  ;;  %v8729_v11 = vcombine.low %v833_v63, %v837_v1 }
 0x39f   :  { %7224 = vmatpush1.bf16.msra.mxu0 %v8671_v4  ;;  %7568 = vmatpush1.bf16.msra.mxu1 %v8673_v5  ;;  %v8730_v4 = vcombine.high %v833_v63, %v837_v1  ;;  %v840_v5 = vld [vmem:[#allocation5 + $0x1610] sm:$0xff] }
 0x3a0   :  { %7225 = vmatprep.subr.bf16.mxu0 %v8680_v43  ;;  %7569 = vmatprep.subr.bf16.mxu1 %v8682_v7  ;;  %v844_v43 = vld [vmem:[#allocation5 + $0x1630] sm:$0xff]  ;;  %v841_v7 = vld [vmem:[#allocation5 + $0x1618] sm:$0xff] }
 0x3a1   :  { %7255 = vmatprep.mubr.bf16.mxu0 %v9499_v38  ;;  %7599 = vmatprep.mubr.bf16.mxu1 %v9499_v38  ;;  %v8706_v38 = vcombine.high %v809_v28, %v813_v29  ;;  %v8736_v12 = vcombine.high %v840_v5, %v844_v43  ;;  %v8735_v18 = vcombine.low %v840_v5, %v844_v43  ;;  %v893_v5 = vld [vmem:[#allocation5 + $0x17b8] sm:$0xff] }
 0x3a2   :  { %v8737_v19 = vcombine.low %v841_v7, %v845_v8 }
 0x3a3   :  { %7226 = vmatpush1.bf16.msra.mxu0 %v8679_v15  ;;  %7570 = vmatpush1.bf16.msra.mxu1 %v8681_v14  ;;  %v8738_v15 = vcombine.high %v841_v7, %v845_v8  ;;  %v848_v14 = vld [vmem:[#allocation5 + $0x1650] sm:$0xff] }
 0x3a4   :  { %7227 = vmatprep.subr.bf16.mxu0 %v8688_v16  ;;  %7571 = vmatprep.subr.bf16.mxu1 %v8690_v17  ;;  %v852_v16 = vld [vmem:[#allocation5 + $0x1670] sm:$0xff]  ;;  %v849_v17 = vld [vmem:[#allocation5 + $0x1658] sm:$0xff] }
 0x3a5   :  { %v8744_v20 = vcombine.high %v848_v14, %v852_v16  ;;  %v8743_v24 = vcombine.low %v848_v14, %v852_v16  ;;  %v8745_v28 = vcombine.low %v849_v17, %v853_v53  ;;  %v901_v14 = vld [vmem:[#allocation5 + $0x17f8] sm:$0xff] }
 0x3a7   :  { %7228 = vmatpush1.bf16.msra.mxu0 %v8687_v21  ;;  %7572 = vmatpush1.bf16.msra.mxu1 %v8689_v26  ;;  %v8746_v21 = vcombine.high %v849_v17, %v853_v53  ;;  %v856_v26 = vld [vmem:[#allocation5 + $0x1690] sm:$0xff] }
 0x3a8   :  { %7229 = vmatprep.subr.bf16.mxu0 %v8696_v22  ;;  %7573 = vmatprep.subr.bf16.mxu1 %v8698_v23  ;;  %v860_v22 = vld [vmem:[#allocation5 + $0x16b0] sm:$0xff]  ;;  %v857_v23 = vld [vmem:[#allocation5 + $0x1698] sm:$0xff] }
 0x3a9   :  { %v8752_v29 = vcombine.high %v856_v26, %v860_v22  ;;  %v8751_v35 = vcombine.low %v856_v26, %v860_v22  ;;  %v8753_v39 = vcombine.low %v857_v23, %v861_v25  ;;  %v909_v26 = vld [vmem:[#allocation5 + $0x1838] sm:$0xff] }
 0x3ab   :  { %7230 = vmatpush1.bf16.msra.mxu0 %v8695_v30  ;;  %7574 = vmatpush1.bf16.msra.mxu1 %v8697_v31  ;;  %v8754_v30 = vcombine.high %v857_v23, %v861_v25  ;;  %v864_v31 = vld [vmem:[#allocation5 + $0x16d0] sm:$0xff] }
 0x3ac   :  { %7231 = vmatprep.subr.bf16.mxu0 %v8704_v32  ;;  %7575 = vmatprep.subr.bf16.mxu1 %v8706_v38  ;;  %v868_v32 = vld [vmem:[#allocation5 + $0x16f0] sm:$0xff]  ;;  %v865_v38 = vld [vmem:[#allocation5 + $0x16d8] sm:$0xff] }
 0x3ad   :  { %v8760_v40 = vcombine.high %v864_v31, %v868_v32  ;;  %v8759_v52 = vcombine.low %v864_v31, %v868_v32  ;;  %v8761_v0 = vcombine.low %v865_v38, %v869_v34  ;;  %v917_v31 = vld [vmem:[#allocation5 + $0x1878] sm:$0xff] }
 0x3af   :  { %7232 = vmatpush1.bf16.msra.mxu0 %v8703_v41  ;;  %7576 = vmatpush1.bf16.msra.mxu1 %v8705_v45  ;;  %v8762_v41 = vcombine.high %v865_v38, %v869_v34  ;;  %v872_v45 = vld [vmem:[#allocation5 + $0x1710] sm:$0xff] }
 0x3b0   :  { %7233 = vmatprep.subr.bf16.mxu0 %v8712_v27  ;;  %7577 = vmatprep.subr.bf16.mxu1 %v8714_v49  ;;  %v876_v27 = vld [vmem:[#allocation5 + $0x1730] sm:$0xff]  ;;  %v873_v49 = vld [vmem:[#allocation5 + $0x1718] sm:$0xff] }
 0x3b1   :  { %v8768_v55 = vcombine.high %v872_v45, %v876_v27  ;;  %v8767_v62 = vcombine.low %v872_v45, %v876_v27  ;;  %v8769_v63 = vcombine.low %v873_v49, %v877_v58  ;;  %v925_v45 = vld [vmem:[#allocation5 + $0x18b8] sm:$0xff] }
 0x3b3   :  { %7234 = vmatpush1.bf16.msra.mxu0 %v8711_v37  ;;  %7578 = vmatpush1.bf16.msra.mxu1 %v8713_v56  ;;  %v8770_v37 = vcombine.high %v873_v49, %v877_v58  ;;  %v880_v56 = vld [vmem:[#allocation5 + $0x1750] sm:$0xff] }
 0x3b4   :  { %7235 = vmatprep.subr.bf16.mxu0 %v8720_v57  ;;  %7579 = vmatprep.subr.bf16.mxu1 %v8722_v60  ;;  %v884_v57 = vld [vmem:[#allocation5 + $0x1770] sm:$0xff]  ;;  %v881_v60 = vld [vmem:[#allocation5 + $0x1758] sm:$0xff] }
 0x3b5   :  { %v8776_v1 = vcombine.high %v880_v56, %v884_v57  ;;  %v8775_v43 = vcombine.low %v880_v56, %v884_v57  ;;  %v8777_v7 = vcombine.low %v881_v60, %v885_v61  ;;  %v933_v56 = vld [vmem:[#allocation5 + $0x18f8] sm:$0xff] }
 0x3b7   :  { %7236 = vmatpush1.bf16.msra.mxu0 %v8719_v10  ;;  %7580 = vmatpush1.bf16.msra.mxu1 %v8721_v2  ;;  %v8778_v10 = vcombine.high %v881_v60, %v885_v61  ;;  %v888_v2 = vld [vmem:[#allocation5 + $0x1790] sm:$0xff] }
 0x3b8   :  { %7237 = vmatprep.subr.bf16.mxu0 %v8728_v3  ;;  %7581 = vmatprep.subr.bf16.mxu1 %v8730_v4  ;;  %v892_v3 = vld [vmem:[#allocation5 + $0x17b0] sm:$0xff]  ;;  %v889_v4 = vld [vmem:[#allocation5 + $0x1798] sm:$0xff] }
 0x3b9   :  { %v8784_v8 = vcombine.high %v888_v2, %v892_v3  ;;  %v8783_v16 = vcombine.low %v888_v2, %v892_v3  ;;  %v8785_v17 = vcombine.low %v889_v4, %v893_v5 }
 0x3bb   :  { %7238 = vmatpush1.bf16.msra.mxu0 %v8727_v9  ;;  %7582 = vmatpush1.bf16.msra.mxu1 %v8729_v11  ;;  %v8786_v9 = vcombine.high %v889_v4, %v893_v5  ;;  %v896_v11 = vld [vmem:[#allocation5 + $0x17d0] sm:$0xff] }
 0x3bc   :  { %7239 = vmatprep.subr.bf16.mxu0 %v8736_v12  ;;  %7583 = vmatprep.subr.bf16.mxu1 %v8738_v15  ;;  %v900_v12 = vld [vmem:[#allocation5 + $0x17f0] sm:$0xff]  ;;  %v897_v15 = vld [vmem:[#allocation5 + $0x17d8] sm:$0xff] }
 0x3bd   :  { %v8792_v53 = vcombine.high %v896_v11, %v900_v12  ;;  %v8791_v22 = vcombine.low %v896_v11, %v900_v12  ;;  %v8793_v23 = vcombine.low %v897_v15, %v901_v14  ;;  %v944_v5 = vld [vmem:[#allocation5 + $0x1950] sm:$0xff] }
 0x3bf   :  { %7240 = vmatpush1.bf16.msra.mxu0 %v8735_v18  ;;  %7584 = vmatpush1.bf16.msra.mxu1 %v8737_v19  ;;  %v8794_v18 = vcombine.high %v897_v15, %v901_v14  ;;  %v904_v19 = vld [vmem:[#allocation5 + $0x1810] sm:$0xff] }
 0x3c0   :  { %7241 = vmatprep.subr.bf16.mxu0 %v8744_v20  ;;  %7585 = vmatprep.subr.bf16.mxu1 %v8746_v21  ;;  %v908_v20 = vld [vmem:[#allocation5 + $0x1830] sm:$0xff]  ;;  %v905_v21 = vld [vmem:[#allocation5 + $0x1818] sm:$0xff] }
 0x3c1   :  { %v8800_v25 = vcombine.high %v904_v19, %v908_v20  ;;  %v8799_v32 = vcombine.low %v904_v19, %v908_v20  ;;  %v8801_v38 = vcombine.low %v905_v21, %v909_v26  ;;  %v952_v14 = vld [vmem:[#allocation5 + $0x1990] sm:$0xff] }
 0x3c3   :  { %7242 = vmatpush1.bf16.msra.mxu0 %v8743_v24  ;;  %7586 = vmatpush1.bf16.msra.mxu1 %v8745_v28  ;;  %v8802_v24 = vcombine.high %v905_v21, %v909_v26  ;;  %v912_v28 = vld [vmem:[#allocation5 + $0x1850] sm:$0xff] }
 0x3c4   :  { %7243 = vmatprep.subr.bf16.mxu0 %v8752_v29  ;;  %7587 = vmatprep.subr.bf16.mxu1 %v8754_v30  ;;  %v916_v29 = vld [vmem:[#allocation5 + $0x1870] sm:$0xff]  ;;  %v913_v30 = vld [vmem:[#allocation5 + $0x1858] sm:$0xff] }
 0x3c5   :  { %v8808_v34 = vcombine.high %v912_v28, %v916_v29  ;;  %v8807_v27 = vcombine.low %v912_v28, %v916_v29  ;;  %v8809_v49 = vcombine.low %v913_v30, %v917_v31  ;;  %v960_v26 = vld [vmem:[#allocation5 + $0x19d0] sm:$0xff] }
 0x3c7   :  { %7244 = vmatpush1.bf16.msra.mxu0 %v8751_v35  ;;  %7588 = vmatpush1.bf16.msra.mxu1 %v8753_v39  ;;  %v8810_v35 = vcombine.high %v913_v30, %v917_v31  ;;  %v920_v39 = vld [vmem:[#allocation5 + $0x1890] sm:$0xff] }
 0x3c8   :  { %7245 = vmatprep.subr.bf16.mxu0 %v8760_v40  ;;  %7589 = vmatprep.subr.bf16.mxu1 %v8762_v41  ;;  %v924_v40 = vld [vmem:[#allocation5 + $0x18b0] sm:$0xff]  ;;  %v921_v41 = vld [vmem:[#allocation5 + $0x1898] sm:$0xff] }
 0x3c9   :  { %v8816_v58 = vcombine.high %v920_v39, %v924_v40  ;;  %v8815_v57 = vcombine.low %v920_v39, %v924_v40  ;;  %v968_v31 = vld [vmem:[#allocation5 + $0x1a10] sm:$0xff] }
 0x3cb   :  { %7246 = vmatpush1.bf16.msra.mxu0 %v8759_v52  ;;  %7590 = vmatpush1.bf16.msra.mxu1 %v8761_v0  ;;  %v8818_v52 = vcombine.high %v921_v41, %v925_v45  ;;  %v928_v0 = vld [vmem:[#allocation5 + $0x18d0] sm:$0xff] }
 0x3cc   :  { %7247 = vmatprep.subr.bf16.mxu0 %v8768_v55  ;;  %7591 = vmatprep.subr.bf16.mxu1 %v8770_v37  ;;  %v932_v55 = vld [vmem:[#allocation5 + $0x18f0] sm:$0xff]  ;;  %v929_v37 = vld [vmem:[#allocation5 + $0x18d8] sm:$0xff] }
 0x3cd   :  { %v8824_v60 = vcombine.high %v928_v0, %v932_v55  ;;  %v8826_v61 = vcombine.high %v929_v37, %v933_v56  ;;  %v8823_v2 = vcombine.low %v928_v0, %v932_v55  ;;  %v8825_v3 = vcombine.low %v929_v37, %v933_v56  ;;  %v984_v56 = vld [vmem:[#allocation5 + $0x1a90] sm:$0xff] }
 0x3cf   :  { %7248 = vmatpush1.bf16.msra.mxu0 %v8767_v62  ;;  %7592 = vmatpush1.bf16.msra.mxu1 %v8769_v63  ;;  %v936_v62 = vld [vmem:[#allocation5 + $0x1910] sm:$0xff] }
 0x3d0   :  { %7249 = vmatprep.subr.bf16.mxu0 %v8776_v1  ;;  %7593 = vmatprep.subr.bf16.mxu1 %v8778_v10  ;;  %v940_v63 = vld [vmem:[#allocation5 + $0x1930] sm:$0xff]  ;;  %v937_v1 = vld [vmem:[#allocation5 + $0x1918] sm:$0xff] }
 0x3d1   :  { %v941_v10 = vld [vmem:[#allocation5 + $0x1938] sm:$0xff]  ;;  %v8832_v4 = vcombine.high %v936_v62, %v940_v63 }
 0x3d2   :  { %v8833_v11 = vcombine.low %v937_v1, %v941_v10 }
 0x3d3   :  { %7250 = vmatpush1.bf16.msra.mxu0 %v8775_v43  ;;  %7594 = vmatpush1.bf16.msra.mxu1 %v8777_v7  ;;  %v948_v43 = vld [vmem:[#allocation5 + $0x1970] sm:$0xff]  ;;  %v945_v7 = vld [vmem:[#allocation5 + $0x1958] sm:$0xff] }
 0x3d4   :  { %7251 = vmatprep.subr.bf16.mxu0 %v8784_v8  ;;  %7595 = vmatprep.subr.bf16.mxu1 %v8786_v9  ;;  %v949_v8 = vld [vmem:[#allocation5 + $0x1978] sm:$0xff]  ;;  %v8831_v9 = vcombine.low %v936_v62, %v940_v63  ;;  %v8840_v12 = vcombine.high %v944_v5, %v948_v43 }
 0x3d5   :  { %v8842_v15 = vcombine.high %v945_v7, %v949_v8  ;;  %v8841_v19 = vcombine.low %v945_v7, %v949_v8  ;;  %v1000_v8 = vld [vmem:[#allocation5 + $0x1b10] sm:$0xff] }
 0x3d7   :  { %7252 = vmatpush1.bf16.msra.mxu0 %v8783_v16  ;;  %7596 = vmatpush1.bf16.msra.mxu1 %v8785_v17  ;;  %v956_v16 = vld [vmem:[#allocation5 + $0x19b0] sm:$0xff]  ;;  %v953_v17 = vld [vmem:[#allocation5 + $0x1998] sm:$0xff] }
 0x3d8   :  { %7253 = vmatprep.subr.bf16.mxu0 %v8792_v53  ;;  %7597 = vmatprep.subr.bf16.mxu1 %v8794_v18  ;;  %v957_v53 = vld [vmem:[#allocation5 + $0x19b8] sm:$0xff]  ;;  %v8839_v18 = vcombine.low %v944_v5, %v948_v43  ;;  %v8848_v20 = vcombine.high %v952_v14, %v956_v16 }
 0x3d9   :  { %v8850_v21 = vcombine.high %v953_v17, %v957_v53  ;;  %v8849_v28 = vcombine.low %v953_v17, %v957_v53  ;;  %v1008_v53 = vld [vmem:[#allocation5 + $0x1b50] sm:$0xff] }
 0x3db   :  { %7254 = vmatpush1.bf16.msra.mxu0 %v8791_v22  ;;  %7598 = vmatpush1.bf16.msra.mxu1 %v8793_v23  ;;  %v964_v22 = vld [vmem:[#allocation5 + $0x19f0] sm:$0xff]  ;;  %v961_v23 = vld [vmem:[#allocation5 + $0x19d8] sm:$0xff] }
 0x3dc   :  { %7266 = vmatprep.subr.bf16.mxu0 %v8800_v25  ;;  %7610 = vmatprep.subr.bf16.mxu1 %v8802_v24  ;;  %v965_v25 = vld [vmem:[#allocation5 + $0x19f8] sm:$0xff]  ;;  %v8847_v24 = vcombine.low %v952_v14, %v956_v16  ;;  %v8856_v29 = vcombine.high %v960_v26, %v964_v22 }
 0x3dd   :  { %v8858_v30 = vcombine.high %v961_v23, %v965_v25  ;;  %v8857_v39 = vcombine.low %v961_v23, %v965_v25  ;;  %v1016_v25 = vld [vmem:[#allocation5 + $0x1b90] sm:$0xff] }
 0x3de   :  { %7256 = vmatmul.mubr.bf16.vlgmr.msra.gmra.mrb[4].mxu0 %v9505_v59  ;;  %7600 = vmatmul.mubr.bf16.vlgmr.msra.gmra.mrb[4].mxu1 %v9505_v59  ;;  %v8817_v59 = vcombine.low %v921_v41, %v925_v45  ;;  %v976_v45 = vld [vmem:[#allocation5 + $0x1a50] sm:$0xff] }
 0x3df   :  { %7267 = vmatpush1.bf16.msra.mxu0 %v8799_v32  ;;  %7611 = vmatpush1.bf16.msra.mxu1 %v8801_v38  ;;  %v972_v32 = vld [vmem:[#allocation5 + $0x1a30] sm:$0xff]  ;;  %v969_v38 = vld [vmem:[#allocation5 + $0x1a18] sm:$0xff] }
 0x3e0   :  { %7268 = vmatprep.subr.bf16.mxu0 %v8808_v34  ;;  %7612 = vmatprep.subr.bf16.mxu1 %v8810_v35  ;;  %v973_v34 = vld [vmem:[#allocation5 + $0x1a38] sm:$0xff]  ;;  %v8855_v35 = vcombine.low %v960_v26, %v964_v22  ;;  %v8864_v40 = vcombine.high %v968_v31, %v972_v32 }
 0x3e1   :  { %7298 = vmatprep.mubr.bf16.mxu0 %v9507_v6  ;;  %7642 = vmatprep.mubr.bf16.mxu1 %v9507_v6  ;;  %v8834_v6 = vcombine.high %v937_v1, %v941_v10  ;;  %v8866_v41 = vcombine.high %v969_v38, %v973_v34  ;;  %v8865_v0 = vcombine.low %v969_v38, %v973_v34  ;;  %v992_v10 = vld [vmem:[#allocation5 + $0x1ad0] sm:$0xff] }
 0x3e2   :  { %v1024_v34 = vld [vmem:[#allocation5 + $0x1bd0] sm:$0xff] }
 0x3e3   :  { %7269 = vmatpush1.bf16.msra.mxu0 %v8807_v27  ;;  %7613 = vmatpush1.bf16.msra.mxu1 %v8809_v49  ;;  %v980_v27 = vld [vmem:[#allocation5 + $0x1a70] sm:$0xff]  ;;  %v977_v49 = vld [vmem:[#allocation5 + $0x1a58] sm:$0xff] }
 0x3e4   :  { %7270 = vmatprep.subr.bf16.mxu0 %v8816_v58  ;;  %7614 = vmatprep.subr.bf16.mxu1 %v8818_v52  ;;  %v981_v58 = vld [vmem:[#allocation5 + $0x1a78] sm:$0xff]  ;;  %v8863_v52 = vcombine.low %v968_v31, %v972_v32  ;;  %v8872_v55 = vcombine.high %v976_v45, %v980_v27 }
 0x3e5   :  { %v8874_v37 = vcombine.high %v977_v49, %v981_v58  ;;  %v8873_v62 = vcombine.low %v977_v49, %v981_v58  ;;  %v1032_v58 = vld [vmem:[#allocation5 + $0x1c10] sm:$0xff] }
 0x3e7   :  { %7271 = vmatpush1.bf16.msra.mxu0 %v8815_v57  ;;  %7615 = vmatpush1.bf16.msra.mxu1 %v8817_v59  ;;  %v988_v57 = vld [vmem:[#allocation5 + $0x1ab0] sm:$0xff]  ;;  %v985_v59 = vld [vmem:[#allocation5 + $0x1a98] sm:$0xff] }
 0x3e8   :  { %7272 = vmatprep.subr.bf16.mxu0 %v8824_v60  ;;  %7616 = vmatprep.subr.bf16.mxu1 %v8826_v61  ;;  %v989_v60 = vld [vmem:[#allocation5 + $0x1ab8] sm:$0xff]  ;;  %v8871_v61 = vcombine.low %v976_v45, %v980_v27  ;;  %v8880_v63 = vcombine.high %v984_v56, %v988_v57 }
 0x3e9   :  { %v8882_v1 = vcombine.high %v985_v59, %v989_v60  ;;  %v8881_v5 = vcombine.low %v985_v59, %v989_v60  ;;  %v1040_v60 = vld [vmem:[#allocation5 + $0x1c50] sm:$0xff] }
 0x3eb   :  { %7273 = vmatpush1.bf16.msra.mxu0 %v8823_v2  ;;  %7617 = vmatpush1.bf16.msra.mxu1 %v8825_v3  ;;  %v996_v2 = vld [vmem:[#allocation5 + $0x1af0] sm:$0xff]  ;;  %v993_v3 = vld [vmem:[#allocation5 + $0x1ad8] sm:$0xff] }
 0x3ec   :  { %7274 = vmatprep.subr.bf16.mxu0 %v8832_v4  ;;  %7618 = vmatprep.subr.bf16.mxu1 %v8834_v6  ;;  %v997_v4 = vld [vmem:[#allocation5 + $0x1af8] sm:$0xff]  ;;  %v8879_v6 = vcombine.low %v984_v56, %v988_v57  ;;  %v8888_v43 = vcombine.high %v992_v10, %v996_v2 }
 0x3ed   :  { %v8890_v7 = vcombine.high %v993_v3, %v997_v4  ;;  %v8889_v14 = vcombine.low %v993_v3, %v997_v4  ;;  %v1048_v4 = vld [vmem:[#allocation5 + $0x1c90] sm:$0xff] }
 0x3ef   :  { %7275 = vmatpush1.bf16.msra.mxu0 %v8831_v9  ;;  %7619 = vmatpush1.bf16.msra.mxu1 %v8833_v11  ;;  %v1004_v9 = vld [vmem:[#allocation5 + $0x1b30] sm:$0xff]  ;;  %v1001_v11 = vld [vmem:[#allocation5 + $0x1b18] sm:$0xff] }
 0x3f0   :  { %7276 = vmatprep.subr.bf16.mxu0 %v8840_v12  ;;  %7620 = vmatprep.subr.bf16.mxu1 %v8842_v15  ;;  %v1005_v12 = vld [vmem:[#allocation5 + $0x1b38] sm:$0xff]  ;;  %v8887_v15 = vcombine.low %v992_v10, %v996_v2  ;;  %v8896_v16 = vcombine.high %v1000_v8, %v1004_v9 }
 0x3f1   :  { %v8898_v17 = vcombine.high %v1001_v11, %v1005_v12  ;;  %v8897_v26 = vcombine.low %v1001_v11, %v1005_v12  ;;  %v1056_v12 = vld [vmem:[#allocation5 + $0x1cd0] sm:$0xff] }
 0x3f3   :  { %7277 = vmatpush1.bf16.msra.mxu0 %v8839_v18  ;;  %7621 = vmatpush1.bf16.msra.mxu1 %v8841_v19  ;;  %v1012_v18 = vld [vmem:[#allocation5 + $0x1b70] sm:$0xff]  ;;  %v1009_v19 = vld [vmem:[#allocation5 + $0x1b58] sm:$0xff] }
 0x3f4   :  { %7278 = vmatprep.subr.bf16.mxu0 %v8848_v20  ;;  %7622 = vmatprep.subr.bf16.mxu1 %v8850_v21  ;;  %v1013_v20 = vld [vmem:[#allocation5 + $0x1b78] sm:$0xff]  ;;  %v8895_v21 = vcombine.low %v1000_v8, %v1004_v9  ;;  %v8904_v22 = vcombine.high %v1008_v53, %v1012_v18 }
 0x3f5   :  { %v8906_v23 = vcombine.high %v1009_v19, %v1013_v20  ;;  %v8905_v31 = vcombine.low %v1009_v19, %v1013_v20  ;;  %v1064_v19 = vld [vmem:[#allocation5 + $0x1d10] sm:$0xff] }
 0x3f6   :  { %v1068_v20 = vld [vmem:[#allocation5 + $0x1d30] sm:$0xff] }
 0x3f7   :  { %7279 = vmatpush1.bf16.msra.mxu0 %v8847_v24  ;;  %7623 = vmatpush1.bf16.msra.mxu1 %v8849_v28  ;;  %v1020_v24 = vld [vmem:[#allocation5 + $0x1bb0] sm:$0xff]  ;;  %v1017_v28 = vld [vmem:[#allocation5 + $0x1b98] sm:$0xff] }
 0x3f8   :  { %7280 = vmatprep.subr.bf16.mxu0 %v8856_v29  ;;  %7624 = vmatprep.subr.bf16.mxu1 %v8858_v30  ;;  %v1021_v29 = vld [vmem:[#allocation5 + $0x1bb8] sm:$0xff]  ;;  %v8903_v30 = vcombine.low %v1008_v53, %v1012_v18  ;;  %v8912_v32 = vcombine.high %v1016_v25, %v1020_v24 }
 0x3f9   :  { %v8914_v38 = vcombine.high %v1017_v28, %v1021_v29  ;;  %v8913_v45 = vcombine.low %v1017_v28, %v1021_v29  ;;  %v1076_v28 = vld [vmem:[#allocation5 + $0x1d70] sm:$0xff]  ;;  %v1073_v29 = vld [vmem:[#allocation5 + $0x1d58] sm:$0xff] }
 0x3fb   :  { %7281 = vmatpush1.bf16.msra.mxu0 %v8855_v35  ;;  %7625 = vmatpush1.bf16.msra.mxu1 %v8857_v39  ;;  %v1028_v35 = vld [vmem:[#allocation5 + $0x1bf0] sm:$0xff]  ;;  %v1025_v39 = vld [vmem:[#allocation5 + $0x1bd8] sm:$0xff] }
 0x3fc   :  { %7282 = vmatprep.subr.bf16.mxu0 %v8864_v40  ;;  %7626 = vmatprep.subr.bf16.mxu1 %v8866_v41  ;;  %v1029_v40 = vld [vmem:[#allocation5 + $0x1bf8] sm:$0xff]  ;;  %v8911_v41 = vcombine.low %v1016_v25, %v1020_v24  ;;  %v8920_v27 = vcombine.high %v1024_v34, %v1028_v35  ;;  %v8960_v25 = vcombine.high %v1064_v19, %v1068_v20  ;;  %v1072_v24 = vld [vmem:[#allocation5 + $0x1d50] sm:$0xff] }
 0x3fd   :  { %v8922_v49 = vcombine.high %v1025_v39, %v1029_v40  ;;  %v8921_v56 = vcombine.low %v1025_v39, %v1029_v40  ;;  %v1084_v39 = vld [vmem:[#allocation5 + $0x1db0] sm:$0xff]  ;;  %v1081_v40 = vld [vmem:[#allocation5 + $0x1d98] sm:$0xff] }
 0x3ff   :  { %7283 = vmatpush1.bf16.msra.mxu0 %v8863_v52  ;;  %7627 = vmatpush1.bf16.msra.mxu1 %v8865_v0  ;;  %v1036_v52 = vld [vmem:[#allocation5 + $0x1c30] sm:$0xff]  ;;  %v1033_v0 = vld [vmem:[#allocation5 + $0x1c18] sm:$0xff] }
 0x400   :  { %7284 = vmatprep.subr.bf16.mxu0 %v8872_v55  ;;  %7628 = vmatprep.subr.bf16.mxu1 %v8874_v37  ;;  %v1037_v55 = vld [vmem:[#allocation5 + $0x1c38] sm:$0xff]  ;;  %v8919_v37 = vcombine.low %v1024_v34, %v1028_v35  ;;  %v8928_v57 = vcombine.high %v1032_v58, %v1036_v52  ;;  %v1080_v35 = vld [vmem:[#allocation5 + $0x1d90] sm:$0xff] }
 0x401   :  { %v8930_v59 = vcombine.high %v1033_v0, %v1037_v55  ;;  %v8929_v10 = vcombine.low %v1033_v0, %v1037_v55  ;;  %v1092_v0 = vld [vmem:[#allocation5 + $0x1df0] sm:$0xff]  ;;  %v1089_v55 = vld [vmem:[#allocation5 + $0x1dd8] sm:$0xff] }
 0x403   :  { %7285 = vmatpush1.bf16.msra.mxu0 %v8871_v61  ;;  %7629 = vmatpush1.bf16.msra.mxu1 %v8873_v62  ;;  %v1044_v61 = vld [vmem:[#allocation5 + $0x1c70] sm:$0xff]  ;;  %v1041_v62 = vld [vmem:[#allocation5 + $0x1c58] sm:$0xff] }
 0x404   :  { %7286 = vmatprep.subr.bf16.mxu0 %v8880_v63  ;;  %7630 = vmatprep.subr.bf16.mxu1 %v8882_v1  ;;  %v1045_v63 = vld [vmem:[#allocation5 + $0x1c78] sm:$0xff]  ;;  %v8927_v1 = vcombine.low %v1032_v58, %v1036_v52  ;;  %v8936_v2 = vcombine.high %v1040_v60, %v1044_v61  ;;  %v1088_v52 = vld [vmem:[#allocation5 + $0x1dd0] sm:$0xff] }
 0x405   :  { %v8938_v3 = vcombine.high %v1041_v62, %v1045_v63  ;;  %v8937_v8 = vcombine.low %v1041_v62, %v1045_v63  ;;  %v1100_v62 = vld [vmem:[#allocation5 + $0x1e30] sm:$0xff]  ;;  %v1097_v63 = vld [vmem:[#allocation5 + $0x1e18] sm:$0xff] }
 0x407   :  { %7287 = vmatpush1.bf16.msra.mxu0 %v8879_v6  ;;  %7631 = vmatpush1.bf16.msra.mxu1 %v8881_v5  ;;  %v1052_v6 = vld [vmem:[#allocation5 + $0x1cb0] sm:$0xff]  ;;  %v1049_v5 = vld [vmem:[#allocation5 + $0x1c98] sm:$0xff] }
 0x408   :  { %7288 = vmatprep.subr.bf16.mxu0 %v8888_v43  ;;  %7632 = vmatprep.subr.bf16.mxu1 %v8890_v7  ;;  %v1053_v43 = vld [vmem:[#allocation5 + $0x1cb8] sm:$0xff]  ;;  %v8935_v7 = vcombine.low %v1040_v60, %v1044_v61  ;;  %v8944_v9 = vcombine.high %v1048_v4, %v1052_v6  ;;  %v1096_v61 = vld [vmem:[#allocation5 + $0x1e10] sm:$0xff] }
 0x409   :  { %v8946_v11 = vcombine.high %v1049_v5, %v1053_v43 }
 0x40b   :  { %7289 = vmatpush1.bf16.msra.mxu0 %v8887_v15  ;;  %7633 = vmatpush1.bf16.msra.mxu1 %v8889_v14  ;;  %v1060_v15 = vld [vmem:[#allocation5 + $0x1cf0] sm:$0xff]  ;;  %v1057_v14 = vld [vmem:[#allocation5 + $0x1cd8] sm:$0xff] }
 0x40c   :  { %7290 = vmatprep.subr.bf16.mxu0 %v8896_v16  ;;  %7634 = vmatprep.subr.bf16.mxu1 %v8898_v17  ;;  %v1061_v16 = vld [vmem:[#allocation5 + $0x1cf8] sm:$0xff]  ;;  %v8943_v17 = vcombine.low %v1048_v4, %v1052_v6  ;;  %v8952_v53 = vcombine.high %v1056_v12, %v1060_v15  ;;  %v1104_v6 = vld [vmem:[#allocation5 + $0x1e50] sm:$0xff] }
 0x40d   :  { %v8954_v18 = vcombine.high %v1057_v14, %v1061_v16 }
 0x40f   :  { %7291 = vmatpush1.bf16.msra.mxu0 %v8895_v21  ;;  %7635 = vmatpush1.bf16.msra.mxu1 %v8897_v26  ;;  %v1065_v21 = vld [vmem:[#allocation5 + $0x1d18] sm:$0xff] }
 0x410   :  { %7292 = vmatprep.subr.bf16.mxu0 %v8904_v22  ;;  %7636 = vmatprep.subr.bf16.mxu1 %v8906_v23  ;;  %v1069_v26 = vld [vmem:[#allocation5 + $0x1d38] sm:$0xff]  ;;  %v8951_v22 = vcombine.low %v1056_v12, %v1060_v15  ;;  %v8953_v23 = vcombine.low %v1057_v14, %v1061_v16  ;;  %v1112_v15 = vld [vmem:[#allocation5 + $0x1e90] sm:$0xff] }
 0x411   :  { %v1116_v14 = vld [vmem:[#allocation5 + $0x1eb0] sm:$0xff]  ;;  %v1113_v16 = vld [vmem:[#allocation5 + $0x1e98] sm:$0xff] }
 0x413   :  { %7293 = vmatpush1.bf16.msra.mxu0 %v8903_v30  ;;  %7637 = vmatpush1.bf16.msra.mxu1 %v8905_v31  ;;  %v1077_v30 = vld [vmem:[#allocation5 + $0x1d78] sm:$0xff]  ;;  %v8959_v31 = vcombine.low %v1064_v19, %v1068_v20  ;;  %v1120_v20 = vld [vmem:[#allocation5 + $0x1ed0] sm:$0xff] }
 0x414   :  { %7294 = vmatprep.subr.bf16.mxu0 %v8912_v32  ;;  %7638 = vmatprep.subr.bf16.mxu1 %v8914_v38  ;;  %v8961_v32 = vcombine.low %v1065_v21, %v1069_v26  ;;  %v8968_v38 = vcombine.high %v1072_v24, %v1076_v28  ;;  %v8970_v34 = vcombine.high %v1073_v29, %v1077_v30 }
 0x417   :  { %7295 = vmatpush1.bf16.msra.mxu0 %v8911_v41  ;;  %7639 = vmatpush1.bf16.msra.mxu1 %v8913_v45  ;;  %v1085_v41 = vld [vmem:[#allocation5 + $0x1db8] sm:$0xff]  ;;  %v8967_v45 = vcombine.low %v1072_v24, %v1076_v28  ;;  %v1128_v28 = vld [vmem:[#allocation5 + $0x1f10] sm:$0xff] }
 0x418   :  { %7296 = vmatprep.subr.bf16.mxu0 %v8920_v27  ;;  %7640 = vmatprep.subr.bf16.mxu1 %v8922_v49  ;;  %v8969_v27 = vcombine.low %v1073_v29, %v1077_v30  ;;  %v8976_v49 = vcombine.high %v1080_v35, %v1084_v39  ;;  %v8978_v58 = vcombine.high %v1081_v40, %v1085_v41  ;;  %v1132_v29 = vld [vmem:[#allocation5 + $0x1f30] sm:$0xff]  ;;  %v1129_v30 = vld [vmem:[#allocation5 + $0x1f18] sm:$0xff] }
 0x41b   :  { %7297 = vmatpush1.bf16.msra.mxu0 %v8919_v37  ;;  %7641 = vmatpush1.bf16.msra.mxu1 %v8921_v56  ;;  %v1093_v37 = vld [vmem:[#allocation5 + $0x1df8] sm:$0xff]  ;;  %v8975_v56 = vcombine.low %v1080_v35, %v1084_v39  ;;  %v1136_v39 = vld [vmem:[#allocation5 + $0x1f50] sm:$0xff] }
 0x41c   :  { %7309 = vmatprep.subr.bf16.mxu0 %v8928_v57  ;;  %7653 = vmatprep.subr.bf16.mxu1 %v8930_v59  ;;  %v8977_v57 = vcombine.low %v1081_v40, %v1085_v41  ;;  %v8984_v59 = vcombine.high %v1088_v52, %v1092_v0  ;;  %v8986_v60 = vcombine.high %v1089_v55, %v1093_v37  ;;  %v1140_v40 = vld [vmem:[#allocation5 + $0x1f70] sm:$0xff]  ;;  %v1137_v41 = vld [vmem:[#allocation5 + $0x1f58] sm:$0xff] }
 0x41e   :  { %7299 = vmatmul.mubr.bf16.vlgmr.msra.gmra.mrb[4].mxu0 %v9513_v33  ;;  %7643 = vmatmul.mubr.bf16.vlgmr.msra.gmra.mrb[4].mxu1 %v9513_v33  ;;  %v8945_v33 = vcombine.low %v1049_v5, %v1053_v43  ;;  %v1108_v5 = vld [vmem:[#allocation5 + $0x1e70] sm:$0xff]  ;;  %v1105_v43 = vld [vmem:[#allocation5 + $0x1e58] sm:$0xff] }
 0x41f   :  { %7310 = vmatpush1.bf16.msra.mxu0 %v8927_v1  ;;  %7654 = vmatpush1.bf16.msra.mxu1 %v8929_v10  ;;  %v1101_v1 = vld [vmem:[#allocation5 + $0x1e38] sm:$0xff]  ;;  %v8983_v10 = vcombine.low %v1088_v52, %v1092_v0  ;;  %v1144_v0 = vld [vmem:[#allocation5 + $0x1f90] sm:$0xff] }
 0x420   :  { %7311 = vmatprep.subr.bf16.mxu0 %v8936_v2  ;;  %7655 = vmatprep.subr.bf16.mxu1 %v8938_v3  ;;  %v8985_v2 = vcombine.low %v1089_v55, %v1093_v37  ;;  %v8992_v3 = vcombine.high %v1096_v61, %v1100_v62  ;;  %v8994_v4 = vcombine.high %v1097_v63, %v1101_v1  ;;  %v1148_v55 = vld [vmem:[#allocation5 + $0x1fb0] sm:$0xff]  ;;  %v1145_v37 = vld [vmem:[#allocation5 + $0x1f98] sm:$0xff] }
 0x421   :  { %7341 = vmatprep.mubr.bf16.mxu0 %v9515_v46  ;;  %7685 = vmatprep.mubr.bf16.mxu1 %v9515_v46  ;;  %v8962_v46 = vcombine.high %v1065_v21, %v1069_v26  ;;  %v1124_v21 = vld [vmem:[#allocation5 + $0x1ef0] sm:$0xff]  ;;  %v1121_v26 = vld [vmem:[#allocation5 + $0x1ed8] sm:$0xff] }
 0x423   :  { %7312 = vmatpush1.bf16.msra.mxu0 %v8935_v7  ;;  %7656 = vmatpush1.bf16.msra.mxu1 %v8937_v8  ;;  %v1109_v7 = vld [vmem:[#allocation5 + $0x1e78] sm:$0xff]  ;;  %v8991_v8 = vcombine.low %v1096_v61, %v1100_v62  ;;  %v1152_v62 = vld [vmem:[#allocation5 + $0x1fd0] sm:$0xff] }
 0x424   :  { %7313 = vmatprep.subr.bf16.mxu0 %v8944_v9  ;;  %7657 = vmatprep.subr.bf16.mxu1 %v8946_v11  ;;  %v8993_v9 = vcombine.low %v1097_v63, %v1101_v1  ;;  %v9000_v11 = vcombine.high %v1104_v6, %v1108_v5  ;;  %v9002_v12 = vcombine.high %v1105_v43, %v1109_v7  ;;  %v1156_v63 = vld [vmem:[#allocation5 + $0x1ff0] sm:$0xff]  ;;  %v1153_v1 = vld [vmem:[#allocation5 + $0x1fd8] sm:$0xff] }
 0x427   :  { %7314 = vmatpush1.bf16.msra.mxu0 %v8943_v17  ;;  %7658 = vmatpush1.bf16.msra.mxu1 %v8945_v33  ;;  %v1117_v17 = vld [vmem:[#allocation5 + $0x1eb8] sm:$0xff]  ;;  %v8999_v33 = vcombine.low %v1104_v6, %v1108_v5  ;;  %v9047_v5 = vcombine.low %v1152_v62, %v1156_v63 }
 0x428   :  { %7315 = vmatprep.subr.bf16.mxu0 %v8952_v53  ;;  %7659 = vmatprep.subr.bf16.mxu1 %v8954_v18  ;;  %v9001_v53 = vcombine.low %v1105_v43, %v1109_v7  ;;  %v9008_v18 = vcombine.high %v1112_v15, %v1116_v14  ;;  %v9010_v19 = vcombine.high %v1113_v16, %v1117_v17  ;;  %v9361_v7 = vmov 0  }
 0x429   :  { %9206 = vset.pattern.permute.xlu0 %v9361_v7  ;;  %9207 = vset.pattern.permute.xlu1 %v9361_v7 }
 0x42b   :  { %7316 = vmatpush1.bf16.msra.mxu0 %v8951_v22  ;;  %7660 = vmatpush1.bf16.msra.mxu1 %v8953_v23  ;;  %v1125_v22 = vld [vmem:[#allocation5 + $0x1ef8] sm:$0xff]  ;;  %v9007_v23 = vcombine.low %v1112_v15, %v1116_v14  ;;  %v1158_v15 = vld [vmem:[#allocation7] sm:$0xff] }
 0x42c   :  { %7317 = vmatprep.subr.bf16.mxu0 %v8960_v25  ;;  %7661 = vmatprep.subr.bf16.mxu1 %v8962_v46  ;;  %v9009_v25 = vcombine.low %v1113_v16, %v1117_v17  ;;  %v9016_v46 = vcombine.high %v1120_v20, %v1124_v21  ;;  %v9018_v24 = vcombine.high %v1121_v26, %v1125_v22 }
 0x42f   :  { %7318 = vmatpush1.bf16.msra.mxu0 %v8959_v31  ;;  %7662 = vmatpush1.bf16.msra.mxu1 %v8961_v32  ;;  %v1133_v31 = vld [vmem:[#allocation5 + $0x1f38] sm:$0xff]  ;;  %v9015_v32 = vcombine.low %v1120_v20, %v1124_v21 }
 0x430   :  { %7319 = vmatprep.subr.bf16.mxu0 %v8968_v38  ;;  %7663 = vmatprep.subr.bf16.mxu1 %v8970_v34  ;;  %v9017_v38 = vcombine.low %v1121_v26, %v1125_v22  ;;  %v9024_v34 = vcombine.high %v1128_v28, %v1132_v29  ;;  %v9026_v35 = vcombine.high %v1129_v30, %v1133_v31 }
 0x433   :  { %7320 = vmatpush1.bf16.msra.mxu0 %v8967_v45  ;;  %7664 = vmatpush1.bf16.msra.mxu1 %v8969_v27  ;;  %v1141_v45 = vld [vmem:[#allocation5 + $0x1f78] sm:$0xff]  ;;  %v9023_v27 = vcombine.low %v1128_v28, %v1132_v29 }
 0x434   :  { %7321 = vmatprep.subr.bf16.mxu0 %v8976_v49  ;;  %7665 = vmatprep.subr.bf16.mxu1 %v8978_v58  ;;  %v9025_v49 = vcombine.low %v1129_v30, %v1133_v31  ;;  %v9032_v58 = vcombine.high %v1136_v39, %v1140_v40  ;;  %v9034_v52 = vcombine.high %v1137_v41, %v1141_v45 }
 0x437   :  { %7322 = vmatpush1.bf16.msra.mxu0 %v8975_v56  ;;  %7666 = vmatpush1.bf16.msra.mxu1 %v8977_v57  ;;  %v1149_v56 = vld [vmem:[#allocation5 + $0x1fb8] sm:$0xff]  ;;  %v9031_v57 = vcombine.low %v1136_v39, %v1140_v40 }
 0x438   :  { %7323 = vmatprep.subr.bf16.mxu0 %v8984_v59  ;;  %7667 = vmatprep.subr.bf16.mxu1 %v8986_v60  ;;  %v9033_v59 = vcombine.low %v1137_v41, %v1141_v45  ;;  %v9040_v60 = vcombine.high %v1144_v0, %v1148_v55  ;;  %v9042_v61 = vcombine.high %v1145_v37, %v1149_v56 }
 0x43b   :  { %7324 = vmatpush1.bf16.msra.mxu0 %v8983_v10  ;;  %7668 = vmatpush1.bf16.msra.mxu1 %v8985_v2  ;;  %v1157_v10 = vld [vmem:[#allocation5 + $0x1ff8] sm:$0xff]  ;;  %v9039_v2 = vcombine.low %v1144_v0, %v1148_v55 }
 0x43c   :  { %7325 = vmatprep.subr.bf16.mxu0 %v8992_v3  ;;  %7669 = vmatprep.subr.bf16.mxu1 %v8994_v4  ;;  %v9041_v3 = vcombine.low %v1145_v37, %v1149_v56  ;;  %v9048_v4 = vcombine.high %v1152_v62, %v1156_v63  ;;  %v9050_v6 = vcombine.high %v1153_v1, %v1157_v10 }
 0x43d   :  { %v9049_v43 = vcombine.low %v1153_v1, %v1157_v10 }
 0x43f   :  { %7326 = vmatpush1.bf16.msra.mxu0 %v8991_v8  ;;  %7670 = vmatpush1.bf16.msra.mxu1 %v8993_v9  ;;  %v1160_v8 = vlaneseq }
 0x440   :  { %7327 = vmatprep.subr.bf16.mxu0 %v9000_v11  ;;  %7671 = vmatprep.subr.bf16.mxu1 %v9002_v12 }
 0x441   :  { %v1161_v9 = vshrl.u32 %v1160_v8, 7 }
 0x443   :  { %7328 = vmatpush1.bf16.msra.mxu0 %v8999_v33  ;;  %7672 = vmatpush1.bf16.msra.mxu1 %v9001_v53  ;;  %v9573_v11 = vsub.s32 0, %v1161_v9  ;;  %v9575_v12 = vsub.s32 1, %v1161_v9  ;;  %v9579_v17 = vsub.s32 2, %v1161_v9  ;;  %v9607_v28 = vsub.s32 4, %v1161_v9 }
 0x444   :  { %7329 = vmatprep.subr.bf16.mxu0 %v9008_v18  ;;  %7673 = vmatprep.subr.bf16.mxu1 %v9010_v19  ;;  %v9584_v18 = vsub.s32 3, %v1161_v9  ;;  %v9613_v31 = vsub.s32 6, %v1161_v9 }
 0x445   :  { %v1163_v14 = vrot.slane %v1158_v15, %v9573_v11  ;;  %v1167_v16 = vrot.slane %v1158_v15, %v9575_v12  ;;  %v1171_v53 = vrot.slane %v1158_v15, %v9579_v17  ;;  %v1179_v40 = vrot.slane %v1158_v15, %v9607_v28 }
 0x447   :  { %7330 = vmatpush1.bf16.msra.mxu0 %v9007_v23  ;;  %7674 = vmatpush1.bf16.msra.mxu1 %v9009_v25  ;;  %v9067_v33 = vadd.f32 %v9539_v36, %v1163_v14  ;;  %v9069_v19 = vadd.f32 %v9547_v48, %v1163_v14  ;;  %v9070_v20 = vadd.f32 %v9551_v51, %v1167_v16 }
 0x448   :  { %7331 = vmatprep.subr.bf16.mxu0 %v9016_v46  ;;  %7675 = vmatprep.subr.bf16.mxu1 %v9018_v24  ;;  %v9071_v22 = vadd.f32 %v9541_v42, %v1171_v53  ;;  %v1175_v23 = vrot.slane %v1158_v15, %v9584_v18  ;;  %v9073_v51 = vadd.f32 %v9549_v50, %v1171_v53 }
 0x449   :  { %v9588_v21 = vmax.f32 %v9067_v33, 0.0  ;;  %v9594_v25 = vmax.f32 %v9069_v19, 0.0  ;;  %v9596_v36 = vmax.f32 %v9070_v20, 0.0 }
 0x44a   :  { %v9603_v46 = vmax.f32 %v9071_v22, 0.0  ;;  %v9072_v24 = vadd.f32 %v9545_v47, %v1175_v23  ;;  %v9074_v42 = vadd.f32 %v9553_v54, %v1175_v23 }
 0x44b   :  { %7332 = vmatpush1.bf16.msra.mxu0 %v9015_v32  ;;  %7676 = vmatpush1.bf16.msra.mxu1 %v9017_v38  ;;  %v7740_v29 = vmul.f32 %v9594_v25, %v9594_v25  ;;  %v7741_v30 = vmul.f32 %v9596_v36, %v9596_v36  ;;  %v9615_v32 = vsub.s32 5, %v1161_v9  ;;  %v9619_v38 = vsub.s32 7, %v1161_v9 }
 0x44c   :  { %7333 = vmatprep.subr.bf16.mxu0 %v9024_v34  ;;  %7677 = vmatprep.subr.bf16.mxu1 %v9026_v35  ;;  %v9621_v34 = vmax.f32 %v9073_v51, 0.0  ;;  %v7734_v54 = vmul.f32 %v9603_v46, %v9603_v46  ;;  %v9625_v35 = vmax.f32 %v9072_v24, 0.0  ;;  %v7721_v39 = vadd.f32 %v9596_v36, %v9594_v25 }
 0x44d   :  { %v7757_v41 = vadd.f32 %v7741_v30, %v7740_v29  ;;  %v9630_v45 = vmax.f32 %v9074_v42, 0.0 }
 0x44e   :  { %v7742_v55 = vmul.f32 %v9621_v34, %v9621_v34  ;;  %v7735_v56 = vmul.f32 %v9625_v35, %v9625_v35 }
 0x44f   :  { %7334 = vmatpush1.bf16.msra.mxu0 %v9023_v27  ;;  %7678 = vmatpush1.bf16.msra.mxu1 %v9025_v49  ;;  %v1187_v27 = vrot.slane %v1158_v15, %v9613_v31  ;;  %v1183_v49 = vrot.slane %v1158_v15, %v9615_v32  ;;  %v7743_v62 = vmul.f32 %v9630_v45, %v9630_v45 }
 0x450   :  { %7335 = vmatprep.subr.bf16.mxu0 %v9032_v58  ;;  %7679 = vmatprep.subr.bf16.mxu1 %v9034_v52  ;;  %v1191_v52 = vrot.slane %v1158_v15, %v9619_v38  ;;  %v7758_v63 = vadd.f32 %v7757_v41, %v7742_v55 }
 0x452   :  { %v7759_v22 = vadd.f32 %v7758_v63, %v7743_v62 }
 0x453   :  { %7336 = vmatpush1.bf16.msra.mxu0 %v9031_v57  ;;  %7680 = vmatpush1.bf16.msra.mxu1 %v9033_v59  ;;  %v7722_v57 = vadd.f32 %v7721_v39, %v9621_v34 }
 0x454   :  { %7337 = vmatprep.subr.bf16.mxu0 %v9040_v60  ;;  %7681 = vmatprep.subr.bf16.mxu1 %v9042_v61 }
 0x457   :  { %7338 = vmatpush1.bf16.msra.mxu0 %v9039_v2  ;;  %7682 = vmatpush1.bf16.msra.mxu1 %v9041_v3 }
 0x458   :  { %7339 = vmatprep.subr.bf16.mxu0 %v9048_v4  ;;  %7683 = vmatprep.subr.bf16.mxu1 %v9050_v6 }
 0x45b   :  { %7340 = vmatpush1.bf16.msra.mxu0 %v9047_v5  ;;  %7684 = vmatpush1.bf16.msra.mxu1 %v9049_v43 }
 0x45e   :  { %7342 = vmatmul.mubr.bf16.vlgmr.msra.gmra.mrb[4].mxu0 %v9521_v13  ;;  %7686 = vmatmul.mubr.bf16.vlgmr.msra.gmra.mrb[4].mxu1 %v9521_v13  ;;  %v9068_v13 = vadd.f32 %v9543_v44, %v1167_v16  ;;  %v7732_v44 = vmul.f32 %v9588_v21, %v9588_v21 }
 0x460   :  { %v9590_v26 = vmax.f32 %v9068_v13, 0.0  ;;  %v7723_v13 = vadd.f32 %v7722_v57, %v9630_v45 }
 0x462   :  { %v7733_v48 = vmul.f32 %v9590_v26, %v9590_v26  ;;  %v7712_v50 = vadd.f32 %v9590_v26, %v9588_v21 }
 0x464   :  { %v7748_v47 = vadd.f32 %v7733_v48, %v7732_v44  ;;  %v7713_v58 = vadd.f32 %v7712_v50, %v9603_v46 }
 0x466   :  { %v7749_v0 = vadd.f32 %v7748_v47, %v7734_v54  ;;  %v7714_v4 = vadd.f32 %v7713_v58, %v9625_v35 }
 0x468   :  { %v7750_v9 = vadd.f32 %v7749_v0, %v7735_v56 }
 0x531   :  { %v7343_v37 = vpop.f32.mrb[4].mxu0  ;;  %v7687_v60 = vpop.f32.mrb[4].mxu1 }
 0x532   :  { %v9075_v59 = vadd.f32 %v7343_v37, %v1179_v40  ;;  %v7345_v61 = vpop.f32.mrb[5].mxu0  ;;  %v9079_v1 = vadd.f32 %v7687_v60, %v1187_v27  ;;  %v7689_v2 = vpop.f32.mrb[5].mxu1 }
 0x533   :  { %v9076_v10 = vadd.f32 %v7345_v61, %v1183_v49  ;;  %v7347_v3 = vpop.f32.mrb[6].mxu0  ;;  %v9080_v5 = vadd.f32 %v7689_v2, %v1191_v52  ;;  %v7691_v7 = vpop.f32.mrb[6].mxu1 }
 0x534   :  { %v9644_v6 = vmax.f32 %v9075_v59, 0.0  ;;  %v9077_v43 = vadd.f32 %v7347_v3, %v1179_v40  ;;  %v7349_v8 = vpop.f32.mrb[7].mxu0  ;;  %v9081_v14 = vadd.f32 %v7691_v7, %v1187_v27  ;;  %v7693_v33 = vpop.f32.mrb[7].mxu1  ;;  %v9654_v23 = vmax.f32 %v9079_v1, 0.0  ;;  %v7925_v1 = vld [vmem:[%s9819_s5 + $0x8] sm:$0xff] }
 0x535   :  { %v9646_v15 = vmax.f32 %v9076_v10, 0.0  ;;  %v9078_v16 = vadd.f32 %v7349_v8, %v1183_v49  ;;  %v9660_v51 = vmax.f32 %v9080_v5, 0.0  ;;  %v9082_v47 = vadd.f32 %v7693_v33, %v1191_v52  ;;  %v7924_v10 = vld [vmem:[%s9819_s5] sm:$0xff]  ;;  %s9362_s5 = smov [#allocation11]  }
 0x536   :  { %v7715_v53 = vadd.f32 %v7714_v4, %v9644_v6  ;;  %v7736_v19 = vmul.f32 %v9644_v6, %v9644_v6  ;;  %v9652_v20 = vmax.f32 %v9077_v43, 0.0  ;;  %v9666_v30 = vmax.f32 %v9081_v14, 0.0  ;;  %s8013_s15 = sshll.u32 %s9362_s5, 4  ;;  %s8014_s15 = int_to_ptr.vmem [resolvable:$true] %s8013_s15 }
 0x537   :  { %v7737_v44 = vmul.f32 %v9646_v15, %v9646_v15  ;;  %v9658_v48 = vmax.f32 %v9078_v16, 0.0  ;;  %v7738_v27 = vmul.f32 %v9654_v23, %v9654_v23  ;;  %v9676_v37 = vmax.f32 %v9082_v47, 0.0  ;;  %s9322_s16 = scalar_lea.vmem %s8014_s15, 1024  ;;  %p9327_p13 = scmp.lt.s32.totalorder %s8014_s15, %s8014_s15 }
 0x538   :  { %v7724_v24 = vadd.f32 %v7723_v13, %v9652_v20  ;;  %v7744_v42 = vmul.f32 %v9652_v20, %v9652_v20  ;;  %v7716_v29 = vadd.f32 %v7715_v53, %v9646_v15  ;;  %v7751_v54 = vadd.f32 %v7750_v9, %v7736_v19  ;;  %v7808_v53 = vld [vmem:[#allocation8] sm:$0xff]  ;;  %v7866_v19 = vld [vmem:[#allocation10] sm:$0xff]  ;;  %p9323_p12 = scmp.ne.s32.totalorder %s8014_s15, %s9322_s16  ;;  %p9328_p0 = scmp.lt.s32.totalorder %s9322_s16, %s9322_s16 }
 0x539   :  { %v7745_v50 = vmul.f32 %v9658_v48, %v9658_v48  ;;  %v7739_v52 = vmul.f32 %v9660_v51, %v9660_v51  ;;  %v7746_v57 = vmul.f32 %v9666_v30, %v9666_v30  ;;  %v7747_v62 = vmul.f32 %v9676_v37, %v9676_v37 }
 0x53a   :  { %v7717_v39 = vadd.f32 %v7716_v29, %v9654_v23  ;;  %v7725_v40 = vadd.f32 %v7724_v24, %v9658_v48  ;;  %v7760_v41 = vadd.f32 %v7759_v22, %v7744_v42  ;;  %v7752_v49 = vadd.f32 %v7751_v54, %v7737_v44  ;;  %p9329_p1 = por %p9328_p0, %p9327_p13 }
 0x53b   :  { %v9696_v44 = vrot.slane %v7808_v53, %v9573_v11  ;;  %v9699_v42 = vrot.slane %v7866_v19, %v9573_v11  ;;  %v9702_v29 = vrot.slane %v7808_v53, %v9579_v17  ;;  %v9708_v47 = vrot.slane %v7808_v53, %v9575_v12 }
 0x53c   :  { %v7718_v58 = vadd.f32 %v7717_v39, %v9660_v51  ;;  %v7726_v0 = vadd.f32 %v7725_v40, %v9666_v30  ;;  %v7761_v55 = vadd.f32 %v7760_v41, %v7745_v50  ;;  %v7753_v56 = vadd.f32 %v7752_v49, %v7738_v27  ;;  %p9330_p2 = pnand %p9329_p1, %p9323_p12 }
 0x53d   :  { %v9705_v50 = vrot.slane %v7866_v19, %v9579_v17  ;;  %v9711_v54 = vrot.slane %v7866_v19, %v9575_v12  ;;  %v9714_v39 = vrot.slane %v7808_v53, %v9584_v18  ;;  %v9717_v40 = vrot.slane %v7866_v19, %v9584_v18 }
 0x53e   :  { %7719 = vadd.xlane.f32.xlu0 %v7718_v58  ;;  %v7754_v59 = vadd.f32 %v7753_v56, %v7739_v52  ;;  %v7762_v60 = vadd.f32 %v7761_v55, %v7746_v57  ;;  %v7727_v61 = vadd.f32 %v7726_v0, %v9676_v37  ;;  %v9720_v11 = vrot.slane %v7808_v53, %v9607_v28 }
 0x53f   :  { %v9723_v41 = vrot.slane %v7866_v19, %v9607_v28  ;;  %v9726_v17 = vrot.slane %v7808_v53, %v9613_v31  ;;  %v9729_v27 = vrot.slane %v7866_v19, %v9613_v31  ;;  %v9732_v12 = vrot.slane %v7808_v53, %v9615_v32 }
 0x540   :  { %7755 = vadd.xlane.f32.xlu1 %v7754_v59  ;;  %v7763_v63 = vadd.f32 %v7762_v60, %v7747_v62  ;;  %v9735_v49 = vrot.slane %v7866_v19, %v9615_v32  ;;  %v9738_v18 = vrot.slane %v7808_v53, %v9619_v38  ;;  %v9741_v58 = vrot.slane %v7866_v19, %v9619_v38 }
 0x542   :  { %7728 = vadd.xlane.f32.xlu0 %v7727_v61 }
 0x544   :  { %7764 = vadd.xlane.f32.xlu1 %v7763_v63 }
 0x555   :  { %7933 = vperm.xlu1 %9207, %v7925_v1  }
 0x558   :  { %7928 = vperm.xlu0 %9206, %v7924_v10  }
 0x5cb   :  { %v7720_v2 = vpop.xlane.xlu0 %7719 }
 0x5cc   :  { %v7730_v3 = vmul.f32 0.0009765625, %v7720_v2 }
 0x5cd   :  { %v7756_v4 = vpop.xlane.xlu1 %7755 }
 0x5ce   :  { %v7768_v5 = vmul.f32 %v7730_v3, %v7730_v3  ;;  %v7766_v43 = vmul.f32 0.0009765625, %v7756_v4  ;;  %v7772_v28 = vsub.f32 %v9588_v21, %v7730_v3  ;;  %v7773_v0 = vsub.f32 %v9590_v26, %v7730_v3 }
 0x5cf   :  { %v7729_v7 = vpop.xlane.xlu0 %7728  ;;  %v7774_v31 = vsub.f32 %v9603_v46, %v7730_v3  ;;  %v7775_v55 = vsub.f32 %v9625_v35, %v7730_v3  ;;  %v7776_v52 = vsub.f32 %v9644_v6, %v7730_v3  ;;  %v7777_v32 = vsub.f32 %v9646_v15, %v7730_v3 }
 0x5d0   :  { %v9691_v8 = vmul.f32 0.0009765625, %v7729_v7  ;;  %v7770_v9 = vsub.f32 %v7766_v43, %v7768_v5  ;;  %v7778_v56 = vsub.f32 %v9654_v23, %v7730_v3  ;;  %v7779_v57 = vsub.f32 %v9660_v51, %v7730_v3 }
 0x5d1   :  { %v7765_v14 = vpop.xlane.xlu1 %7764 }
 0x5d2   :  { %v7769_v16 = vmul.f32 %v9691_v8, %v9691_v8  ;;  %v7788_v33 = vadd.f32 1e-12, %v7770_v9  ;;  %v7767_v13 = vmul.f32 0.0009765625, %v7765_v14  ;;  %v7780_v38 = vsub.f32 %v9594_v25, %v9691_v8 }
 0x5d3   :  { %v7781_v21 = vsub.f32 %v9596_v36, %v9691_v8  ;;  %v7782_v26 = vsub.f32 %v9621_v34, %v9691_v8  ;;  %v7783_v46 = vsub.f32 %v9630_v45, %v9691_v8  ;;  %v7784_v6 = vsub.f32 %v9652_v20, %v9691_v8 }
 0x5d4   :  { %9208 = vrsqrt.f32 %v7788_v33  ;;  %v7771_v22 = vsub.f32 %v7767_v13, %v7769_v16  ;;  %v7785_v15 = vsub.f32 %v9658_v48, %v9691_v8  ;;  %v7786_v23 = vsub.f32 %v9666_v30, %v9691_v8 }
 0x5d5   :  { %v7787_v25 = vsub.f32 %v9676_v37, %v9691_v8 }
 0x5d6   :  { %v7789_v24 = vadd.f32 1e-12, %v7771_v22 }
 0x5d7   :  { %v7929_v3 = vpop.permute.xlu0 %7928 }
 0x5d8   :  { %9210 = vrsqrt.f32 %v7789_v24 }
 0x5de   :  { %v9209_v35 = vpop.eup %9208 }
 0x5df   :  { %v7792_v36 = vmul.f32 %v9209_v35, %v7772_v28  ;;  %v7793_v51 = vmul.f32 %v9209_v35, %v7773_v0  ;;  %v7794_v59 = vmul.f32 %v9209_v35, %v7774_v31  ;;  %v7795_v34 = vmul.f32 %v9209_v35, %v7775_v55 }
 0x5e0   :  { %v7796_v60 = vmul.f32 %v9209_v35, %v7776_v52  ;;  %v7797_v61 = vmul.f32 %v9209_v35, %v7777_v32  ;;  %v7798_v45 = vmul.f32 %v9209_v35, %v7778_v56  ;;  %v7799_v62 = vmul.f32 %v9209_v35, %v7779_v57 }
 0x5e1   :  { %v7850_v63 = vmul.f32 %v9696_v44, %v7792_v36  ;;  %v7851_v20 = vmul.f32 %v9708_v47, %v7793_v51  ;;  %v7852_v48 = vmul.f32 %v9702_v29, %v7794_v59  ;;  %v7853_v1 = vmul.f32 %v9714_v39, %v7795_v34 }
 0x5e2   :  { %v7854_v30 = vmul.f32 %v9720_v11, %v7796_v60  ;;  %v7855_v37 = vmul.f32 %v9732_v12, %v7797_v61  ;;  %v7856_v10 = vmul.f32 %v9726_v17, %v7798_v45  ;;  %v7857_v2 = vmul.f32 %v9738_v18, %v7799_v62  ;;  %v9211_v8 = vpop.eup %9210 }
 0x5e3   :  { %v7908_v4 = vadd.f32 %v9699_v42, %v7850_v63  ;;  %v7909_v5 = vadd.f32 %v9711_v54, %v7851_v20  ;;  %v7910_v43 = vadd.f32 %v9705_v50, %v7852_v48  ;;  %v7911_v7 = vadd.f32 %v9717_v40, %v7853_v1 }
 0x5e4   :  { %v7912_v9 = vadd.f32 %v9723_v41, %v7854_v30  ;;  %v7913_v14 = vadd.f32 %v9735_v49, %v7855_v37  ;;  %v7914_v16 = vadd.f32 %v9729_v27, %v7856_v10  ;;  %v7915_v33 = vadd.f32 %v9741_v58, %v7857_v2 }
 0x5e5   :  { %v7936_v13 = vmul.f32 %v7929_v3, %v7908_v4  ;;  %v7937_v53 = vmul.f32 %v7929_v3, %v7909_v5  ;;  %v7938_v19 = vmul.f32 %v7929_v3, %v7910_v43  ;;  %v7939_v22 = vmul.f32 %v7929_v3, %v7911_v7 }
 0x5e6   :  { %v7940_v24 = vmul.f32 %v7929_v3, %v7912_v9  ;;  %v7941_v28 = vmul.f32 %v7929_v3, %v7913_v14  ;;  %v7942_v0 = vmul.f32 %v7929_v3, %v7914_v16  ;;  %v7943_v31 = vmul.f32 %v7929_v3, %v7915_v33 }
 0x5e7   :  { %v9059_v55 = vpack.c.bf16 %v7937_v53, %v7936_v13  ;;  %v9060_v52 = vpack.c.bf16 %v7939_v22, %v7938_v19  ;;  %v7800_v32 = vmul.f32 %v9211_v8, %v7780_v38  ;;  %v7801_v56 = vmul.f32 %v9211_v8, %v7781_v21  ;;  %v7934_v21 = vpop.permute.xlu1 %7933 }
 0x5e8   :  { %v9061_v57 = vpack.c.bf16 %v7941_v28, %v7940_v24  ;;  %v9062_v35 = vpack.c.bf16 %v7943_v31, %v7942_v0  ;;  %v7802_v36 = vmul.f32 %v9211_v8, %v7782_v26  ;;  %v7803_v51 = vmul.f32 %v9211_v8, %v7783_v46 }
 0x5e9   :  { %8000 = vst [vmem:[#allocation11] sm:$0xff] %v9059_v55  ;;  %8001 = vst [vmem:[#allocation11 + $0x8] sm:$0xff] %v9060_v52  ;;  %v7804_v59 = vmul.f32 %v9211_v8, %v7784_v6  ;;  %v7805_v34 = vmul.f32 %v9211_v8, %v7785_v15  ;;  %v7806_v60 = vmul.f32 %v9211_v8, %v7786_v23 }
 0x5ea   :  { %v7807_v61 = vmul.f32 %v9211_v8, %v7787_v25  ;;  %8002 = vst [vmem:[#allocation11 + $0x10] sm:$0xff] %v9061_v57  ;;  %8003 = vst [vmem:[#allocation11 + $0x18] sm:$0xff] %v9062_v35  ;;  %v7858_v45 = vmul.f32 %v9696_v44, %v7800_v32  ;;  %v7859_v62 = vmul.f32 %v9708_v47, %v7801_v56 }
 0x5eb   :  { %v7860_v63 = vmul.f32 %v9702_v29, %v7802_v36  ;;  %v7861_v38 = vmul.f32 %v9714_v39, %v7803_v51  ;;  %v7862_v26 = vmul.f32 %v9720_v11, %v7804_v59  ;;  %v7863_v46 = vmul.f32 %v9732_v12, %v7805_v34 }
 0x5ec   :  { %v7864_v6 = vmul.f32 %v9726_v17, %v7806_v60  ;;  %v7865_v15 = vmul.f32 %v9738_v18, %v7807_v61  ;;  %v7916_v23 = vadd.f32 %v9699_v42, %v7858_v45  ;;  %v7917_v25 = vadd.f32 %v9711_v54, %v7859_v62 }
 0x5ed   :  { %v7918_v44 = vadd.f32 %v9705_v50, %v7860_v63  ;;  %v7919_v47 = vadd.f32 %v9717_v40, %v7861_v38  ;;  %v7920_v29 = vadd.f32 %v9723_v41, %v7862_v26  ;;  %v7921_v39 = vadd.f32 %v9735_v49, %v7863_v46 }
 0x5ee   :  { %v7922_v11 = vadd.f32 %v9729_v27, %v7864_v6  ;;  %v7923_v12 = vadd.f32 %v9741_v58, %v7865_v15  ;;  %v7944_v20 = vmul.f32 %v7934_v21, %v7916_v23  ;;  %v7945_v17 = vmul.f32 %v7934_v21, %v7917_v25 }
 0x5ef   :  { %v7946_v48 = vmul.f32 %v7934_v21, %v7918_v44  ;;  %v7947_v18 = vmul.f32 %v7934_v21, %v7919_v47  ;;  %v7948_v42 = vmul.f32 %v7934_v21, %v7920_v29  ;;  %v7949_v54 = vmul.f32 %v7934_v21, %v7921_v39 }
 0x5f0   :  { %v7950_v1 = vmul.f32 %v7934_v21, %v7922_v11  ;;  %v7951_v50 = vmul.f32 %v7934_v21, %v7923_v12  ;;  %v9063_v30 = vpack.c.bf16 %v7945_v17, %v7944_v20 }
 0x5f1   :  { %v9064_v40 = vpack.c.bf16 %v7947_v18, %v7946_v48  ;;  %v9065_v37 = vpack.c.bf16 %v7949_v54, %v7948_v42 }
 0x5f2   :  { %v9066_v41 = vpack.c.bf16 %v7951_v50, %v7950_v1  ;;  %8004 = vst [vmem:[#allocation11 + $0x20] sm:$0xff] %v9063_v30 }
 0x5f3   :  { %8005 = vst [vmem:[#allocation11 + $0x28] sm:$0xff] %v9064_v40  ;;  %8006 = vst [vmem:[#allocation11 + $0x30] sm:$0xff] %v9065_v37 }
 0x5f4   :  { %8007 = vst [vmem:[#allocation11 + $0x38] sm:$0xff] %v9066_v41 }
 0x5f5   :  { %9333 = shalt.err (!%p9330_p2)
}
 0x5f6   :  { %s9334_s19 = scalar_lea.hbm %s9820_s6, 1024 }
 0x5f7   :  { %p9335_p3 = scmp.ne.s32.totalorder %s9820_s6, %s9334_s19  ;;  %p9338_p4 = scmp.lt.u32.totalorder %s9334_s19, %s9820_s6 }
 0x5f9   :  { %p9340_p5 = pnand %p9338_p4, %p9335_p3 }
 0x5fb   :  { %9343 = shalt.err (!%p9340_p5)
}
 0x5fc   :  { %8019 = dma.vmem_to_hbm [thread:$0]  %s8014_s15, 1024, %s9820_s6, [#allocation4], %s9353_s7, %s9353_s7, %s9354_s8  }
 0x5fd   :  { %9350 = dma.done.wait [#allocation4], 1024  }
 0x5fe   :  { %9351 = vsyncadd [#allocation4], 4294966272 }
 0x5ff   :  { %8023 = vsyncpa [#allocation3], 1 }
 0x600   :  { %8024 = vsyncpa [#allocation6], 1 }
 0x601   :  { %8025 = vsyncpa [#allocation9], 1 }
 0x602   :  { %8026 = vsyncpa [#allocation4], 1 }

</bundles_post_ra>
